<compile_context>
chip_gen: v7x
topology: tpu7x:2x2x1
jax: 0.10.0
libtpu: 0.0.40
codegen_flags: <defaults>
</compile_context>

<pallas_src>
import functools

import jax
import jax.numpy as jnp
from jax import lax
from jax.experimental import pallas as pl
from jax.experimental.pallas import tpu as pltpu

NEG_SLOPE = 0.2
BN_EPS = 1e-5
LANE = 128          # lane-dense width: Cout / K padded up to this
TM_CAP = 2048       # max rows per grid step


def _round_up(x, m):
    return ((x + m - 1) // m) * m


# ------------------------------ Pallas kernels -------------------------------

def _conv_bias_leaky_kernel(a_ref, w_ref, bias_ref, o_ref):
    """(TM, K) @ (K, 128) + bias, LeakyReLU(0.2). Tiles are independent."""
    y = jnp.dot(a_ref[...], w_ref[...], preferred_element_type=jnp.float32)
    y = y + bias_ref[...]
    y = jnp.where(y >= 0, y, NEG_SLOPE * y)
    o_ref[...] = y.astype(o_ref.dtype)


def _conv_bn_leaky_kernel(a_ref, w_ref, gamma_ref, beta_ref, o_ref,
                          sum_ref, sq_ref, *, inv_m, tm):
    """Fused conv matmul + BatchNorm (training-mode batch stats) + LeakyReLU.

    The full conv output for the layer is resident in the VMEM output block
    (same block index every grid step). Per-channel sum / sum-of-squares
    accumulate in scratch; the last grid step finalizes scale/shift and applies
    BN + LeakyReLU in place before the single HBM write-back. Zero-padded rows
    contribute zero to the stats (we divide by the real row count); padded
    channels have gamma=0 so their output is zero.
    """
    i = pl.program_id(0)
    y = jnp.dot(a_ref[...], w_ref[...], preferred_element_type=jnp.float32)

    @pl.when(i == 0)
    def _():
        sum_ref[...] = jnp.zeros_like(sum_ref)
        sq_ref[...] = jnp.zeros_like(sq_ref)

    sum_ref[...] += jnp.sum(y, axis=0, keepdims=True)
    sq_ref[...] += jnp.sum(y * y, axis=0, keepdims=True)

    row0 = pl.multiple_of(i * tm, tm)
    o_ref[pl.ds(row0, tm), :] = y.astype(o_ref.dtype)

    @pl.when(i == pl.num_programs(0) - 1)
    def _():
        mean = sum_ref[...] * inv_m
        var = sq_ref[...] * inv_m - mean * mean          # biased var (BN train)
        inv_std = lax.rsqrt(var + BN_EPS)
        scale = gamma_ref[...] * inv_std
        shift = beta_ref[...] - mean * scale
        yall = o_ref[...].astype(jnp.float32) * scale + shift
        yall = jnp.where(yall >= 0, yall, NEG_SLOPE * yall)
        o_ref[...] = yall.astype(o_ref.dtype)


# ------------------------------- JAX-side glue --------------------------------

def _pick_tiling(m):
    mp = _round_up(m, 16)
    if mp <= TM_CAP:
        return mp, mp          # single grid step
    mp = _round_up(mp, TM_CAP)
    return mp, TM_CAP


def _im2col_nhwc(x, kh, kw, stride, pad):
    """x: (N, H, W, C) -> (N*OH*OW, KH*KW*C); row order (n, oh, ow),
    column order (kh, kw, c)."""
    n, h, w, c = x.shape
    xp = jnp.pad(x, ((0, 0), (pad, pad), (pad, pad), (0, 0)))
    hp, wp = h + 2 * pad, w + 2 * pad
    oh = (hp - kh) // stride + 1
    ow = (wp - kw) // stride + 1
    cols = []
    for i in range(kh):
        for j in range(kw):
            cols.append(xp[:, i:i + stride * oh:stride, j:j + stride * ow:stride, :])
    p = jnp.stack(cols, axis=3)                          # (N, OH, OW, KH*KW, C)
    return p.reshape(n * oh * ow, kh * kw * c), oh, ow


def _prep_patches(x_nhwc, stride, pad):
    patches, oh, ow = _im2col_nhwc(x_nhwc, 4, 4, stride, pad)
    m, k = patches.shape
    mp, tm = _pick_tiling(m)
    kp = _round_up(k, LANE)
    patches = jnp.pad(patches.astype(jnp.bfloat16), ((0, mp - m), (0, kp - k)))
    return patches, m, mp, tm, kp, oh, ow


def _prep_weight(w):
    """(Cout, Cin, KH, KW) -> bf16 (K_pad, 128); K order (kh, kw, cin)."""
    cout, cin, kh, kw = w.shape
    assert cout <= LANE, "Cout > 128 would need an output-tile grid axis"
    wf = jnp.transpose(w, (2, 3, 1, 0)).reshape(kh * kw * cin, cout)
    kp = _round_up(kh * kw * cin, LANE)
    wf = jnp.pad(wf, ((0, kp - kh * kw * cin), (0, LANE - cout)))
    return wf.astype(jnp.bfloat16)


def _pad_vec(v):
    return jnp.pad(v.astype(jnp.float32), (0, LANE - v.shape[0])).reshape(1, LANE)


def conv_bias_leaky_layer(x_nhwc, w, b):
    n = x_nhwc.shape[0]
    cout = w.shape[0]
    patches, m, mp, tm, kp, oh, ow = _prep_patches(x_nhwc, 2, 1)
    out = pl.pallas_call(
        _conv_bias_leaky_kernel,
        out_shape=jax.ShapeDtypeStruct((mp, LANE), jnp.bfloat16),
        grid=(mp // tm,),
        in_specs=[
            pl.BlockSpec((tm, kp), lambda i: (i, 0)),
            pl.BlockSpec((kp, LANE), lambda i: (0, 0)),
            pl.BlockSpec((1, LANE), lambda i: (0, 0)),
        ],
        out_specs=pl.BlockSpec((tm, LANE), lambda i: (i, 0)),
        compiler_params=pltpu.CompilerParams(dimension_semantics=("parallel",)),
    )(patches, _prep_weight(w), _pad_vec(b))
    return out[:m, :cout].reshape(n, oh, ow, cout)


def conv_bn_leaky_layer(x_nhwc, w, gamma, beta):
    n = x_nhwc.shape[0]
    cout = w.shape[0]
    patches, m, mp, tm, kp, oh, ow = _prep_patches(x_nhwc, 2, 1)
    kernel = functools.partial(_conv_bn_leaky_kernel, inv_m=1.0 / m, tm=tm)
    out = pl.pallas_call(
        kernel,
        out_shape=jax.ShapeDtypeStruct((mp, LANE), jnp.bfloat16),
        grid=(mp // tm,),
        in_specs=[
            pl.BlockSpec((tm, kp), lambda i: (i, 0)),
            pl.BlockSpec((kp, LANE), lambda i: (0, 0)),
            pl.BlockSpec((1, LANE), lambda i: (0, 0)),
            pl.BlockSpec((1, LANE), lambda i: (0, 0)),
        ],
        # Full-layer output resident in VMEM across the whole grid.
        out_specs=pl.BlockSpec((mp, LANE), lambda i: (0, 0)),
        scratch_shapes=[pltpu.VMEM((1, LANE), jnp.float32),
                        pltpu.VMEM((1, LANE), jnp.float32)],
        compiler_params=pltpu.CompilerParams(dimension_semantics=("arbitrary",)),
    )(patches, _prep_weight(w), _pad_vec(gamma), _pad_vec(beta))
    return out[:m, :cout].reshape(n, oh, ow, cout)


def _final_conv_sigmoid(x_nhwc, w, b):
    # Final 4x4 valid conv (stride 2, pad 0) + sigmoid kept as plain JAX per the
    # perf review: an (N, 1024) x (1024, 1) matmul cannot feed the MXU and a
    # pallas_call launch costs more than the compute.
    n = x_nhwc.shape[0]
    cout, cin, kh, kw = w.shape
    patches, oh, ow = _im2col_nhwc(x_nhwc, kh, kw, 2, 0)
    wf = jnp.transpose(w, (2, 3, 1, 0)).reshape(kh * kw * cin, cout)
    y = jnp.dot(patches.astype(jnp.float32), wf) + b
    return jax.nn.sigmoid(y).reshape(n, oh, ow, cout)


def discriminator_forward(x_nchw, p):
    """x_nchw: (N, C, H, W) float32 — same layout/semantics as the PyTorch module."""
    x = jnp.transpose(x_nchw, (0, 2, 3, 1)).astype(jnp.bfloat16)   # NHWC once
    x = conv_bias_leaky_layer(x, p["w1"], p["b1"])
    x = conv_bn_leaky_layer(x, p["w2"], p["g2"], p["be2"])
    x = conv_bn_leaky_layer(x, p["w3"], p["g3"], p["be3"])
    x = conv_bn_leaky_layer(x, p["w4"], p["g4"], p["be4"])
    y = _final_conv_sigmoid(x, p["w5"], p["b5"])
    return jnp.transpose(y, (0, 3, 1, 2))                          # back to NCHW


def init_params(key, chan_imgs, feat_d):
    ks = jax.random.split(key, 6)

    def conv_w(k, co, ci):
        return jax.random.normal(k, (co, ci, 4, 4), jnp.float32) * 0.05

    p = {}
    p["w1"] = conv_w(ks[0], feat_d, chan_imgs)
    p["b1"] = jax.random.normal(ks[5], (feat_d,), jnp.float32) * 0.05
    p["w2"] = conv_w(ks[1], feat_d * 2, feat_d)
    p["g2"] = jnp.ones((feat_d * 2,), jnp.float32)
    p["be2"] = jnp.zeros((feat_d * 2,), jnp.float32)
    p["w3"] = conv_w(ks[2], feat_d * 4, feat_d * 2)
    p["g3"] = jnp.ones((feat_d * 4,), jnp.float32)
    p["be3"] = jnp.zeros((feat_d * 4,), jnp.float32)
    p["w4"] = conv_w(ks[3], feat_d * 8, feat_d * 4)
    p["g4"] = jnp.ones((feat_d * 8,), jnp.float32)
    p["be4"] = jnp.zeros((feat_d * 8,), jnp.float32)
    p["w5"] = conv_w(ks[4], 1, feat_d * 8)
    p["b5"] = jnp.zeros((1,), jnp.float32)
    return p


if __name__ == "__main__":
    # DCGAN discriminator needs 64x64 inputs to reach the final 4->1 valid conv.
    chan_imgs, feat_d, batch = 3, 8, 2
    key = jax.random.PRNGKey(0)
    kx, kp = jax.random.split(key)
    x = jax.random.normal(kx, (batch, chan_imgs, 64, 64), jnp.float32)
    params = init_params(kp, chan_imgs, feat_d)

    fwd = jax.jit(discriminator_forward)
    out = jax.block_until_ready(fwd(x, params))

    assert out.shape == (batch, 1, 1, 1), out.shape
    assert bool(jnp.all(jnp.isfinite(out)))
    assert bool(jnp.all((out >= 0.0) & (out <= 1.0)))
    print("KERNEL_OK")
</pallas_src>

<mosaic_0001>
module attributes {stable_mosaic.version = 11 : i64} {
  func.func @_conv_bias_leaky_kernel(%arg0: i32, %arg1: memref<2048x128xbf16, #tpu.memory_space<vmem>>, %arg2: memref<128x128xbf16, #tpu.memory_space<vmem>>, %arg3: memref<1x128xf32, #tpu.memory_space<vmem>>, %arg4: memref<2048x128xbf16, #tpu.memory_space<vmem>>) attributes {dimension_semantics = [#tpu.dimension_semantics<parallel>], iteration_bounds = array<i64: 1>, scalar_prefetch = 0 : i64, scratch_operands = 0 : i64, tpu.core_type = #tpu.core_type<tc>, window_params = [{transform_indices = @transform_0, window_bounds = array<i64: 2048, 128>}, {pipeline_mode = #tpu.pipeline_mode<synchronous>, transform_indices = @transform_1, window_bounds = array<i64: 128, 128>}, {pipeline_mode = #tpu.pipeline_mode<synchronous>, transform_indices = @transform_2, window_bounds = array<i64: 1, 128>}, {transform_indices = @transform_3, window_bounds = array<i64: 2048, 128>}]} {
    %c0 = arith.constant 0 : index
    %c0_0 = arith.constant 0 : index
    %0 = vector.load %arg1[%c0, %c0_0] : memref<2048x128xbf16, #tpu.memory_space<vmem>>, vector<2048x128xbf16>
    %c0_1 = arith.constant 0 : index
    %c0_2 = arith.constant 0 : index
    %1 = vector.load %arg2[%c0_1, %c0_2] : memref<128x128xbf16, #tpu.memory_space<vmem>>, vector<128x128xbf16>
    %cst = arith.constant dense<0.000000e+00> : vector<2048x128xf32>
    %2 = tpu.matmul %0, %1, %cst {dimension_numbers = #tpu.dot_dimension_numbers<[1], [0], [0], [1], [0, 0, 1, 1], [], []>} : vector<2048x128xbf16>, vector<128x128xbf16>, vector<2048x128xf32> -> vector<2048x128xf32>
    %c0_3 = arith.constant 0 : index
    %c0_4 = arith.constant 0 : index
    %3 = vector.load %arg3[%c0_3, %c0_4] : memref<1x128xf32, #tpu.memory_space<vmem>>, vector<1x128xf32>
    %4 = vector.broadcast %3 : vector<1x128xf32> to vector<2048x128xf32>
    %5 = arith.addf %2, %4 : vector<2048x128xf32>
    %cst_5 = arith.constant 0.000000e+00 : f32
    %6 = vector.broadcast %cst_5 : f32 to vector<2048x128xf32>
    %7 = arith.cmpf oge, %5, %6 : vector<2048x128xf32>
    %cst_6 = arith.constant 2.000000e-01 : f32
    %8 = vector.broadcast %cst_6 : f32 to vector<2048x128xf32>
    %9 = arith.mulf %8, %5 : vector<2048x128xf32>
    %10 = arith.select %7, %5, %9 : vector<2048x128xi1>, vector<2048x128xf32>
    %11 = arith.truncf %10 : vector<2048x128xf32> to vector<2048x128xbf16>
    %c0_7 = arith.constant 0 : index
    %c0_8 = arith.constant 0 : index
    %12 = vector.load %arg4[%c0_7, %c0_8] : memref<2048x128xbf16, #tpu.memory_space<vmem>>, vector<2048x128xbf16>
    tpu.vector_store %arg4[%c0_7, %c0_8], %11 {strides = array<i32>} : memref<2048x128xbf16, #tpu.memory_space<vmem>>, vector<2048x128xbf16>,
    return
  }
  func.func @transform_0(%arg0: i32) -> (i32, i32) {
    %c0_i32 = arith.constant 0 : i32
    %c0_i32_0 = arith.constant 0 : i32
    return %arg0, %c0_i32 : i32, i32
  }
  func.func @transform_1(%arg0: i32) -> (i32, i32) {
    %c0_i32 = arith.constant 0 : i32
    %c0_i32_0 = arith.constant 0 : i32
    %c0_i32_1 = arith.constant 0 : i32
    return %c0_i32, %c0_i32_0 : i32, i32
  }
  func.func @transform_2(%arg0: i32) -> (i32, i32) {
    %c0_i32 = arith.constant 0 : i32
    %c0_i32_0 = arith.constant 0 : i32
    %c0_i32_1 = arith.constant 0 : i32
    return %c0_i32, %c0_i32_0 : i32, i32
  }
  func.func @transform_3(%arg0: i32) -> (i32, i32) {
    %c0_i32 = arith.constant 0 : i32
    %c0_i32_0 = arith.constant 0 : i32
    return %arg0, %c0_i32 : i32, i32
  }
}

module attributes {stable_mosaic.version = 11 : i64} {
  func.func @_conv_bn_leaky_kernel(%arg0: i32, %arg1: memref<512x128xbf16, #tpu.memory_space<vmem>>, %arg2: memref<128x128xbf16, #tpu.memory_space<vmem>>, %arg3: memref<1x128xf32, #tpu.memory_space<vmem>>, %arg4: memref<1x128xf32, #tpu.memory_space<vmem>>, %arg5: memref<512x128xbf16, #tpu.memory_space<vmem>>, %arg6: memref<1x128xf32, #tpu.memory_space<vmem>>, %arg7: memref<1x128xf32, #tpu.memory_space<vmem>>) attributes {dimension_semantics = [#tpu.dimension_semantics<arbitrary>], iteration_bounds = array<i64: 1>, scalar_prefetch = 0 : i64, scratch_operands = 2 : i64, tpu.core_type = #tpu.core_type<tc>, window_params = [{transform_indices = @transform_0, window_bounds = array<i64: 512, 128>}, {pipeline_mode = #tpu.pipeline_mode<synchronous>, transform_indices = @transform_1, window_bounds = array<i64: 128, 128>}, {pipeline_mode = #tpu.pipeline_mode<synchronous>, transform_indices = @transform_2, window_bounds = array<i64: 1, 128>}, {pipeline_mode = #tpu.pipeline_mode<synchronous>, transform_indices = @transform_3, window_bounds = array<i64: 1, 128>}, {pipeline_mode = #tpu.pipeline_mode<synchronous>, transform_indices = @transform_4, window_bounds = array<i64: 512, 128>}]} {
    %c0 = arith.constant 0 : index
    %c0_0 = arith.constant 0 : index
    %0 = vector.load %arg1[%c0, %c0_0] : memref<512x128xbf16, #tpu.memory_space<vmem>>, vector<512x128xbf16>
    %c0_1 = arith.constant 0 : index
    %c0_2 = arith.constant 0 : index
    %1 = vector.load %arg2[%c0_1, %c0_2] : memref<128x128xbf16, #tpu.memory_space<vmem>>, vector<128x128xbf16>
    %cst = arith.constant dense<0.000000e+00> : vector<512x128xf32>
    %2 = tpu.matmul %0, %1, %cst {dimension_numbers = #tpu.dot_dimension_numbers<[1], [0], [0], [1], [0, 0, 1, 1], [], []>} : vector<512x128xbf16>, vector<128x128xbf16>, vector<512x128xf32> -> vector<512x128xf32>
    %c0_i32 = arith.constant 0 : i32
    %3 = arith.cmpi eq, %arg0, %c0_i32 : i32
    %4 = arith.extui %3 : i1 to i32
    %c0_i32_3 = arith.constant 0 : i32
    %5 = arith.cmpi ne, %4, %c0_i32_3 : i32
    scf.if %5 {
      %cst_17 = arith.constant 0.000000e+00 : f32
      %25 = vector.broadcast %cst_17 : f32 to vector<1x128xf32>
      %c0_18 = arith.constant 0 : index
      %c0_19 = arith.constant 0 : index
      %26 = vector.load %arg6[%c0_18, %c0_19] : memref<1x128xf32, #tpu.memory_space<vmem>>, vector<1x128xf32>
      tpu.vector_store %arg6[%c0_18, %c0_19], %25 {strides = array<i32>} : memref<1x128xf32, #tpu.memory_space<vmem>>, vector<1x128xf32>,
      %cst_20 = arith.constant 0.000000e+00 : f32
      %27 = vector.broadcast %cst_20 : f32 to vector<1x128xf32>
      %c0_21 = arith.constant 0 : index
      %c0_22 = arith.constant 0 : index
      %28 = vector.load %arg7[%c0_21, %c0_22] : memref<1x128xf32, #tpu.memory_space<vmem>>, vector<1x128xf32>
      tpu.vector_store %arg7[%c0_21, %c0_22], %27 {strides = array<i32>} : memref<1x128xf32, #tpu.memory_space<vmem>>, vector<1x128xf32>,
    } else {
    }
    %c0_4 = arith.constant 0 : index
    %c0_5 = arith.constant 0 : index
    %6 = vector.load %arg6[%c0_4, %c0_5] : memref<1x128xf32, #tpu.memory_space<vmem>>, vector<1x128xf32>
    %cst_6 = arith.constant dense<0.000000e+00> : vector<128xf32>
    %7 = vector.multi_reduction <add>, %2, %cst_6 [0] : vector<512x128xf32> to vector<128xf32>
    %8 = vector.shape_cast %7 : vector<128xf32> to vector<1x128xf32>
    %9 = arith.addf %6, %8 : vector<1x128xf32>
    %c0_7 = arith.constant 0 : index
    %c0_8 = arith.constant 0 : index
    %10 = vector.load %arg6[%c0_7, %c0_8] : memref<1x128xf32, #tpu.memory_space<vmem>>, vector<1x128xf32>
    tpu.vector_store %arg6[%c0_7, %c0_8], %9 {strides = array<i32>} : memref<1x128xf32, #tpu.memory_space<vmem>>, vector<1x128xf32>,
    %c0_9 = arith.constant 0 : index
    %c0_10 = arith.constant 0 : index
    %11 = vector.load %arg7[%c0_9, %c0_10] : memref<1x128xf32, #tpu.memory_space<vmem>>, vector<1x128xf32>
    %12 = arith.mulf %2, %2 : vector<512x128xf32>
    %cst_11 = arith.constant dense<0.000000e+00> : vector<128xf32>
    %13 = vector.multi_reduction <add>, %12, %cst_11 [0] : vector<512x128xf32> to vector<128xf32>
    %14 = vector.shape_cast %13 : vector<128xf32> to vector<1x128xf32>
    %15 = arith.addf %11, %14 : vector<1x128xf32>
    %c0_12 = arith.constant 0 : index
    %c0_13 = arith.constant 0 : index
    %16 = vector.load %arg7[%c0_12, %c0_13] : memref<1x128xf32, #tpu.memory_space<vmem>>, vector<1x128xf32>
    tpu.vector_store %arg7[%c0_12, %c0_13], %15 {strides = array<i32>} : memref<1x128xf32, #tpu.memory_space<vmem>>, vector<1x128xf32>,
    %c512_i32 = arith.constant 512 : i32
    %17 = arith.muli %arg0, %c512_i32 : i32
    %18 = tpu.assume_multiple %17, 512 : i32
    %19 = arith.truncf %2 : vector<512x128xf32> to vector<512x128xbf16>
    %20 = arith.index_cast %18 : i32 to index
    %c0_14 = arith.constant 0 : index
    %21 = vector.load %arg5[%20, %c0_14] : memref<512x128xbf16, #tpu.memory_space<vmem>>, vector<512x128xbf16>
    tpu.vector_store %arg5[%20, %c0_14], %19 {strides = array<i32>} : memref<512x128xbf16, #tpu.memory_space<vmem>>, vector<512x128xbf16>,
    %c0_i32_15 = arith.constant 0 : i32
    %22 = arith.cmpi eq, %arg0, %c0_i32_15 : i32
    %23 = arith.extui %22 : i1 to i32
    %c0_i32_16 = arith.constant 0 : i32
    %24 = arith.cmpi ne, %23, %c0_i32_16 : i32
    scf.if %24 {
      %c0_17 = arith.constant 0 : index
      %c0_18 = arith.constant 0 : index
      %25 = vector.load %arg6[%c0_17, %c0_18] : memref<1x128xf32, #tpu.memory_space<vmem>>, vector<1x128xf32>
      %cst_19 = arith.constant 0.001953125 : f32
      %26 = vector.broadcast %cst_19 : f32 to vector<1x128xf32>
      %27 = arith.mulf %25, %26 : vector<1x128xf32>
      %c0_20 = arith.constant 0 : index
      %c0_21 = arith.constant 0 : index
      %28 = vector.load %arg7[%c0_20, %c0_21] : memref<1x128xf32, #tpu.memory_space<vmem>>, vector<1x128xf32>
      %cst_22 = arith.constant 0.001953125 : f32
      %29 = vector.broadcast %cst_22 : f32 to vector<1x128xf32>
      %30 = arith.mulf %28, %29 : vector<1x128xf32>
      %31 = arith.mulf %27, %27 : vector<1x128xf32>
      %32 = arith.subf %30, %31 : vector<1x128xf32>
      %cst_23 = arith.constant 9.99999974E-6 : f32
      %33 = vector.broadcast %cst_23 : f32 to vector<1x128xf32>
      %34 = arith.addf %32, %33 : vector<1x128xf32>
      %35 = math.rsqrt %34 : vector<1x128xf32>
      %c0_24 = arith.constant 0 : index
      %c0_25 = arith.constant 0 : index
      %36 = vector.load %arg3[%c0_24, %c0_25] : memref<1x128xf32, #tpu.memory_space<vmem>>, vector<1x128xf32>
      %37 = arith.mulf %36, %35 : vector<1x128xf32>
      %c0_26 = arith.constant 0 : index
      %c0_27 = arith.constant 0 : index
      %38 = vector.load %arg4[%c0_26, %c0_27] : memref<1x128xf32, #tpu.memory_space<vmem>>, vector<1x128xf32>
      %39 = arith.mulf %27, %37 : vector<1x128xf32>
      %40 = arith.subf %38, %39 : vector<1x128xf32>
      %c0_28 = arith.constant 0 : index
      %c0_29 = arith.constant 0 : index
      %41 = vector.load %arg5[%c0_28, %c0_29] : memref<512x128xbf16, #tpu.memory_space<vmem>>, vector<512x128xbf16>
      %42 = arith.extf %41 : vector<512x128xbf16> to vector<512x128xf32>
      %43 = vector.broadcast %37 : vector<1x128xf32> to vector<512x128xf32>
      %44 = arith.mulf %42, %43 : vector<512x128xf32>
      %45 = vector.broadcast %40 : vector<1x128xf32> to vector<512x128xf32>
      %46 = arith.addf %44, %45 : vector<512x128xf32>
      %cst_30 = arith.constant 0.000000e+00 : f32
      %47 = vector.broadcast %cst_30 : f32 to vector<512x128xf32>
      %48 = arith.cmpf oge, %46, %47 : vector<512x128xf32>
      %cst_31 = arith.constant 2.000000e-01 : f32
      %49 = vector.broadcast %cst_31 : f32 to vector<512x128xf32>
      %50 = arith.mulf %49, %46 : vector<512x128xf32>
      %51 = arith.select %48, %46, %50 : vector<512x128xi1>, vector<512x128xf32>
      %52 = arith.truncf %51 : vector<512x128xf32> to vector<512x128xbf16>
      %c0_32 = arith.constant 0 : index
      %c0_33 = arith.constant 0 : index
      %53 = vector.load %arg5[%c0_32, %c0_33] : memref<512x128xbf16, #tpu.memory_space<vmem>>, vector<512x128xbf16>
      tpu.vector_store %arg5[%c0_32, %c0_33], %52 {strides = array<i32>} : memref<512x128xbf16, #tpu.memory_space<vmem>>, vector<512x128xbf16>,
    } else {
    }
    return
  }
  func.func @transform_0(%arg0: i32) -> (i32, i32) {
    %c0_i32 = arith.constant 0 : i32
    %c0_i32_0 = arith.constant 0 : i32
    return %arg0, %c0_i32 : i32, i32
  }
  func.func @transform_1(%arg0: i32) -> (i32, i32) {
    %c0_i32 = arith.constant 0 : i32
    %c0_i32_0 = arith.constant 0 : i32
    %c0_i32_1 = arith.constant 0 : i32
    return %c0_i32, %c0_i32_0 : i32, i32
  }
  func.func @transform_2(%arg0: i32) -> (i32, i32) {
    %c0_i32 = arith.constant 0 : i32
    %c0_i32_0 = arith.constant 0 : i32
    %c0_i32_1 = arith.constant 0 : i32
    return %c0_i32, %c0_i32_0 : i32, i32
  }
  func.func @transform_3(%arg0: i32) -> (i32, i32) {
    %c0_i32 = arith.constant 0 : i32
    %c0_i32_0 = arith.constant 0 : i32
    %c0_i32_1 = arith.constant 0 : i32
    return %c0_i32, %c0_i32_0 : i32, i32
  }
  func.func @transform_4(%arg0: i32) -> (i32, i32) {
    %c0_i32 = arith.constant 0 : i32
    %c0_i32_0 = arith.constant 0 : i32
    %c0_i32_1 = arith.constant 0 : i32
    return %c0_i32, %c0_i32_0 : i32, i32
  }
}

module attributes {stable_mosaic.version = 11 : i64} {
  func.func @_conv_bn_leaky_kernel(%arg0: i32, %arg1: memref<128x256xbf16, #tpu.memory_space<vmem>>, %arg2: memref<256x128xbf16, #tpu.memory_space<vmem>>, %arg3: memref<1x128xf32, #tpu.memory_space<vmem>>, %arg4: memref<1x128xf32, #tpu.memory_space<vmem>>, %arg5: memref<128x128xbf16, #tpu.memory_space<vmem>>, %arg6: memref<1x128xf32, #tpu.memory_space<vmem>>, %arg7: memref<1x128xf32, #tpu.memory_space<vmem>>) attributes {dimension_semantics = [#tpu.dimension_semantics<arbitrary>], iteration_bounds = array<i64: 1>, scalar_prefetch = 0 : i64, scratch_operands = 2 : i64, tpu.core_type = #tpu.core_type<tc>, window_params = [{transform_indices = @transform_0, window_bounds = array<i64: 128, 256>}, {pipeline_mode = #tpu.pipeline_mode<synchronous>, transform_indices = @transform_1, window_bounds = array<i64: 256, 128>}, {pipeline_mode = #tpu.pipeline_mode<synchronous>, transform_indices = @transform_2, window_bounds = array<i64: 1, 128>}, {pipeline_mode = #tpu.pipeline_mode<synchronous>, transform_indices = @transform_3, window_bounds = array<i64: 1, 128>}, {pipeline_mode = #tpu.pipeline_mode<synchronous>, transform_indices = @transform_4, window_bounds = array<i64: 128, 128>}]} {
    %c0 = arith.constant 0 : index
    %c0_0 = arith.constant 0 : index
    %0 = vector.load %arg1[%c0, %c0_0] : memref<128x256xbf16, #tpu.memory_space<vmem>>, vector<128x256xbf16>
    %c0_1 = arith.constant 0 : index
    %c0_2 = arith.constant 0 : index
    %1 = vector.load %arg2[%c0_1, %c0_2] : memref<256x128xbf16, #tpu.memory_space<vmem>>, vector<256x128xbf16>
    %cst = arith.constant dense<0.000000e+00> : vector<128x128xf32>
    %2 = tpu.matmul %0, %1, %cst {dimension_numbers = #tpu.dot_dimension_numbers<[1], [0], [0], [1], [0, 0, 1, 1], [], []>} : vector<128x256xbf16>, vector<256x128xbf16>, vector<128x128xf32> -> vector<128x128xf32>
    %c0_i32 = arith.constant 0 : i32
    %3 = arith.cmpi eq, %arg0, %c0_i32 : i32
    %4 = arith.extui %3 : i1 to i32
    %c0_i32_3 = arith.constant 0 : i32
    %5 = arith.cmpi ne, %4, %c0_i32_3 : i32
    scf.if %5 {
      %cst_17 = arith.constant 0.000000e+00 : f32
      %25 = vector.broadcast %cst_17 : f32 to vector<1x128xf32>
      %c0_18 = arith.constant 0 : index
      %c0_19 = arith.constant 0 : index
      %26 = vector.load %arg6[%c0_18, %c0_19] : memref<1x128xf32, #tpu.memory_space<vmem>>, vector<1x128xf32>
      tpu.vector_store %arg6[%c0_18, %c0_19], %25 {strides = array<i32>} : memref<1x128xf32, #tpu.memory_space<vmem>>, vector<1x128xf32>,
      %cst_20 = arith.constant 0.000000e+00 : f32
      %27 = vector.broadcast %cst_20 : f32 to vector<1x128xf32>
      %c0_21 = arith.constant 0 : index
      %c0_22 = arith.constant 0 : index
      %28 = vector.load %arg7[%c0_21, %c0_22] : memref<1x128xf32, #tpu.memory_space<vmem>>, vector<1x128xf32>
      tpu.vector_store %arg7[%c0_21, %c0_22], %27 {strides = array<i32>} : memref<1x128xf32, #tpu.memory_space<vmem>>, vector<1x128xf32>,
    } else {
    }
    %c0_4 = arith.constant 0 : index
    %c0_5 = arith.constant 0 : index
    %6 = vector.load %arg6[%c0_4, %c0_5] : memref<1x128xf32, #tpu.memory_space<vmem>>, vector<1x128xf32>
    %cst_6 = arith.constant dense<0.000000e+00> : vector<128xf32>
    %7 = vector.multi_reduction <add>, %2, %cst_6 [0] : vector<128x128xf32> to vector<128xf32>
    %8 = vector.shape_cast %7 : vector<128xf32> to vector<1x128xf32>
    %9 = arith.addf %6, %8 : vector<1x128xf32>
    %c0_7 = arith.constant 0 : index
    %c0_8 = arith.constant 0 : index
    %10 = vector.load %arg6[%c0_7, %c0_8] : memref<1x128xf32, #tpu.memory_space<vmem>>, vector<1x128xf32>
    tpu.vector_store %arg6[%c0_7, %c0_8], %9 {strides = array<i32>} : memref<1x128xf32, #tpu.memory_space<vmem>>, vector<1x128xf32>,
    %c0_9 = arith.constant 0 : index
    %c0_10 = arith.constant 0 : index
    %11 = vector.load %arg7[%c0_9, %c0_10] : memref<1x128xf32, #tpu.memory_space<vmem>>, vector<1x128xf32>
    %12 = arith.mulf %2, %2 : vector<128x128xf32>
    %cst_11 = arith.constant dense<0.000000e+00> : vector<128xf32>
    %13 = vector.multi_reduction <add>, %12, %cst_11 [0] : vector<128x128xf32> to vector<128xf32>
    %14 = vector.shape_cast %13 : vector<128xf32> to vector<1x128xf32>
    %15 = arith.addf %11, %14 : vector<1x128xf32>
    %c0_12 = arith.constant 0 : index
    %c0_13 = arith.constant 0 : index
    %16 = vector.load %arg7[%c0_12, %c0_13] : memref<1x128xf32, #tpu.memory_space<vmem>>, vector<1x128xf32>
    tpu.vector_store %arg7[%c0_12, %c0_13], %15 {strides = array<i32>} : memref<1x128xf32, #tpu.memory_space<vmem>>, vector<1x128xf32>,
    %c128_i32 = arith.constant 128 : i32
    %17 = arith.muli %arg0, %c128_i32 : i32
    %18 = tpu.assume_multiple %17, 128 : i32
    %19 = arith.truncf %2 : vector<128x128xf32> to vector<128x128xbf16>
    %20 = arith.index_cast %18 : i32 to index
    %c0_14 = arith.constant 0 : index
    %21 = vector.load %arg5[%20, %c0_14] : memref<128x128xbf16, #tpu.memory_space<vmem>>, vector<128x128xbf16>
    tpu.vector_store %arg5[%20, %c0_14], %19 {strides = array<i32>} : memref<128x128xbf16, #tpu.memory_space<vmem>>, vector<128x128xbf16>,
    %c0_i32_15 = arith.constant 0 : i32
    %22 = arith.cmpi eq, %arg0, %c0_i32_15 : i32
    %23 = arith.extui %22 : i1 to i32
    %c0_i32_16 = arith.constant 0 : i32
    %24 = arith.cmpi ne, %23, %c0_i32_16 : i32
    scf.if %24 {
      %c0_17 = arith.constant 0 : index
      %c0_18 = arith.constant 0 : index
      %25 = vector.load %arg6[%c0_17, %c0_18] : memref<1x128xf32, #tpu.memory_space<vmem>>, vector<1x128xf32>
      %cst_19 = arith.constant 7.812500e-03 : f32
      %26 = vector.broadcast %cst_19 : f32 to vector<1x128xf32>
      %27 = arith.mulf %25, %26 : vector<1x128xf32>
      %c0_20 = arith.constant 0 : index
      %c0_21 = arith.constant 0 : index
      %28 = vector.load %arg7[%c0_20, %c0_21] : memref<1x128xf32, #tpu.memory_space<vmem>>, vector<1x128xf32>
      %cst_22 = arith.constant 7.812500e-03 : f32
      %29 = vector.broadcast %cst_22 : f32 to vector<1x128xf32>
      %30 = arith.mulf %28, %29 : vector<1x128xf32>
      %31 = arith.mulf %27, %27 : vector<1x128xf32>
      %32 = arith.subf %30, %31 : vector<1x128xf32>
      %cst_23 = arith.constant 9.99999974E-6 : f32
      %33 = vector.broadcast %cst_23 : f32 to vector<1x128xf32>
      %34 = arith.addf %32, %33 : vector<1x128xf32>
      %35 = math.rsqrt %34 : vector<1x128xf32>
      %c0_24 = arith.constant 0 : index
      %c0_25 = arith.constant 0 : index
      %36 = vector.load %arg3[%c0_24, %c0_25] : memref<1x128xf32, #tpu.memory_space<vmem>>, vector<1x128xf32>
      %37 = arith.mulf %36, %35 : vector<1x128xf32>
      %c0_26 = arith.constant 0 : index
      %c0_27 = arith.constant 0 : index
      %38 = vector.load %arg4[%c0_26, %c0_27] : memref<1x128xf32, #tpu.memory_space<vmem>>, vector<1x128xf32>
      %39 = arith.mulf %27, %37 : vector<1x128xf32>
      %40 = arith.subf %38, %39 : vector<1x128xf32>
      %c0_28 = arith.constant 0 : index
      %c0_29 = arith.constant 0 : index
      %41 = vector.load %arg5[%c0_28, %c0_29] : memref<128x128xbf16, #tpu.memory_space<vmem>>, vector<128x128xbf16>
      %42 = arith.extf %41 : vector<128x128xbf16> to vector<128x128xf32>
      %43 = vector.broadcast %37 : vector<1x128xf32> to vector<128x128xf32>
      %44 = arith.mulf %42, %43 : vector<128x128xf32>
      %45 = vector.broadcast %40 : vector<1x128xf32> to vector<128x128xf32>
      %46 = arith.addf %44, %45 : vector<128x128xf32>
      %cst_30 = arith.constant 0.000000e+00 : f32
      %47 = vector.broadcast %cst_30 : f32 to vector<128x128xf32>
      %48 = arith.cmpf oge, %46, %47 : vector<128x128xf32>
      %cst_31 = arith.constant 2.000000e-01 : f32
      %49 = vector.broadcast %cst_31 : f32 to vector<128x128xf32>
      %50 = arith.mulf %49, %46 : vector<128x128xf32>
      %51 = arith.select %48, %46, %50 : vector<128x128xi1>, vector<128x128xf32>
      %52 = arith.truncf %51 : vector<128x128xf32> to vector<128x128xbf16>
      %c0_32 = arith.constant 0 : index
      %c0_33 = arith.constant 0 : index
      %53 = vector.load %arg5[%c0_32, %c0_33] : memref<128x128xbf16, #tpu.memory_space<vmem>>, vector<128x128xbf16>
      tpu.vector_store %arg5[%c0_32, %c0_33], %52 {strides = array<i32>} : memref<128x128xbf16, #tpu.memory_space<vmem>>, vector<128x128xbf16>,
    } else {
    }
    return
  }
  func.func @transform_0(%arg0: i32) -> (i32, i32) {
    %c0_i32 = arith.constant 0 : i32
    %c0_i32_0 = arith.constant 0 : i32
    return %arg0, %c0_i32 : i32, i32
  }
  func.func @transform_1(%arg0: i32) -> (i32, i32) {
    %c0_i32 = arith.constant 0 : i32
    %c0_i32_0 = arith.constant 0 : i32
    %c0_i32_1 = arith.constant 0 : i32
    return %c0_i32, %c0_i32_0 : i32, i32
  }
  func.func @transform_2(%arg0: i32) -> (i32, i32) {
    %c0_i32 = arith.constant 0 : i32
    %c0_i32_0 = arith.constant 0 : i32
    %c0_i32_1 = arith.constant 0 : i32
    return %c0_i32, %c0_i32_0 : i32, i32
  }
  func.func @transform_3(%arg0: i32) -> (i32, i32) {
    %c0_i32 = arith.constant 0 : i32
    %c0_i32_0 = arith.constant 0 : i32
    %c0_i32_1 = arith.constant 0 : i32
    return %c0_i32, %c0_i32_0 : i32, i32
  }
  func.func @transform_4(%arg0: i32) -> (i32, i32) {
    %c0_i32 = arith.constant 0 : i32
    %c0_i32_0 = arith.constant 0 : i32
    %c0_i32_1 = arith.constant 0 : i32
    return %c0_i32, %c0_i32_0 : i32, i32
  }
}

module attributes {stable_mosaic.version = 11 : i64} {
  func.func @_conv_bn_leaky_kernel(%arg0: i32, %arg1: memref<32x512xbf16, #tpu.memory_space<vmem>>, %arg2: memref<512x128xbf16, #tpu.memory_space<vmem>>, %arg3: memref<1x128xf32, #tpu.memory_space<vmem>>, %arg4: memref<1x128xf32, #tpu.memory_space<vmem>>, %arg5: memref<32x128xbf16, #tpu.memory_space<vmem>>, %arg6: memref<1x128xf32, #tpu.memory_space<vmem>>, %arg7: memref<1x128xf32, #tpu.memory_space<vmem>>) attributes {dimension_semantics = [#tpu.dimension_semantics<arbitrary>], iteration_bounds = array<i64: 1>, scalar_prefetch = 0 : i64, scratch_operands = 2 : i64, tpu.core_type = #tpu.core_type<tc>, window_params = [{transform_indices = @transform_0, window_bounds = array<i64: 32, 512>}, {pipeline_mode = #tpu.pipeline_mode<synchronous>, transform_indices = @transform_1, window_bounds = array<i64: 512, 128>}, {pipeline_mode = #tpu.pipeline_mode<synchronous>, transform_indices = @transform_2, window_bounds = array<i64: 1, 128>}, {pipeline_mode = #tpu.pipeline_mode<synchronous>, transform_indices = @transform_3, window_bounds = array<i64: 1, 128>}, {pipeline_mode = #tpu.pipeline_mode<synchronous>, transform_indices = @transform_4, window_bounds = array<i64: 32, 128>}]} {
    %c0 = arith.constant 0 : index
    %c0_0 = arith.constant 0 : index
    %0 = vector.load %arg1[%c0, %c0_0] : memref<32x512xbf16, #tpu.memory_space<vmem>>, vector<32x512xbf16>
    %c0_1 = arith.constant 0 : index
    %c0_2 = arith.constant 0 : index
    %1 = vector.load %arg2[%c0_1, %c0_2] : memref<512x128xbf16, #tpu.memory_space<vmem>>, vector<512x128xbf16>
    %cst = arith.constant dense<0.000000e+00> : vector<32x128xf32>
    %2 = tpu.matmul %0, %1, %cst {dimension_numbers = #tpu.dot_dimension_numbers<[1], [0], [0], [1], [0, 0, 1, 1], [], []>} : vector<32x512xbf16>, vector<512x128xbf16>, vector<32x128xf32> -> vector<32x128xf32>
    %c0_i32 = arith.constant 0 : i32
    %3 = arith.cmpi eq, %arg0, %c0_i32 : i32
    %4 = arith.extui %3 : i1 to i32
    %c0_i32_3 = arith.constant 0 : i32
    %5 = arith.cmpi ne, %4, %c0_i32_3 : i32
    scf.if %5 {
      %cst_17 = arith.constant 0.000000e+00 : f32
      %25 = vector.broadcast %cst_17 : f32 to vector<1x128xf32>
      %c0_18 = arith.constant 0 : index
      %c0_19 = arith.constant 0 : index
      %26 = vector.load %arg6[%c0_18, %c0_19] : memref<1x128xf32, #tpu.memory_space<vmem>>, vector<1x128xf32>
      tpu.vector_store %arg6[%c0_18, %c0_19], %25 {strides = array<i32>} : memref<1x128xf32, #tpu.memory_space<vmem>>, vector<1x128xf32>,
      %cst_20 = arith.constant 0.000000e+00 : f32
      %27 = vector.broadcast %cst_20 : f32 to vector<1x128xf32>
      %c0_21 = arith.constant 0 : index
      %c0_22 = arith.constant 0 : index
      %28 = vector.load %arg7[%c0_21, %c0_22] : memref<1x128xf32, #tpu.memory_space<vmem>>, vector<1x128xf32>
      tpu.vector_store %arg7[%c0_21, %c0_22], %27 {strides = array<i32>} : memref<1x128xf32, #tpu.memory_space<vmem>>, vector<1x128xf32>,
    } else {
    }
    %c0_4 = arith.constant 0 : index
    %c0_5 = arith.constant 0 : index
    %6 = vector.load %arg6[%c0_4, %c0_5] : memref<1x128xf32, #tpu.memory_space<vmem>>, vector<1x128xf32>
    %cst_6 = arith.constant dense<0.000000e+00> : vector<128xf32>
    %7 = vector.multi_reduction <add>, %2, %cst_6 [0] : vector<32x128xf32> to vector<128xf32>
    %8 = vector.shape_cast %7 : vector<128xf32> to vector<1x128xf32>
    %9 = arith.addf %6, %8 : vector<1x128xf32>
    %c0_7 = arith.constant 0 : index
    %c0_8 = arith.constant 0 : index
    %10 = vector.load %arg6[%c0_7, %c0_8] : memref<1x128xf32, #tpu.memory_space<vmem>>, vector<1x128xf32>
    tpu.vector_store %arg6[%c0_7, %c0_8], %9 {strides = array<i32>} : memref<1x128xf32, #tpu.memory_space<vmem>>, vector<1x128xf32>,
    %c0_9 = arith.constant 0 : index
    %c0_10 = arith.constant 0 : index
    %11 = vector.load %arg7[%c0_9, %c0_10] : memref<1x128xf32, #tpu.memory_space<vmem>>, vector<1x128xf32>
    %12 = arith.mulf %2, %2 : vector<32x128xf32>
    %cst_11 = arith.constant dense<0.000000e+00> : vector<128xf32>
    %13 = vector.multi_reduction <add>, %12, %cst_11 [0] : vector<32x128xf32> to vector<128xf32>
    %14 = vector.shape_cast %13 : vector<128xf32> to vector<1x128xf32>
    %15 = arith.addf %11, %14 : vector<1x128xf32>
    %c0_12 = arith.constant 0 : index
    %c0_13 = arith.constant 0 : index
    %16 = vector.load %arg7[%c0_12, %c0_13] : memref<1x128xf32, #tpu.memory_space<vmem>>, vector<1x128xf32>
    tpu.vector_store %arg7[%c0_12, %c0_13], %15 {strides = array<i32>} : memref<1x128xf32, #tpu.memory_space<vmem>>, vector<1x128xf32>,
    %c32_i32 = arith.constant 32 : i32
    %17 = arith.muli %arg0, %c32_i32 : i32
    %18 = tpu.assume_multiple %17, 32 : i32
    %19 = arith.truncf %2 : vector<32x128xf32> to vector<32x128xbf16>
    %20 = arith.index_cast %18 : i32 to index
    %c0_14 = arith.constant 0 : index
    %21 = vector.load %arg5[%20, %c0_14] : memref<32x128xbf16, #tpu.memory_space<vmem>>, vector<32x128xbf16>
    tpu.vector_store %arg5[%20, %c0_14], %19 {strides = array<i32>} : memref<32x128xbf16, #tpu.memory_space<vmem>>, vector<32x128xbf16>,
    %c0_i32_15 = arith.constant 0 : i32
    %22 = arith.cmpi eq, %arg0, %c0_i32_15 : i32
    %23 = arith.extui %22 : i1 to i32
    %c0_i32_16 = arith.constant 0 : i32
    %24 = arith.cmpi ne, %23, %c0_i32_16 : i32
    scf.if %24 {
      %c0_17 = arith.constant 0 : index
      %c0_18 = arith.constant 0 : index
      %25 = vector.load %arg6[%c0_17, %c0_18] : memref<1x128xf32, #tpu.memory_space<vmem>>, vector<1x128xf32>
      %cst_19 = arith.constant 3.125000e-02 : f32
      %26 = vector.broadcast %cst_19 : f32 to vector<1x128xf32>
      %27 = arith.mulf %25, %26 : vector<1x128xf32>
      %c0_20 = arith.constant 0 : index
      %c0_21 = arith.constant 0 : index
      %28 = vector.load %arg7[%c0_20, %c0_21] : memref<1x128xf32, #tpu.memory_space<vmem>>, vector<1x128xf32>
      %cst_22 = arith.constant 3.125000e-02 : f32
      %29 = vector.broadcast %cst_22 : f32 to vector<1x128xf32>
      %30 = arith.mulf %28, %29 : vector<1x128xf32>
      %31 = arith.mulf %27, %27 : vector<1x128xf32>
      %32 = arith.subf %30, %31 : vector<1x128xf32>
      %cst_23 = arith.constant 9.99999974E-6 : f32
      %33 = vector.broadcast %cst_23 : f32 to vector<1x128xf32>
      %34 = arith.addf %32, %33 : vector<1x128xf32>
      %35 = math.rsqrt %34 : vector<1x128xf32>
      %c0_24 = arith.constant 0 : index
      %c0_25 = arith.constant 0 : index
      %36 = vector.load %arg3[%c0_24, %c0_25] : memref<1x128xf32, #tpu.memory_space<vmem>>, vector<1x128xf32>
      %37 = arith.mulf %36, %35 : vector<1x128xf32>
      %c0_26 = arith.constant 0 : index
      %c0_27 = arith.constant 0 : index
      %38 = vector.load %arg4[%c0_26, %c0_27] : memref<1x128xf32, #tpu.memory_space<vmem>>, vector<1x128xf32>
      %39 = arith.mulf %27, %37 : vector<1x128xf32>
      %40 = arith.subf %38, %39 : vector<1x128xf32>
      %c0_28 = arith.constant 0 : index
      %c0_29 = arith.constant 0 : index
      %41 = vector.load %arg5[%c0_28, %c0_29] : memref<32x128xbf16, #tpu.memory_space<vmem>>, vector<32x128xbf16>
      %42 = arith.extf %41 : vector<32x128xbf16> to vector<32x128xf32>
      %43 = vector.broadcast %37 : vector<1x128xf32> to vector<32x128xf32>
      %44 = arith.mulf %42, %43 : vector<32x128xf32>
      %45 = vector.broadcast %40 : vector<1x128xf32> to vector<32x128xf32>
      %46 = arith.addf %44, %45 : vector<32x128xf32>
      %cst_30 = arith.constant 0.000000e+00 : f32
      %47 = vector.broadcast %cst_30 : f32 to vector<32x128xf32>
      %48 = arith.cmpf oge, %46, %47 : vector<32x128xf32>
      %cst_31 = arith.constant 2.000000e-01 : f32
      %49 = vector.broadcast %cst_31 : f32 to vector<32x128xf32>
      %50 = arith.mulf %49, %46 : vector<32x128xf32>
      %51 = arith.select %48, %46, %50 : vector<32x128xi1>, vector<32x128xf32>
      %52 = arith.truncf %51 : vector<32x128xf32> to vector<32x128xbf16>
      %c0_32 = arith.constant 0 : index
      %c0_33 = arith.constant 0 : index
      %53 = vector.load %arg5[%c0_32, %c0_33] : memref<32x128xbf16, #tpu.memory_space<vmem>>, vector<32x128xbf16>
      tpu.vector_store %arg5[%c0_32, %c0_33], %52 {strides = array<i32>} : memref<32x128xbf16, #tpu.memory_space<vmem>>, vector<32x128xbf16>,
    } else {
    }
    return
  }
  func.func @transform_0(%arg0: i32) -> (i32, i32) {
    %c0_i32 = arith.constant 0 : i32
    %c0_i32_0 = arith.constant 0 : i32
    return %arg0, %c0_i32 : i32, i32
  }
  func.func @transform_1(%arg0: i32) -> (i32, i32) {
    %c0_i32 = arith.constant 0 : i32
    %c0_i32_0 = arith.constant 0 : i32
    %c0_i32_1 = arith.constant 0 : i32
    return %c0_i32, %c0_i32_0 : i32, i32
  }
  func.func @transform_2(%arg0: i32) -> (i32, i32) {
    %c0_i32 = arith.constant 0 : i32
    %c0_i32_0 = arith.constant 0 : i32
    %c0_i32_1 = arith.constant 0 : i32
    return %c0_i32, %c0_i32_0 : i32, i32
  }
  func.func @transform_3(%arg0: i32) -> (i32, i32) {
    %c0_i32 = arith.constant 0 : i32
    %c0_i32_0 = arith.constant 0 : i32
    %c0_i32_1 = arith.constant 0 : i32
    return %c0_i32, %c0_i32_0 : i32, i32
  }
  func.func @transform_4(%arg0: i32) -> (i32, i32) {
    %c0_i32 = arith.constant 0 : i32
    %c0_i32_0 = arith.constant 0 : i32
    %c0_i32_1 = arith.constant 0 : i32
    return %c0_i32, %c0_i32_0 : i32, i32
  }
}

</mosaic_0001>

<bundles_post_ra>
// kernel: discriminator_forward.4
= control target key start
LH: loop header
LB: loop body
LE: loop exit
PB: predicated region body
PF: predicated region fallthrough
CT: control target
= control target key end

     0   :  { %s7812_s1 = inlined_call_operand.vmem [shape: bf16[128,128], index: 1, kind: input, shape index: {}]   ;;  %s7813_s0 = inlined_call_operand.vmem [shape: bf16[2048,128], index: 0, kind: input, shape index: {}]   ;;  %s7814_s2 = inlined_call_operand.vmem [shape: f32[1,128], index: 2, kind: input, shape index: {}]   ;;  %s7815_s3 = inlined_call_operand.vmem [shape: bf16[2048,128], index: 3, kind: output, shape index: {}]  }
   0x1   :  { %v6059_v0 = vld [vmem:[%s7812_s1] sm:$0xff]   ;;  %v6060_v1 = vld [vmem:[%s7812_s1 + $0x8] sm:$0xff]   ;;  %v6061_v2 = vld [vmem:[%s7812_s1 + $0x10] sm:$0xff]  }
   0x2   :  { %5771 = vmatprep.subr.bf16.mxu0 %v6059_v0  ;;  %6043 = vmatprep.subr.bf16.mxu1 %v6059_v0  ;;  %v6062_v3 = vld [vmem:[%s7812_s1 + $0x18] sm:$0xff]   ;;  %v6067_v4 = vld [vmem:[%s7813_s0] sm:$0xff]   ;;  %v6064_v7 = vld [vmem:[%s7812_s1 + $0x28] sm:$0xff]  }
   0x3   :  { %5772 = vmatpush3.bf16.msra.mxu0 %v6059_v0  ;;  %6051 = vmatpush3.bf16.msra.mxu1 %v6059_v0  ;;  %v6068_v5 = vld [vmem:[%s7813_s0 + $0x200] sm:$0xff]   ;;  %v6065_v8 = vld [vmem:[%s7812_s1 + $0x30] sm:$0xff]   ;;  %v6066_v9 = vld [vmem:[%s7812_s1 + $0x38] sm:$0xff]  }
   0x4   :  { %5773 = vmatprep.subr.bf16.mxu0 %v6060_v1  ;;  %6044 = vmatprep.subr.bf16.mxu1 %v6060_v1  ;;  %v6063_v6 = vld [vmem:[%s7812_s1 + $0x20] sm:$0xff]   ;;  %v6069_v10 = vld [vmem:[%s7813_s0 + $0x8] sm:$0xff]   ;;  %v6071_v12 = vld [vmem:[%s7813_s0 + $0x10] sm:$0xff]  }
   0x5   :  { %5787 = vmatprep.mubr.bf16.mxu0 %v6067_v4  ;;  %5915 = vmatprep.mubr.bf16.mxu1 %v6068_v5  ;;  %v6070_v11 = vld [vmem:[%s7813_s0 + $0x208] sm:$0xff]   ;;  %v6072_v13 = vld [vmem:[%s7813_s0 + $0x210] sm:$0xff]   ;;  %v6073_v14 = vld [vmem:[%s7813_s0 + $0x18] sm:$0xff]  }
   0x6   :  { %v6074_v15 = vld [vmem:[%s7813_s0 + $0x218] sm:$0xff]   ;;  %v6075_v16 = vld [vmem:[%s7813_s0 + $0x20] sm:$0xff]   ;;  %v6077_v18 = vld [vmem:[%s7813_s0 + $0x28] sm:$0xff]  }
   0x7   :  { %5774 = vmatpush3.bf16.msra.mxu0 %v6060_v1  ;;  %6052 = vmatpush3.bf16.msra.mxu1 %v6060_v1  ;;  %v6076_v17 = vld [vmem:[%s7813_s0 + $0x220] sm:$0xff]   ;;  %v6078_v19 = vld [vmem:[%s7813_s0 + $0x228] sm:$0xff]   ;;  %v6079_v20 = vld [vmem:[%s7813_s0 + $0x30] sm:$0xff]  }
   0x8   :  { %5775 = vmatprep.subr.bf16.mxu0 %v6061_v2  ;;  %6045 = vmatprep.subr.bf16.mxu1 %v6061_v2  ;;  %v6080_v21 = vld [vmem:[%s7813_s0 + $0x230] sm:$0xff]   ;;  %v6081_v22 = vld [vmem:[%s7813_s0 + $0x38] sm:$0xff]   ;;  %v6083_v24 = vld [vmem:[%s7813_s0 + $0x40] sm:$0xff]  }
   0x9   :  { %v6082_v23 = vld [vmem:[%s7813_s0 + $0x238] sm:$0xff]   ;;  %v6084_v25 = vld [vmem:[%s7813_s0 + $0x240] sm:$0xff]   ;;  %v6085_v26 = vld [vmem:[%s7813_s0 + $0x48] sm:$0xff]  }
   0xa   :  { %v6086_v27 = vld [vmem:[%s7813_s0 + $0x248] sm:$0xff]   ;;  %v6087_v28 = vld [vmem:[%s7813_s0 + $0x50] sm:$0xff]   ;;  %v6089_v30 = vld [vmem:[%s7813_s0 + $0x58] sm:$0xff]  }
   0xb   :  { %5776 = vmatpush3.bf16.msra.mxu0 %v6061_v2  ;;  %6053 = vmatpush3.bf16.msra.mxu1 %v6061_v2  ;;  %v6088_v29 = vld [vmem:[%s7813_s0 + $0x250] sm:$0xff]   ;;  %v6090_v31 = vld [vmem:[%s7813_s0 + $0x258] sm:$0xff]   ;;  %v6091_v32 = vld [vmem:[%s7813_s0 + $0x60] sm:$0xff]  }
   0xc   :  { %5777 = vmatprep.subr.bf16.mxu0 %v6062_v3  ;;  %6046 = vmatprep.subr.bf16.mxu1 %v6062_v3  ;;  %v6092_v33 = vld [vmem:[%s7813_s0 + $0x260] sm:$0xff]   ;;  %v6093_v34 = vld [vmem:[%s7813_s0 + $0x68] sm:$0xff]   ;;  %v6095_v36 = vld [vmem:[%s7813_s0 + $0x70] sm:$0xff]  }
   0xd   :  { %v6094_v35 = vld [vmem:[%s7813_s0 + $0x268] sm:$0xff]   ;;  %v6096_v37 = vld [vmem:[%s7813_s0 + $0x270] sm:$0xff]   ;;  %v6097_v38 = vld [vmem:[%s7813_s0 + $0x78] sm:$0xff]  }
   0xe   :  { %v6098_v39 = vld [vmem:[%s7813_s0 + $0x278] sm:$0xff]   ;;  %v6099_v40 = vld [vmem:[%s7813_s0 + $0x80] sm:$0xff]   ;;  %v6101_v42 = vld [vmem:[%s7813_s0 + $0x88] sm:$0xff]  }
   0xf   :  { %5778 = vmatpush3.bf16.msra.mxu0 %v6062_v3  ;;  %6054 = vmatpush3.bf16.msra.mxu1 %v6062_v3  ;;  %v6100_v41 = vld [vmem:[%s7813_s0 + $0x280] sm:$0xff]   ;;  %v6102_v43 = vld [vmem:[%s7813_s0 + $0x288] sm:$0xff]   ;;  %v6103_v44 = vld [vmem:[%s7813_s0 + $0x90] sm:$0xff]  }
  0x10   :  { %5779 = vmatprep.subr.bf16.mxu0 %v6063_v6  ;;  %6047 = vmatprep.subr.bf16.mxu1 %v6063_v6  ;;  %v6104_v45 = vld [vmem:[%s7813_s0 + $0x290] sm:$0xff]   ;;  %v6105_v46 = vld [vmem:[%s7813_s0 + $0x98] sm:$0xff]   ;;  %v6107_v48 = vld [vmem:[%s7813_s0 + $0xa0] sm:$0xff]  }
  0x11   :  { %v6106_v47 = vld [vmem:[%s7813_s0 + $0x298] sm:$0xff]   ;;  %v6108_v49 = vld [vmem:[%s7813_s0 + $0x2a0] sm:$0xff]   ;;  %v6109_v50 = vld [vmem:[%s7813_s0 + $0xa8] sm:$0xff]  }
  0x12   :  { %v6110_v51 = vld [vmem:[%s7813_s0 + $0x2a8] sm:$0xff]   ;;  %v6111_v52 = vld [vmem:[%s7813_s0 + $0xb0] sm:$0xff]   ;;  %v6113_v54 = vld [vmem:[%s7813_s0 + $0xb8] sm:$0xff]  }
  0x13   :  { %5780 = vmatpush3.bf16.msra.mxu0 %v6063_v6  ;;  %6055 = vmatpush3.bf16.msra.mxu1 %v6063_v6  ;;  %v6112_v53 = vld [vmem:[%s7813_s0 + $0x2b0] sm:$0xff]   ;;  %v6114_v55 = vld [vmem:[%s7813_s0 + $0x2b8] sm:$0xff]   ;;  %v6115_v56 = vld [vmem:[%s7813_s0 + $0xc0] sm:$0xff]  }
  0x14   :  { %5781 = vmatprep.subr.bf16.mxu0 %v6064_v7  ;;  %6048 = vmatprep.subr.bf16.mxu1 %v6064_v7  ;;  %v6116_v57 = vld [vmem:[%s7813_s0 + $0x2c0] sm:$0xff]   ;;  %v6117_v58 = vld [vmem:[%s7813_s0 + $0xc8] sm:$0xff]   ;;  %v6119_v60 = vld [vmem:[%s7813_s0 + $0xd0] sm:$0xff]  }
  0x15   :  { %v6118_v59 = vld [vmem:[%s7813_s0 + $0x2c8] sm:$0xff]   ;;  %v6120_v61 = vld [vmem:[%s7813_s0 + $0x2d0] sm:$0xff]   ;;  %v6121_v62 = vld [vmem:[%s7813_s0 + $0xd8] sm:$0xff]  }
  0x16   :  { %v6122_v63 = vld [vmem:[%s7813_s0 + $0x2d8] sm:$0xff]   ;;  %v6123_v0 = vld [vmem:[%s7813_s0 + $0xe0] sm:$0xff]   ;;  %v6125_v2 = vld [vmem:[%s7813_s0 + $0xe8] sm:$0xff]  }
  0x17   :  { %5782 = vmatpush3.bf16.msra.mxu0 %v6064_v7  ;;  %6056 = vmatpush3.bf16.msra.mxu1 %v6064_v7  ;;  %v6124_v1 = vld [vmem:[%s7813_s0 + $0x2e0] sm:$0xff]   ;;  %v6126_v3 = vld [vmem:[%s7813_s0 + $0x2e8] sm:$0xff]   ;;  %v6127_v4 = vld [vmem:[%s7813_s0 + $0xf0] sm:$0xff]  }
  0x18   :  { %5783 = vmatprep.subr.bf16.mxu0 %v6065_v8  ;;  %6049 = vmatprep.subr.bf16.mxu1 %v6065_v8  ;;  %v6128_v5 = vld [vmem:[%s7813_s0 + $0x2f0] sm:$0xff]   ;;  %v6129_v6 = vld [vmem:[%s7813_s0 + $0xf8] sm:$0xff]  }
  0x19   :  { %v6130_v7 = vld [vmem:[%s7813_s0 + $0x2f8] sm:$0xff]  }
  0x1b   :  { %5784 = vmatpush3.bf16.msra.mxu0 %v6065_v8  ;;  %6057 = vmatpush3.bf16.msra.mxu1 %v6065_v8  ;;  %v6131_v8 = vld [vmem:[%s7813_s0 + $0x100] sm:$0xff]  }
  0x1c   :  { %5785 = vmatprep.subr.bf16.mxu0 %v6066_v9  ;;  %6050 = vmatprep.subr.bf16.mxu1 %v6066_v9 }
  0x1f   :  { %5786 = vmatpush3.bf16.msra.mxu0 %v6066_v9  ;;  %6058 = vmatpush3.bf16.msra.mxu1 %v6066_v9  ;;  %v6132_v9 = vld [vmem:[%s7813_s0 + $0x300] sm:$0xff]  }
  0x22   :  { %5788 = vmatmul.mubr.bf16.vlgmr.msra.gmra.mrb[0].mxu0 %v6069_v10  ;;  %5916 = vmatmul.mubr.bf16.vlgmr.msra.gmra.mrb[0].mxu1 %v6070_v11  ;;  %v6133_v10 = vld [vmem:[%s7813_s0 + $0x108] sm:$0xff]  }
  0x23   :  { %5791 = vmatprep.mubr.bf16.mxu0 %v6071_v12  ;;  %5919 = vmatprep.mubr.bf16.mxu1 %v6072_v13  ;;  %v6134_v11 = vld [vmem:[%s7813_s0 + $0x308] sm:$0xff]   ;;  %v6135_v12 = vld [vmem:[%s7813_s0 + $0x110] sm:$0xff]  }
  0x24   :  { %v6136_v13 = vld [vmem:[%s7813_s0 + $0x310] sm:$0xff]  }
  0x2a   :  { %5792 = vmatmul.mubr.bf16.gmra.mrb[4].mxu0 %v6073_v14  ;;  %5920 = vmatmul.mubr.bf16.gmra.mrb[4].mxu1 %v6074_v15  ;;  %v6137_v14 = vld [vmem:[%s7813_s0 + $0x118] sm:$0xff]  }
  0x2b   :  { %5795 = vmatprep.mubr.bf16.mxu0 %v6075_v16  ;;  %5923 = vmatprep.mubr.bf16.mxu1 %v6076_v17  ;;  %v6138_v15 = vld [vmem:[%s7813_s0 + $0x318] sm:$0xff]   ;;  %v6139_v16 = vld [vmem:[%s7813_s0 + $0x120] sm:$0xff]  }
  0x2c   :  { %v6140_v17 = vld [vmem:[%s7813_s0 + $0x320] sm:$0xff]  }
  0x32   :  { %5796 = vmatmul.mubr.bf16.gmra.mrb[8].mxu0 %v6077_v18  ;;  %5924 = vmatmul.mubr.bf16.gmra.mrb[8].mxu1 %v6078_v19  ;;  %v6141_v18 = vld [vmem:[%s7813_s0 + $0x128] sm:$0xff]  }
  0x33   :  { %5799 = vmatprep.mubr.bf16.mxu0 %v6079_v20  ;;  %5927 = vmatprep.mubr.bf16.mxu1 %v6080_v21  ;;  %v6142_v19 = vld [vmem:[%s7813_s0 + $0x328] sm:$0xff]   ;;  %v6143_v20 = vld [vmem:[%s7813_s0 + $0x130] sm:$0xff]  }
  0x34   :  { %v6144_v21 = vld [vmem:[%s7813_s0 + $0x330] sm:$0xff]  }
  0x3a   :  { %5800 = vmatmul.mubr.bf16.gmra.mrb[12].mxu0 %v6081_v22  ;;  %5928 = vmatmul.mubr.bf16.gmra.mrb[12].mxu1 %v6082_v23  ;;  %v6145_v22 = vld [vmem:[%s7813_s0 + $0x138] sm:$0xff]  }
  0x3b   :  { %5803 = vmatprep.mubr.bf16.mxu0 %v6083_v24  ;;  %5931 = vmatprep.mubr.bf16.mxu1 %v6084_v25  ;;  %v6146_v23 = vld [vmem:[%s7813_s0 + $0x338] sm:$0xff]   ;;  %v6147_v24 = vld [vmem:[%s7813_s0 + $0x140] sm:$0xff]  }
  0x3c   :  { %v6148_v25 = vld [vmem:[%s7813_s0 + $0x340] sm:$0xff]  }
  0x42   :  { %5804 = vmatmul.mubr.bf16.gmra.mrb[16].mxu0 %v6085_v26  ;;  %5932 = vmatmul.mubr.bf16.gmra.mrb[16].mxu1 %v6086_v27  ;;  %v6149_v26 = vld [vmem:[%s7813_s0 + $0x148] sm:$0xff]  }
  0x43   :  { %5807 = vmatprep.mubr.bf16.mxu0 %v6087_v28  ;;  %5935 = vmatprep.mubr.bf16.mxu1 %v6088_v29  ;;  %v6150_v27 = vld [vmem:[%s7813_s0 + $0x348] sm:$0xff]   ;;  %v6151_v28 = vld [vmem:[%s7813_s0 + $0x150] sm:$0xff]  }
  0x44   :  { %v6152_v29 = vld [vmem:[%s7813_s0 + $0x350] sm:$0xff]  }
  0x4a   :  { %5808 = vmatmul.mubr.bf16.gmra.mrb[20].mxu0 %v6089_v30  ;;  %5936 = vmatmul.mubr.bf16.gmra.mrb[20].mxu1 %v6090_v31  ;;  %v6153_v30 = vld [vmem:[%s7813_s0 + $0x158] sm:$0xff]  }
  0x4b   :  { %5811 = vmatprep.mubr.bf16.mxu0 %v6091_v32  ;;  %5939 = vmatprep.mubr.bf16.mxu1 %v6092_v33  ;;  %v6154_v31 = vld [vmem:[%s7813_s0 + $0x358] sm:$0xff]   ;;  %v6155_v32 = vld [vmem:[%s7813_s0 + $0x160] sm:$0xff]  }
  0x4c   :  { %v6156_v33 = vld [vmem:[%s7813_s0 + $0x360] sm:$0xff]  }
  0x52   :  { %5812 = vmatmul.mubr.bf16.gmra.mrb[24].mxu0 %v6093_v34  ;;  %5940 = vmatmul.mubr.bf16.gmra.mrb[24].mxu1 %v6094_v35  ;;  %v6157_v34 = vld [vmem:[%s7813_s0 + $0x168] sm:$0xff]  }
  0x53   :  { %5815 = vmatprep.mubr.bf16.mxu0 %v6095_v36  ;;  %5943 = vmatprep.mubr.bf16.mxu1 %v6096_v37  ;;  %v6158_v35 = vld [vmem:[%s7813_s0 + $0x368] sm:$0xff]   ;;  %v6159_v36 = vld [vmem:[%s7813_s0 + $0x170] sm:$0xff]  }
  0x54   :  { %v6160_v37 = vld [vmem:[%s7813_s0 + $0x370] sm:$0xff]  }
  0x5a   :  { %5816 = vmatmul.mubr.bf16.gmra.mrb[28].mxu0 %v6097_v38  ;;  %5944 = vmatmul.mubr.bf16.gmra.mrb[28].mxu1 %v6098_v39  ;;  %v6161_v38 = vld [vmem:[%s7813_s0 + $0x178] sm:$0xff]  }
  0x5b   :  { %5819 = vmatprep.mubr.bf16.mxu0 %v6099_v40  ;;  %5947 = vmatprep.mubr.bf16.mxu1 %v6100_v41  ;;  %v6162_v39 = vld [vmem:[%s7813_s0 + $0x378] sm:$0xff]   ;;  %v6163_v40 = vld [vmem:[%s7813_s0 + $0x180] sm:$0xff]  }
  0x5c   :  { %v6164_v41 = vld [vmem:[%s7813_s0 + $0x380] sm:$0xff]  }
  0x62   :  { %5820 = vmatmul.mubr.bf16.gmra.mrb[32].mxu0 %v6101_v42  ;;  %5948 = vmatmul.mubr.bf16.gmra.mrb[32].mxu1 %v6102_v43  ;;  %v6165_v42 = vld [vmem:[%s7813_s0 + $0x188] sm:$0xff]  }
  0x63   :  { %5823 = vmatprep.mubr.bf16.mxu0 %v6103_v44  ;;  %5951 = vmatprep.mubr.bf16.mxu1 %v6104_v45  ;;  %v6166_v43 = vld [vmem:[%s7813_s0 + $0x388] sm:$0xff]   ;;  %v6167_v44 = vld [vmem:[%s7813_s0 + $0x190] sm:$0xff]  }
  0x64   :  { %v6168_v45 = vld [vmem:[%s7813_s0 + $0x390] sm:$0xff]  }
  0x6a   :  { %5824 = vmatmul.mubr.bf16.gmra.mrb[36].mxu0 %v6105_v46  ;;  %5952 = vmatmul.mubr.bf16.gmra.mrb[36].mxu1 %v6106_v47  ;;  %v6169_v46 = vld [vmem:[%s7813_s0 + $0x198] sm:$0xff]  }
  0x6b   :  { %5827 = vmatprep.mubr.bf16.mxu0 %v6107_v48  ;;  %5955 = vmatprep.mubr.bf16.mxu1 %v6108_v49  ;;  %v6170_v47 = vld [vmem:[%s7813_s0 + $0x398] sm:$0xff]   ;;  %v6171_v48 = vld [vmem:[%s7813_s0 + $0x1a0] sm:$0xff]  }
  0x6c   :  { %v6172_v49 = vld [vmem:[%s7813_s0 + $0x3a0] sm:$0xff]  }
  0x72   :  { %5828 = vmatmul.mubr.bf16.gmra.mrb[40].mxu0 %v6109_v50  ;;  %5956 = vmatmul.mubr.bf16.gmra.mrb[40].mxu1 %v6110_v51  ;;  %v6173_v50 = vld [vmem:[%s7813_s0 + $0x1a8] sm:$0xff]  }
  0x73   :  { %5831 = vmatprep.mubr.bf16.mxu0 %v6111_v52  ;;  %5959 = vmatprep.mubr.bf16.mxu1 %v6112_v53  ;;  %v6174_v51 = vld [vmem:[%s7813_s0 + $0x3a8] sm:$0xff]   ;;  %v6175_v52 = vld [vmem:[%s7813_s0 + $0x1b0] sm:$0xff]  }
  0x74   :  { %v6176_v53 = vld [vmem:[%s7813_s0 + $0x3b0] sm:$0xff]  }
  0x7a   :  { %5832 = vmatmul.mubr.bf16.gmra.mrb[44].mxu0 %v6113_v54  ;;  %5960 = vmatmul.mubr.bf16.gmra.mrb[44].mxu1 %v6114_v55  ;;  %v6574_v54 = vld [vmem:[%s7814_s2] ss:$0 sm:$0xff] }
  0x7b   :  { %5835 = vmatprep.mubr.bf16.mxu0 %v6115_v56  ;;  %5963 = vmatprep.mubr.bf16.mxu1 %v6116_v57 }
  0x82   :  { %5836 = vmatmul.mubr.bf16.gmra.mrb[48].mxu0 %v6117_v58  ;;  %5964 = vmatmul.mubr.bf16.gmra.mrb[48].mxu1 %v6118_v59 }
  0x83   :  { %5839 = vmatprep.mubr.bf16.mxu0 %v6119_v60  ;;  %5967 = vmatprep.mubr.bf16.mxu1 %v6120_v61  ;;  %v6177_v61 = vld [vmem:[%s7813_s0 + $0x1b8] sm:$0xff]  }
  0x8a   :  { %5840 = vmatmul.mubr.bf16.gmra.mrb[52].mxu0 %v6121_v62  ;;  %5968 = vmatmul.mubr.bf16.gmra.mrb[52].mxu1 %v6122_v63 }
  0x8b   :  { %5843 = vmatprep.mubr.bf16.mxu0 %v6123_v0  ;;  %5971 = vmatprep.mubr.bf16.mxu1 %v6124_v1 }
  0x92   :  { %5844 = vmatmul.mubr.bf16.gmra.mrb[56].mxu0 %v6125_v2  ;;  %5972 = vmatmul.mubr.bf16.gmra.mrb[56].mxu1 %v6126_v3  ;;  %v6178_v2 = vld [vmem:[%s7813_s0 + $0x3b8] sm:$0xff]   ;;  %v6179_v3 = vld [vmem:[%s7813_s0 + $0x1c0] sm:$0xff]  }
  0x93   :  { %5847 = vmatprep.mubr.bf16.mxu0 %v6127_v4  ;;  %5975 = vmatprep.mubr.bf16.mxu1 %v6128_v5  ;;  %v6180_v4 = vld [vmem:[%s7813_s0 + $0x3c0] sm:$0xff]  }
  0x9a   :  { %5848 = vmatmul.mubr.bf16.gmra.mrb[60].mxu0 %v6129_v6  ;;  %5976 = vmatmul.mubr.bf16.gmra.mrb[60].mxu1 %v6130_v7 }
  0x9b   :  { %5851 = vmatprep.mubr.bf16.mxu0 %v6131_v8  ;;  %5979 = vmatprep.mubr.bf16.mxu1 %v6132_v9 }
  0xa2   :  { %5852 = vmatmul.mubr.bf16.gmra.mrb[64].mxu0 %v6133_v10  ;;  %5980 = vmatmul.mubr.bf16.gmra.mrb[64].mxu1 %v6134_v11 }
  0xa3   :  { %5855 = vmatprep.mubr.bf16.mxu0 %v6135_v12  ;;  %5983 = vmatprep.mubr.bf16.mxu1 %v6136_v13 }
  0xaa   :  { %5856 = vmatmul.mubr.bf16.gmra.mrb[68].mxu0 %v6137_v14  ;;  %5984 = vmatmul.mubr.bf16.gmra.mrb[68].mxu1 %v6138_v15 }
  0xab   :  { %5859 = vmatprep.mubr.bf16.mxu0 %v6139_v16  ;;  %5987 = vmatprep.mubr.bf16.mxu1 %v6140_v17 }
  0xb2   :  { %5860 = vmatmul.mubr.bf16.gmra.mrb[72].mxu0 %v6141_v18  ;;  %5988 = vmatmul.mubr.bf16.gmra.mrb[72].mxu1 %v6142_v19 }
  0xb3   :  { %5863 = vmatprep.mubr.bf16.mxu0 %v6143_v20  ;;  %5991 = vmatprep.mubr.bf16.mxu1 %v6144_v21 }
  0xba   :  { %5864 = vmatmul.mubr.bf16.gmra.mrb[76].mxu0 %v6145_v22  ;;  %5992 = vmatmul.mubr.bf16.gmra.mrb[76].mxu1 %v6146_v23 }
  0xbb   :  { %5867 = vmatprep.mubr.bf16.mxu0 %v6147_v24  ;;  %5995 = vmatprep.mubr.bf16.mxu1 %v6148_v25 }
  0xc2   :  { %5868 = vmatmul.mubr.bf16.gmra.mrb[80].mxu0 %v6149_v26  ;;  %5996 = vmatmul.mubr.bf16.gmra.mrb[80].mxu1 %v6150_v27  ;;  %v6181_v27 = vld [vmem:[%s7813_s0 + $0x1c8] sm:$0xff]  }
  0xc3   :  { %5871 = vmatprep.mubr.bf16.mxu0 %v6151_v28  ;;  %5999 = vmatprep.mubr.bf16.mxu1 %v6152_v29 }
  0xca   :  { %5872 = vmatmul.mubr.bf16.gmra.mrb[84].mxu0 %v6153_v30  ;;  %6000 = vmatmul.mubr.bf16.gmra.mrb[84].mxu1 %v6154_v31 }
  0xcb   :  { %5875 = vmatprep.mubr.bf16.mxu0 %v6155_v32  ;;  %6003 = vmatprep.mubr.bf16.mxu1 %v6156_v33 }
  0xd2   :  { %5876 = vmatmul.mubr.bf16.gmra.mrb[88].mxu0 %v6157_v34  ;;  %6004 = vmatmul.mubr.bf16.gmra.mrb[88].mxu1 %v6158_v35  ;;  %v6182_v34 = vld [vmem:[%s7813_s0 + $0x3c8] sm:$0xff]   ;;  %v6183_v35 = vld [vmem:[%s7813_s0 + $0x1d0] sm:$0xff]  }
  0xd3   :  { %5879 = vmatprep.mubr.bf16.mxu0 %v6159_v36  ;;  %6007 = vmatprep.mubr.bf16.mxu1 %v6160_v37 }
  0xda   :  { %5880 = vmatmul.mubr.bf16.gmra.mrb[92].mxu0 %v6161_v38  ;;  %6008 = vmatmul.mubr.bf16.gmra.mrb[92].mxu1 %v6162_v39 }
  0xdb   :  { %5883 = vmatprep.mubr.bf16.mxu0 %v6163_v40  ;;  %6011 = vmatprep.mubr.bf16.mxu1 %v6164_v41 }
  0xe2   :  { %5884 = vmatmul.mubr.bf16.gmra.mrb[96].mxu0 %v6165_v42  ;;  %6012 = vmatmul.mubr.bf16.gmra.mrb[96].mxu1 %v6166_v43  ;;  %v6184_v42 = vld [vmem:[%s7813_s0 + $0x3d0] sm:$0xff]  }
  0xe3   :  { %5887 = vmatprep.mubr.bf16.mxu0 %v6167_v44  ;;  %6015 = vmatprep.mubr.bf16.mxu1 %v6168_v45 }
  0xea   :  { %5888 = vmatmul.mubr.bf16.gmra.mrb[100].mxu0 %v6169_v46  ;;  %6016 = vmatmul.mubr.bf16.gmra.mrb[100].mxu1 %v6170_v47 }
  0xeb   :  { %5891 = vmatprep.mubr.bf16.mxu0 %v6171_v48  ;;  %6019 = vmatprep.mubr.bf16.mxu1 %v6172_v49 }
  0xf2   :  { %5892 = vmatmul.mubr.bf16.gmra.mrb[104].mxu0 %v6173_v50  ;;  %6020 = vmatmul.mubr.bf16.gmra.mrb[104].mxu1 %v6174_v51 }
  0xf3   :  { %5895 = vmatprep.mubr.bf16.mxu0 %v6175_v52  ;;  %6023 = vmatprep.mubr.bf16.mxu1 %v6176_v53 }
  0xf5   :  { %v5789_v55 = vpop.f32.mrb[0].mxu0  ;;  %v5917_v56 = vpop.f32.mrb[0].mxu1 }
  0xf6   :  { %v1153_v57 = vadd.f32 %v5789_v55, %v6574_v54  ;;  %v1665_v58 = vadd.f32 %v5917_v56, %v6574_v54  ;;  %v1144_v59 = vpop.f32.mrb[1].mxu0  ;;  %v1656_v60 = vpop.f32.mrb[1].mxu1 }
  0xf7   :  { %v1145_v62 = vadd.f32 %v6574_v54, %v1144_v59  ;;  %v1657_v63 = vadd.f32 %v6574_v54, %v1656_v60  ;;  %v5790_v0 = vpop.f32.mrb[2].mxu0  ;;  %v5918_v1 = vpop.f32.mrb[2].mxu1 }
  0xf8   :  { %vm2169_vm0 = vcmp.ge.f32.partialorder %v1153_v57, 0.0  ;;  %v2425_v5 = vmul.f32 0.2, %v1153_v57  ;;  %vm2297_vm1 = vcmp.ge.f32.partialorder %v1665_v58, 0.0  ;;  %v2553_v6 = vmul.f32 0.2, %v1665_v58 }
  0xf9   :  { %vm2167_vm2 = vcmp.ge.f32.partialorder %v1145_v62, 0.0  ;;  %v2423_v7 = vmul.f32 0.2, %v1145_v62  ;;  %vm2295_vm3 = vcmp.ge.f32.partialorder %v1657_v63, 0.0  ;;  %v2551_v8 = vmul.f32 0.2, %v1657_v63 }
  0xfa   :  { %v1156_v9 = vadd.f32 %v5790_v0, %v6574_v54  ;;  %v1668_v10 = vadd.f32 %v5918_v1, %v6574_v54  ;;  %v1147_v11 = vpop.f32.mrb[3].mxu0  ;;  %v1659_v12 = vpop.f32.mrb[3].mxu1  ;;  %5896 = vmatmul.mubr.bf16.gmra.mrb[108].mxu0 %v6177_v61  ;;  %v2681_v13 = vsel %vm2169_vm0, %v1153_v57, %v2425_v5  ;;  %v2809_v14 = vsel %vm2297_vm1, %v1665_v58, %v2553_v6 }
  0xfb   :  { %v1148_v15 = vadd.f32 %v6574_v54, %v1147_v11  ;;  %v1660_v16 = vadd.f32 %v6574_v54, %v1659_v12  ;;  %6024 = vmatmul.mubr.bf16.gmra.mrb[108].mxu1 %v6178_v2  ;;  %5899 = vmatprep.mubr.bf16.mxu0 %v6179_v3  ;;  %v2679_v21 = vsel %vm2167_vm2, %v1145_v62, %v2423_v7  ;;  %v6186_v11 = vld [vmem:[%s7813_s0 + $0x3d8] sm:$0xff]   ;;  %v6187_v12 = vld [vmem:[%s7813_s0 + $0x1e0] sm:$0xff]  }
  0xfc   :  { %vm2170_vm4 = vcmp.ge.f32.partialorder %v1156_v9, 0.0  ;;  %v2426_v17 = vmul.f32 0.2, %v1156_v9  ;;  %vm2298_vm5 = vcmp.ge.f32.partialorder %v1668_v10, 0.0  ;;  %v2554_v18 = vmul.f32 0.2, %v1668_v10  ;;  %6027 = vmatprep.mubr.bf16.mxu1 %v6180_v4 }
  0xfd   :  { %vm2168_vm6 = vcmp.ge.f32.partialorder %v1148_v15, 0.0  ;;  %v2424_v19 = vmul.f32 0.2, %v1148_v15  ;;  %vm2296_vm7 = vcmp.ge.f32.partialorder %v1660_v16, 0.0  ;;  %v2552_v20 = vmul.f32 0.2, %v1660_v16 }
  0xfe   :  { %v2807_v22 = vsel %vm2295_vm3, %v1657_v63, %v2551_v8  ;;  %v2682_v23 = vsel %vm2170_vm4, %v1156_v9, %v2426_v17  ;;  %v2810_v24 = vsel %vm2298_vm5, %v1668_v10, %v2554_v18  ;;  %v5793_v25 = vpop.f32.mrb[4].mxu0  ;;  %v5921_v26 = vpop.f32.mrb[4].mxu1  ;;  %v6185_v4 = vld [vmem:[%s7813_s0 + $0x1d8] sm:$0xff]  }
  0xff   :  { %v4876_v28 = vpack.c.bf16 %v2682_v23, %v2681_v13  ;;  %v5196_v29 = vpack.c.bf16 %v2810_v24, %v2809_v14  ;;  %v2680_v30 = vsel %vm2168_vm6, %v1148_v15, %v2424_v19  ;;  %v2808_v31 = vsel %vm2296_vm7, %v1660_v16, %v2552_v20  ;;  %v1160_v32 = vpop.f32.mrb[5].mxu0  ;;  %v1672_v33 = vpop.f32.mrb[5].mxu1  ;;  %v6188_v13 = vld [vmem:[%s7813_s0 + $0x3e0] sm:$0xff]  }
 0x100   :  { %v4871_v36 = vpack.c.bf16 %v2680_v30, %v2679_v21  ;;  %v5191_v37 = vpack.c.bf16 %v2808_v31, %v2807_v22  ;;  %v1169_v38 = vadd.f32 %v5793_v25, %v6574_v54  ;;  %v1681_v39 = vadd.f32 %v5921_v26, %v6574_v54  ;;  %v5794_v40 = vpop.f32.mrb[6].mxu0  ;;  %v5922_v41 = vpop.f32.mrb[6].mxu1  ;;  %v6189_v31 = vld [vmem:[%s7813_s0 + $0x1e8] sm:$0xff]  }
 0x101   :  { %5508 = vst [vmem:[%s7815_s3 + $0x8] sm:$0xff] %v4876_v28   ;;  %5572 = vst [vmem:[%s7815_s3 + $0x208] sm:$0xff] %v5196_v29   ;;  %v1161_v43 = vadd.f32 %v6574_v54, %v1160_v32  ;;  %v1673_v44 = vadd.f32 %v6574_v54, %v1672_v33  ;;  %v1172_v45 = vadd.f32 %v5794_v40, %v6574_v54  ;;  %v1163_v47 = vpop.f32.mrb[7].mxu0  ;;  %v1675_v48 = vpop.f32.mrb[7].mxu1 }
 0x102   :  { %v1684_v46 = vadd.f32 %v5922_v41, %v6574_v54  ;;  %4872 = vst [vmem:[%s7815_s3] sm:$0xff] %v4871_v36   ;;  %5571 = vst [vmem:[%s7815_s3 + $0x200] sm:$0xff] %v5191_v37   ;;  %vm2173_vm8 = vcmp.ge.f32.partialorder %v1169_v38, 0.0  ;;  %v2429_v49 = vmul.f32 0.2, %v1169_v38  ;;  %vm2301_vm9 = vcmp.ge.f32.partialorder %v1681_v39, 0.0  ;;  %5900 = vmatmul.mubr.bf16.gmra.mrb[112].mxu0 %v6181_v27  ;;  %v6190_v37 = vld [vmem:[%s7813_s0 + $0x3e8] sm:$0xff]  }
 0x103   :  { %v2557_v50 = vmul.f32 0.2, %v1681_v39  ;;  %vm2171_vm10 = vcmp.ge.f32.partialorder %v1161_v43, 0.0  ;;  %v2427_v51 = vmul.f32 0.2, %v1161_v43  ;;  %vm2299_vm11 = vcmp.ge.f32.partialorder %v1673_v44, 0.0  ;;  %6028 = vmatmul.mubr.bf16.gmra.mrb[112].mxu1 %v6182_v34  ;;  %5903 = vmatprep.mubr.bf16.mxu0 %v6183_v35 }
 0x104   :  { %v2555_v52 = vmul.f32 0.2, %v1673_v44  ;;  %v2685_v53 = vsel %vm2173_vm8, %v1169_v38, %v2429_v49  ;;  %vm2174_vm12 = vcmp.ge.f32.partialorder %v1172_v45, 0.0  ;;  %v2430_v56 = vmul.f32 0.2, %v1172_v45  ;;  %6031 = vmatprep.mubr.bf16.mxu1 %v6184_v42 }
 0x105   :  { %v2813_v55 = vsel %vm2301_vm9, %v1681_v39, %v2557_v50  ;;  %v2683_v57 = vsel %vm2171_vm10, %v1161_v43, %v2427_v51  ;;  %vm2302_vm13 = vcmp.ge.f32.partialorder %v1684_v46, 0.0  ;;  %v2558_v59 = vmul.f32 0.2, %v1684_v46  ;;  %v5797_v60 = vpop.f32.mrb[8].mxu0  ;;  %v5925_v61 = vpop.f32.mrb[8].mxu1  ;;  %v6191_v43 = vld [vmem:[%s7813_s0 + $0x1f0] sm:$0xff]  }
 0x106   :  { %v2811_v58 = vsel %vm2299_vm11, %v1673_v44, %v2555_v52  ;;  %v2686_v62 = vsel %vm2174_vm12, %v1172_v45, %v2430_v56  ;;  %v1164_v63 = vadd.f32 %v6574_v54, %v1163_v47  ;;  %v1676_v0 = vadd.f32 %v6574_v54, %v1675_v48  ;;  %v1176_v2 = vpop.f32.mrb[9].mxu0  ;;  %v1688_v3 = vpop.f32.mrb[9].mxu1  ;;  %v6192_v44 = vld [vmem:[%s7813_s0 + $0x3f0] sm:$0xff]  }
 0x107   :  { %v1185_v1 = vadd.f32 %v5797_v60, %v6574_v54  ;;  %v4886_v5 = vpack.c.bf16 %v2686_v62, %v2685_v53  ;;  %v2814_v6 = vsel %vm2302_vm13, %v1684_v46, %v2558_v59  ;;  %v1697_v7 = vadd.f32 %v5925_v61, %v6574_v54  ;;  %v5798_v9 = vpop.f32.mrb[10].mxu0  ;;  %v5926_v10 = vpop.f32.mrb[10].mxu1 }
 0x108   :  { %v1177_v8 = vadd.f32 %v6574_v54, %v1176_v2  ;;  %v5206_v14 = vpack.c.bf16 %v2814_v6, %v2813_v55  ;;  %vm2172_vm14 = vcmp.ge.f32.partialorder %v1164_v63, 0.0  ;;  %v2428_v15 = vmul.f32 0.2, %v1164_v63  ;;  %v1179_v16 = vpop.f32.mrb[11].mxu0  ;;  %v1691_v17 = vpop.f32.mrb[11].mxu1 }
 0x109   :  { %vm2300_vm15 = vcmp.ge.f32.partialorder %v1676_v0, 0.0  ;;  %5510 = vst [vmem:[%s7815_s3 + $0x18] sm:$0xff] %v4886_v5   ;;  %v2556_v18 = vmul.f32 0.2, %v1676_v0  ;;  %vm2177_vm0 = vcmp.ge.f32.partialorder %v1185_v1, 0.0  ;;  %vm2305_vm1 = vcmp.ge.f32.partialorder %v1697_v7, 0.0 }
 0x10a   :  { %v2433_v19 = vmul.f32 0.2, %v1185_v1  ;;  %5574 = vst [vmem:[%s7815_s3 + $0x218] sm:$0xff] %v5206_v14   ;;  %v2684_v20 = vsel %vm2172_vm14, %v1164_v63, %v2428_v15  ;;  %v2561_v21 = vmul.f32 0.2, %v1697_v7  ;;  %vm2175_vm2 = vcmp.ge.f32.partialorder %v1177_v8, 0.0  ;;  %5904 = vmatmul.mubr.bf16.gmra.mrb[116].mxu0 %v6185_v4 }
 0x10b   :  { %v2431_v22 = vmul.f32 0.2, %v1177_v8  ;;  %v4881_v23 = vpack.c.bf16 %v2684_v20, %v2683_v57  ;;  %v2812_v24 = vsel %vm2300_vm15, %v1676_v0, %v2556_v18  ;;  %v1689_v26 = vadd.f32 %v6574_v54, %v1688_v3  ;;  %6032 = vmatmul.mubr.bf16.gmra.mrb[116].mxu1 %v6186_v11  ;;  %5907 = vmatprep.mubr.bf16.mxu0 %v6187_v12  ;;  %v6193_v5 = vld [vmem:[%s7813_s0 + $0x1f8] sm:$0xff]  }
 0x10c   :  { %v2689_v25 = vsel %vm2177_vm0, %v1185_v1, %v2433_v19  ;;  %v5201_v27 = vpack.c.bf16 %v2812_v24, %v2811_v58  ;;  %v2817_v28 = vsel %vm2305_vm1, %v1697_v7, %v2561_v21  ;;  %v1188_v30 = vadd.f32 %v5798_v9, %v6574_v54  ;;  %6035 = vmatprep.mubr.bf16.mxu1 %v6188_v13  ;;  %v6194_v11 = vld [vmem:[%s7813_s0 + $0x3f8] sm:$0xff]  }
 0x10d   :  { %v2687_v29 = vsel %vm2175_vm2, %v1177_v8, %v2431_v22  ;;  %5509 = vst [vmem:[%s7815_s3 + $0x10] sm:$0xff] %v4881_v23   ;;  %vm2303_vm3 = vcmp.ge.f32.partialorder %v1689_v26, 0.0  ;;  %v2559_v32 = vmul.f32 0.2, %v1689_v26  ;;  %v1700_v33 = vadd.f32 %v5926_v10, %v6574_v54  ;;  %v5801_v35 = vpop.f32.mrb[12].mxu0  ;;  %v5929_v36 = vpop.f32.mrb[12].mxu1 }
 0x10e   :  { %v1180_v34 = vadd.f32 %v6574_v54, %v1179_v16  ;;  %5573 = vst [vmem:[%s7815_s3 + $0x210] sm:$0xff] %v5201_v27   ;;  %vm2178_vm4 = vcmp.ge.f32.partialorder %v1188_v30, 0.0  ;;  %v2434_v38 = vmul.f32 0.2, %v1188_v30  ;;  %v1692_v39 = vadd.f32 %v6574_v54, %v1691_v17  ;;  %v1192_v41 = vpop.f32.mrb[13].mxu0  ;;  %v1704_v42 = vpop.f32.mrb[13].mxu1 }
 0x10f   :  { %v1201_v40 = vadd.f32 %v5801_v35, %v6574_v54  ;;  %v2815_v45 = vsel %vm2303_vm3, %v1689_v26, %v2559_v32  ;;  %vm2306_vm5 = vcmp.ge.f32.partialorder %v1700_v33, 0.0  ;;  %v2562_v46 = vmul.f32 0.2, %v1700_v33  ;;  %v5802_v47 = vpop.f32.mrb[14].mxu0  ;;  %v5930_v48 = vpop.f32.mrb[14].mxu1 }
 0x110   :  { %vm2176_vm6 = vcmp.ge.f32.partialorder %v1180_v34, 0.0  ;;  %v2690_v49 = vsel %vm2178_vm4, %v1188_v30, %v2434_v38  ;;  %v2432_v50 = vmul.f32 0.2, %v1180_v34  ;;  %vm2304_vm7 = vcmp.ge.f32.partialorder %v1692_v39, 0.0  ;;  %v1195_v52 = vpop.f32.mrb[15].mxu0  ;;  %v1707_v57 = vpop.f32.mrb[15].mxu1 }
 0x111   :  { %v2560_v51 = vmul.f32 0.2, %v1692_v39  ;;  %v4896_v53 = vpack.c.bf16 %v2690_v49, %v2689_v25  ;;  %v2818_v55 = vsel %vm2306_vm5, %v1700_v33, %v2562_v46  ;;  %vm2181_vm8 = vcmp.ge.f32.partialorder %v1201_v40, 0.0 }
 0x112   :  { %v2437_v56 = vmul.f32 0.2, %v1201_v40  ;;  %v5216_v58 = vpack.c.bf16 %v2818_v55, %v2817_v28  ;;  %v2688_v59 = vsel %vm2176_vm6, %v1180_v34, %v2432_v50  ;;  %v1713_v61 = vadd.f32 %v5929_v36, %v6574_v54  ;;  %5908 = vmatmul.mubr.bf16.gmra.mrb[120].mxu0 %v6189_v31 }
 0x113   :  { %v2816_v60 = vsel %vm2304_vm7, %v1692_v39, %v2560_v51  ;;  %5512 = vst [vmem:[%s7815_s3 + $0x28] sm:$0xff] %v4896_v53   ;;  %v4891_v62 = vpack.c.bf16 %v2688_v59, %v2687_v29  ;;  %v1193_v1 = vadd.f32 %v6574_v54, %v1192_v41  ;;  %6036 = vmatmul.mubr.bf16.gmra.mrb[120].mxu1 %v6190_v37 }
 0x114   :  { %v5211_v63 = vpack.c.bf16 %v2816_v60, %v2815_v45  ;;  %v2693_v0 = vsel %vm2181_vm8, %v1201_v40, %v2437_v56  ;;  %5576 = vst [vmem:[%s7815_s3 + $0x228] sm:$0xff] %v5216_v58   ;;  %vm2309_vm9 = vcmp.ge.f32.partialorder %v1713_v61, 0.0  ;;  %v2565_v2 = vmul.f32 0.2, %v1713_v61  ;;  %5911 = vmatprep.mubr.bf16.mxu0 %v6191_v43  ;;  %6039 = vmatprep.mubr.bf16.mxu1 %v6192_v44 }
 0x115   :  { %v1705_v3 = vadd.f32 %v6574_v54, %v1704_v42  ;;  %v1204_v4 = vadd.f32 %v5802_v47, %v6574_v54  ;;  %5511 = vst [vmem:[%s7815_s3 + $0x20] sm:$0xff] %v4891_v62   ;;  %vm2179_vm10 = vcmp.ge.f32.partialorder %v1193_v1, 0.0  ;;  %v2435_v6 = vmul.f32 0.2, %v1193_v1  ;;  %v5805_v9 = vpop.f32.mrb[16].mxu0  ;;  %v5933_v10 = vpop.f32.mrb[16].mxu1 }
 0x116   :  { %5575 = vst [vmem:[%s7815_s3 + $0x220] sm:$0xff] %v5211_v63   ;;  %v1716_v7 = vadd.f32 %v5930_v48, %v6574_v54  ;;  %v1196_v8 = vadd.f32 %v6574_v54, %v1195_v52  ;;  %v2821_v12 = vsel %vm2309_vm9, %v1713_v61, %v2565_v2  ;;  %v1208_v14 = vpop.f32.mrb[17].mxu0  ;;  %v1720_v15 = vpop.f32.mrb[17].mxu1  ;;  %v1708_v22 = vadd.f32 %v6574_v54, %v1707_v57 }
 0x117   :  { %vm2307_vm11 = vcmp.ge.f32.partialorder %v1705_v3, 0.0  ;;  %v2563_v13 = vmul.f32 0.2, %v1705_v3  ;;  %vm2182_vm12 = vcmp.ge.f32.partialorder %v1204_v4, 0.0  ;;  %v2691_v16 = vsel %vm2179_vm10, %v1193_v1, %v2435_v6  ;;  %v5806_v19 = vpop.f32.mrb[18].mxu0  ;;  %v5934_v23 = vpop.f32.mrb[18].mxu1 }
 0x118   :  { %v2438_v17 = vmul.f32 0.2, %v1204_v4  ;;  %vm2310_vm13 = vcmp.ge.f32.partialorder %v1716_v7, 0.0  ;;  %v2566_v18 = vmul.f32 0.2, %v1716_v7  ;;  %vm2180_vm14 = vcmp.ge.f32.partialorder %v1196_v8, 0.0 }
 0x119   :  { %v2819_v20 = vsel %vm2307_vm11, %v1705_v3, %v2563_v13  ;;  %v2436_v21 = vmul.f32 0.2, %v1196_v8  ;;  %v1211_v24 = vpop.f32.mrb[19].mxu0  ;;  %v1217_v27 = vadd.f32 %v5805_v9, %v6574_v54  ;;  %v1729_v28 = vadd.f32 %v5933_v10, %v6574_v54  ;;  %v1723_v29 = vpop.f32.mrb[19].mxu1 }
 0x11a   :  { %v2694_v25 = vsel %vm2182_vm12, %v1204_v4, %v2438_v17  ;;  %v2822_v26 = vsel %vm2310_vm13, %v1716_v7, %v2566_v18  ;;  %vm2308_vm15 = vcmp.ge.f32.partialorder %v1708_v22, 0.0  ;;  %5912 = vmatmul.mubr.bf16.gmra.mrb[124].mxu0 %v6193_v5  ;;  %v2564_v34 = vmul.f32 0.2, %v1708_v22 }
 0x11b   :  { %v4906_v30 = vpack.c.bf16 %v2694_v25, %v2693_v0  ;;  %v5226_v31 = vpack.c.bf16 %v2822_v26, %v2821_v12  ;;  %v2692_v32 = vsel %vm2180_vm14, %v1196_v8, %v2436_v21  ;;  %vm2185_vm0 = vcmp.ge.f32.partialorder %v1217_v27, 0.0  ;;  %6040 = vmatmul.mubr.bf16.gmra.mrb[124].mxu1 %v6194_v11 }
 0x11c   :  { %v4901_v33 = vpack.c.bf16 %v2692_v32, %v2691_v16  ;;  %v2441_v35 = vmul.f32 0.2, %v1217_v27  ;;  %vm2313_vm1 = vcmp.ge.f32.partialorder %v1729_v28, 0.0  ;;  %v2569_v36 = vmul.f32 0.2, %v1729_v28 }
 0x11d   :  { %5514 = vst [vmem:[%s7815_s3 + $0x38] sm:$0xff] %v4906_v30   ;;  %5578 = vst [vmem:[%s7815_s3 + $0x238] sm:$0xff] %v5226_v31   ;;  %v1209_v37 = vadd.f32 %v6574_v54, %v1208_v14  ;;  %v1721_v38 = vadd.f32 %v6574_v54, %v1720_v15  ;;  %v2820_v39 = vsel %vm2308_vm15, %v1708_v22, %v2564_v34  ;;  %v5809_v43 = vpop.f32.mrb[20].mxu0  ;;  %v5937_v44 = vpop.f32.mrb[20].mxu1 }
 0x11e   :  { %5513 = vst [vmem:[%s7815_s3 + $0x30] sm:$0xff] %v4901_v33   ;;  %v2697_v40 = vsel %vm2185_vm0, %v1217_v27, %v2441_v35  ;;  %v1220_v41 = vadd.f32 %v5806_v19, %v6574_v54  ;;  %v1732_v42 = vadd.f32 %v5934_v23, %v6574_v54  ;;  %v5221_v45 = vpack.c.bf16 %v2820_v39, %v2819_v20  ;;  %v1224_v48 = vpop.f32.mrb[21].mxu0  ;;  %v1736_v49 = vpop.f32.mrb[21].mxu1 }
 0x11f   :  { %v2825_v46 = vsel %vm2313_vm1, %v1729_v28, %v2569_v36  ;;  %vm2183_vm2 = vcmp.ge.f32.partialorder %v1209_v37, 0.0  ;;  %v2439_v47 = vmul.f32 0.2, %v1209_v37  ;;  %vm2311_vm3 = vcmp.ge.f32.partialorder %v1721_v38, 0.0  ;;  %v5810_v56 = vpop.f32.mrb[22].mxu0  ;;  %v5938_v57 = vpop.f32.mrb[22].mxu1 }
 0x120   :  { %v2567_v50 = vmul.f32 0.2, %v1721_v38  ;;  %vm2186_vm4 = vcmp.ge.f32.partialorder %v1220_v41, 0.0  ;;  %v2442_v51 = vmul.f32 0.2, %v1220_v41  ;;  %5577 = vst [vmem:[%s7815_s3 + $0x230] sm:$0xff] %v5221_v45   ;;  %v1212_v55 = vadd.f32 %v6574_v54, %v1211_v24 }
 0x121   :  { %v2695_v52 = vsel %vm2183_vm2, %v1209_v37, %v2439_v47  ;;  %vm2314_vm5 = vcmp.ge.f32.partialorder %v1732_v42, 0.0  ;;  %v2570_v53 = vmul.f32 0.2, %v1732_v42  ;;  %v1724_v60 = vadd.f32 %v6574_v54, %v1723_v29  ;;  %v1227_v62 = vpop.f32.mrb[23].mxu0  ;;  %v1739_v63 = vpop.f32.mrb[23].mxu1 }
 0x122   :  { %v2823_v58 = vsel %vm2311_vm3, %v1721_v38, %v2567_v50  ;;  %v2698_v59 = vsel %vm2186_vm4, %v1220_v41, %v2442_v51  ;;  %v1233_v61 = vadd.f32 %v5809_v43, %v6574_v54  ;;  %vm2184_vm6 = vcmp.ge.f32.partialorder %v1212_v55, 0.0 }
 0x123   :  { %v4916_v0 = vpack.c.bf16 %v2698_v59, %v2697_v40  ;;  %v2826_v1 = vsel %vm2314_vm5, %v1732_v42, %v2570_v53  ;;  %v2440_v2 = vmul.f32 0.2, %v1212_v55  ;;  %vm2312_vm7 = vcmp.ge.f32.partialorder %v1724_v60, 0.0 }
 0x124   :  { %v5236_v3 = vpack.c.bf16 %v2826_v1, %v2825_v46  ;;  %v2568_v4 = vmul.f32 0.2, %v1724_v60  ;;  %vm2189_vm8 = vcmp.ge.f32.partialorder %v1233_v61, 0.0  ;;  %v2445_v6 = vmul.f32 0.2, %v1233_v61 }
 0x125   :  { %5516 = vst [vmem:[%s7815_s3 + $0x48] sm:$0xff] %v4916_v0   ;;  %v2696_v5 = vsel %vm2184_vm6, %v1212_v55, %v2440_v2  ;;  %v1745_v7 = vadd.f32 %v5937_v44, %v6574_v54  ;;  %v1225_v8 = vadd.f32 %v6574_v54, %v1224_v48  ;;  %v1737_v11 = vadd.f32 %v6574_v54, %v1736_v49  ;;  %v5813_v13 = vpop.f32.mrb[24].mxu0  ;;  %v5941_v14 = vpop.f32.mrb[24].mxu1 }
 0x126   :  { %5580 = vst [vmem:[%s7815_s3 + $0x248] sm:$0xff] %v5236_v3   ;;  %v4911_v9 = vpack.c.bf16 %v2696_v5, %v2695_v52  ;;  %v2824_v10 = vsel %vm2312_vm7, %v1724_v60, %v2568_v4  ;;  %v1236_v12 = vadd.f32 %v5810_v56, %v6574_v54  ;;  %v2701_v16 = vsel %vm2189_vm8, %v1233_v61, %v2445_v6  ;;  %v1240_v18 = vpop.f32.mrb[25].mxu0  ;;  %v1752_v19 = vpop.f32.mrb[25].mxu1 }
 0x127   :  { %v5231_v15 = vpack.c.bf16 %v2824_v10, %v2823_v58  ;;  %vm2317_vm9 = vcmp.ge.f32.partialorder %v1745_v7, 0.0  ;;  %v2573_v17 = vmul.f32 0.2, %v1745_v7  ;;  %vm2187_vm10 = vcmp.ge.f32.partialorder %v1225_v8, 0.0  ;;  %v5814_v25 = vpop.f32.mrb[26].mxu0  ;;  %v5942_v26 = vpop.f32.mrb[26].mxu1 }
 0x128   :  { %5515 = vst [vmem:[%s7815_s3 + $0x40] sm:$0xff] %v4911_v9   ;;  %v2443_v20 = vmul.f32 0.2, %v1225_v8  ;;  %vm2315_vm11 = vcmp.ge.f32.partialorder %v1737_v11, 0.0  ;;  %v2571_v21 = vmul.f32 0.2, %v1737_v11  ;;  %v1748_v24 = vadd.f32 %v5938_v57, %v6574_v54 }
 0x129   :  { %5579 = vst [vmem:[%s7815_s3 + $0x240] sm:$0xff] %v5231_v15   ;;  %v2829_v22 = vsel %vm2317_vm9, %v1745_v7, %v2573_v17  ;;  %vm2190_vm12 = vcmp.ge.f32.partialorder %v1236_v12, 0.0  ;;  %v2446_v23 = vmul.f32 0.2, %v1236_v12  ;;  %v1228_v29 = vadd.f32 %v6574_v54, %v1227_v62  ;;  %v1243_v31 = vpop.f32.mrb[27].mxu0  ;;  %v1755_v32 = vpop.f32.mrb[27].mxu1 }
 0x12a   :  { %v2699_v27 = vsel %vm2187_vm10, %v1225_v8, %v2443_v20  ;;  %v2827_v28 = vsel %vm2315_vm11, %v1737_v11, %v2571_v21  ;;  %v1740_v30 = vadd.f32 %v6574_v54, %v1739_v63  ;;  %vm2318_vm13 = vcmp.ge.f32.partialorder %v1748_v24, 0.0 }
 0x12b   :  { %v2702_v33 = vsel %vm2190_vm12, %v1236_v12, %v2446_v23  ;;  %v2574_v34 = vmul.f32 0.2, %v1748_v24  ;;  %v1249_v35 = vadd.f32 %v5813_v13, %v6574_v54  ;;  %vm2188_vm14 = vcmp.ge.f32.partialorder %v1228_v29, 0.0 }
 0x12c   :  { %v4926_v36 = vpack.c.bf16 %v2702_v33, %v2701_v16  ;;  %v2444_v37 = vmul.f32 0.2, %v1228_v29  ;;  %vm2316_vm15 = vcmp.ge.f32.partialorder %v1740_v30, 0.0  ;;  %v2572_v39 = vmul.f32 0.2, %v1740_v30 }
 0x12d   :  { %v2830_v38 = vsel %vm2318_vm13, %v1748_v24, %v2574_v34  ;;  %vm2193_vm0 = vcmp.ge.f32.partialorder %v1249_v35, 0.0  ;;  %v2449_v40 = vmul.f32 0.2, %v1249_v35  ;;  %v1761_v43 = vadd.f32 %v5941_v14, %v6574_v54  ;;  %v5817_v45 = vpop.f32.mrb[28].mxu0  ;;  %v5945_v46 = vpop.f32.mrb[28].mxu1 }
 0x12e   :  { %5518 = vst [vmem:[%s7815_s3 + $0x58] sm:$0xff] %v4926_v36   ;;  %v5246_v41 = vpack.c.bf16 %v2830_v38, %v2829_v22  ;;  %v2700_v42 = vsel %vm2188_vm14, %v1228_v29, %v2444_v37  ;;  %v1241_v44 = vadd.f32 %v6574_v54, %v1240_v18  ;;  %v2828_v48 = vsel %vm2316_vm15, %v1740_v30, %v2572_v39  ;;  %v1256_v51 = vpop.f32.mrb[29].mxu0  ;;  %v1768_v52 = vpop.f32.mrb[29].mxu1 }
 0x12f   :  { %v4921_v47 = vpack.c.bf16 %v2700_v42, %v2699_v27  ;;  %v2705_v49 = vsel %vm2193_vm0, %v1249_v35, %v2449_v40  ;;  %v1753_v50 = vadd.f32 %v6574_v54, %v1752_v19  ;;  %v5241_v53 = vpack.c.bf16 %v2828_v48, %v2827_v28  ;;  %v5818_v56 = vpop.f32.mrb[30].mxu0  ;;  %v5946_v57 = vpop.f32.mrb[30].mxu1 }
 0x130   :  { %5582 = vst [vmem:[%s7815_s3 + $0x258] sm:$0xff] %v5246_v41   ;;  %vm2321_vm1 = vcmp.ge.f32.partialorder %v1761_v43, 0.0  ;;  %v2577_v55 = vmul.f32 0.2, %v1761_v43  ;;  %vm2191_vm2 = vcmp.ge.f32.partialorder %v1241_v44, 0.0  ;;  %v1252_v60 = vadd.f32 %v5814_v25, %v6574_v54  ;;  %v1259_v61 = vpop.f32.mrb[31].mxu0 }
 0x131   :  { %5517 = vst [vmem:[%s7815_s3 + $0x50] sm:$0xff] %v4921_v47   ;;  %v2447_v58 = vmul.f32 0.2, %v1241_v44  ;;  %vm2319_vm3 = vcmp.ge.f32.partialorder %v1753_v50, 0.0  ;;  %v2575_v59 = vmul.f32 0.2, %v1753_v50  ;;  %v1764_v63 = vadd.f32 %v5942_v26, %v6574_v54 }
 0x132   :  { %5581 = vst [vmem:[%s7815_s3 + $0x250] sm:$0xff] %v5241_v53   ;;  %v2833_v62 = vsel %vm2321_vm1, %v1761_v43, %v2577_v55  ;;  %v1244_v0 = vadd.f32 %v6574_v54, %v1243_v31  ;;  %v1756_v1 = vadd.f32 %v6574_v54, %v1755_v32  ;;  %v1771_v2 = vpop.f32.mrb[31].mxu1  ;;  %vm2194_vm4 = vcmp.ge.f32.partialorder %v1252_v60, 0.0 }
 0x133   :  { %v2703_v3 = vsel %vm2191_vm2, %v1241_v44, %v2447_v58  ;;  %v2831_v4 = vsel %vm2319_vm3, %v1753_v50, %v2575_v59  ;;  %v2450_v5 = vmul.f32 0.2, %v1252_v60  ;;  %vm2322_vm5 = vcmp.ge.f32.partialorder %v1764_v63, 0.0 }
 0x134   :  { %v2578_v6 = vmul.f32 0.2, %v1764_v63  ;;  %vm2192_vm6 = vcmp.ge.f32.partialorder %v1244_v0, 0.0  ;;  %v2448_v7 = vmul.f32 0.2, %v1244_v0  ;;  %vm2320_vm7 = vcmp.ge.f32.partialorder %v1756_v1, 0.0 }
 0x135   :  { %v2706_v8 = vsel %vm2194_vm4, %v1252_v60, %v2450_v5  ;;  %v2576_v9 = vmul.f32 0.2, %v1756_v1  ;;  %v1265_v10 = vadd.f32 %v5817_v45, %v6574_v54  ;;  %v1777_v14 = vadd.f32 %v5945_v46, %v6574_v54  ;;  %v5821_v15 = vpop.f32.mrb[32].mxu0  ;;  %v5949_v16 = vpop.f32.mrb[32].mxu1 }
 0x136   :  { %v4936_v11 = vpack.c.bf16 %v2706_v8, %v2705_v49  ;;  %v2834_v12 = vsel %vm2322_vm5, %v1764_v63, %v2578_v6  ;;  %v2704_v13 = vsel %vm2192_vm6, %v1244_v0, %v2448_v7  ;;  %v1272_v20 = vpop.f32.mrb[33].mxu0  ;;  %v1784_v21 = vpop.f32.mrb[33].mxu1  ;;  %v1257_v26 = vadd.f32 %v6574_v54, %v1256_v51 }
 0x137   :  { %v5256_v17 = vpack.c.bf16 %v2834_v12, %v2833_v62  ;;  %v4931_v18 = vpack.c.bf16 %v2704_v13, %v2703_v3  ;;  %v2832_v19 = vsel %vm2320_vm7, %v1756_v1, %v2576_v9  ;;  %vm2197_vm8 = vcmp.ge.f32.partialorder %v1265_v10, 0.0  ;;  %v5822_v25 = vpop.f32.mrb[34].mxu0  ;;  %v5950_v30 = vpop.f32.mrb[34].mxu1 }
 0x138   :  { %5520 = vst [vmem:[%s7815_s3 + $0x68] sm:$0xff] %v4936_v11   ;;  %v5251_v22 = vpack.c.bf16 %v2832_v19, %v2831_v4  ;;  %v2453_v23 = vmul.f32 0.2, %v1265_v10  ;;  %vm2325_vm9 = vcmp.ge.f32.partialorder %v1777_v14, 0.0  ;;  %v2581_v24 = vmul.f32 0.2, %v1777_v14 }
 0x139   :  { %5584 = vst [vmem:[%s7815_s3 + $0x268] sm:$0xff] %v5256_v17   ;;  %5519 = vst [vmem:[%s7815_s3 + $0x60] sm:$0xff] %v4931_v18   ;;  %v1769_v27 = vadd.f32 %v6574_v54, %v1768_v52  ;;  %v1268_v28 = vadd.f32 %v5818_v56, %v6574_v54  ;;  %v1780_v29 = vadd.f32 %v5946_v57, %v6574_v54  ;;  %v1275_v31 = vpop.f32.mrb[35].mxu0  ;;  %v1787_v36 = vpop.f32.mrb[35].mxu1  ;;  %vm2195_vm10 = vcmp.ge.f32.partialorder %v1257_v26, 0.0 }
 0x13a   :  { %5583 = vst [vmem:[%s7815_s3 + $0x260] sm:$0xff] %v5251_v22   ;;  %v2709_v32 = vsel %vm2197_vm8, %v1265_v10, %v2453_v23  ;;  %v2837_v33 = vsel %vm2325_vm9, %v1777_v14, %v2581_v24  ;;  %v1260_v34 = vadd.f32 %v6574_v54, %v1259_v61  ;;  %v1772_v35 = vadd.f32 %v6574_v54, %v1771_v2 }
 0x13b   :  { %v2451_v37 = vmul.f32 0.2, %v1257_v26  ;;  %vm2323_vm11 = vcmp.ge.f32.partialorder %v1769_v27, 0.0  ;;  %v2579_v38 = vmul.f32 0.2, %v1769_v27  ;;  %vm2198_vm12 = vcmp.ge.f32.partialorder %v1268_v28, 0.0 }
 0x13c   :  { %v2454_v39 = vmul.f32 0.2, %v1268_v28  ;;  %vm2326_vm13 = vcmp.ge.f32.partialorder %v1780_v29, 0.0  ;;  %v2582_v40 = vmul.f32 0.2, %v1780_v29  ;;  %vm2196_vm14 = vcmp.ge.f32.partialorder %v1260_v34, 0.0 }
 0x13d   :  { %v2707_v41 = vsel %vm2195_vm10, %v1257_v26, %v2451_v37  ;;  %v2835_v42 = vsel %vm2323_vm11, %v1769_v27, %v2579_v38  ;;  %v2452_v43 = vmul.f32 0.2, %v1260_v34  ;;  %vm2324_vm15 = vcmp.ge.f32.partialorder %v1772_v35, 0.0  ;;  %v5825_v47 = vpop.f32.mrb[36].mxu0  ;;  %v5953_v48 = vpop.f32.mrb[36].mxu1 }
 0x13e   :  { %v2710_v44 = vsel %vm2198_vm12, %v1268_v28, %v2454_v39  ;;  %v2838_v45 = vsel %vm2326_vm13, %v1780_v29, %v2582_v40  ;;  %v2580_v46 = vmul.f32 0.2, %v1772_v35  ;;  %v1281_v52 = vadd.f32 %v5821_v15, %v6574_v54  ;;  %v6784_v53 = vpop.f32.mrb[37].mxu0  ;;  %v6786_v55 = vpop.f32.mrb[37].mxu1 }
 0x13f   :  { %v4946_v49 = vpack.c.bf16 %v2710_v44, %v2709_v32  ;;  %v5266_v50 = vpack.c.bf16 %v2838_v45, %v2837_v33  ;;  %v2708_v51 = vsel %vm2196_vm14, %v1260_v34, %v2452_v43  ;;  %v1793_v58 = vadd.f32 %v5949_v16, %v6574_v54  ;;  %v5826_v60 = vpop.f32.mrb[38].mxu0  ;;  %v5954_v61 = vpop.f32.mrb[38].mxu1 }
 0x140   :  { %v4941_v56 = vpack.c.bf16 %v2708_v51, %v2707_v41  ;;  %v2836_v57 = vsel %vm2324_vm15, %v1772_v35, %v2580_v46  ;;  %v1273_v59 = vadd.f32 %v6574_v54, %v1272_v20  ;;  %vm2201_vm0 = vcmp.ge.f32.partialorder %v1281_v52, 0.0  ;;  %v1291_v1 = vpop.f32.mrb[39].mxu0  ;;  %v1803_v2 = vpop.f32.mrb[39].mxu1 }
 0x141   :  { %5522 = vst [vmem:[%s7815_s3 + $0x78] sm:$0xff] %v4946_v49   ;;  %5586 = vst [vmem:[%s7815_s3 + $0x278] sm:$0xff] %v5266_v50   ;;  %v5261_v62 = vpack.c.bf16 %v2836_v57, %v2835_v42  ;;  %v2457_v63 = vmul.f32 0.2, %v1281_v52  ;;  %v1785_v0 = vadd.f32 %v6574_v54, %v1784_v21  ;;  %vm2329_vm1 = vcmp.ge.f32.partialorder %v1793_v58, 0.0 }
 0x142   :  { %5521 = vst [vmem:[%s7815_s3 + $0x70] sm:$0xff] %v4941_v56   ;;  %v2585_v3 = vmul.f32 0.2, %v1793_v58  ;;  %vm2199_vm2 = vcmp.ge.f32.partialorder %v1273_v59, 0.0  ;;  %v2455_v4 = vmul.f32 0.2, %v1273_v59  ;;  %v1284_v7 = vadd.f32 %v5822_v25, %v6574_v54 }
 0x143   :  { %5585 = vst [vmem:[%s7815_s3 + $0x270] sm:$0xff] %v5261_v62   ;;  %v2713_v5 = vsel %vm2201_vm0, %v1281_v52, %v2457_v63  ;;  %vm2327_vm3 = vcmp.ge.f32.partialorder %v1785_v0, 0.0  ;;  %v2583_v6 = vmul.f32 0.2, %v1785_v0  ;;  %v1796_v10 = vadd.f32 %v5950_v30, %v6574_v54  ;;  %v6847_v63 = vld [vmem:[%s7814_s2] ss:$0 sm:$0xff] }
 0x144   :  { %v2841_v8 = vsel %vm2329_vm1, %v1793_v58, %v2585_v3  ;;  %v2711_v9 = vsel %vm2199_vm2, %v1273_v59, %v2455_v4  ;;  %v1276_v11 = vadd.f32 %v6574_v54, %v1275_v31  ;;  %vm2202_vm4 = vcmp.ge.f32.partialorder %v1284_v7, 0.0 }
 0x145   :  { %v2839_v12 = vsel %vm2327_vm3, %v1785_v0, %v2583_v6  ;;  %v2458_v13 = vmul.f32 0.2, %v1284_v7  ;;  %v1788_v14 = vadd.f32 %v6574_v54, %v1787_v36  ;;  %vm2330_vm5 = vcmp.ge.f32.partialorder %v1796_v10, 0.0  ;;  %v5829_v20 = vpop.f32.mrb[40].mxu0  ;;  %v5957_v21 = vpop.f32.mrb[40].mxu1 }
 0x146   :  { %v2586_v15 = vmul.f32 0.2, %v1796_v10  ;;  %vm2200_vm6 = vcmp.ge.f32.partialorder %v1276_v11, 0.0  ;;  %v2456_v16 = vmul.f32 0.2, %v1276_v11  ;;  %v1297_v19 = vadd.f32 %v5825_v47, %v6574_v54  ;;  %v1304_v26 = vpop.f32.mrb[41].mxu0 }
 0x147   :  { %v2714_v17 = vsel %vm2202_vm4, %v1284_v7, %v2458_v13  ;;  %vm2328_vm7 = vcmp.ge.f32.partialorder %v1788_v14, 0.0  ;;  %v2584_v18 = vmul.f32 0.2, %v1788_v14  ;;  %v1809_v25 = vadd.f32 %v5953_v48, %v6574_v54  ;;  %v6809_v27 = vpop.f32.mrb[41].mxu1  ;;  %v6811_v31 = vpop.f32.mrb[42].mxu0 }
 0x148   :  { %v4956_v22 = vpack.c.bf16 %v2714_v17, %v2713_v5  ;;  %v2842_v23 = vsel %vm2330_vm5, %v1796_v10, %v2586_v15  ;;  %v2712_v24 = vsel %vm2200_vm6, %v1276_v11, %v2456_v16  ;;  %vm2205_vm8 = vcmp.ge.f32.partialorder %v1297_v19, 0.0  ;;  %v6813_v32 = vpop.f32.mrb[42].mxu1  ;;  %v6818_v36 = vpop.f32.mrb[43].mxu0 }
 0x149   :  { %v5276_v28 = vpack.c.bf16 %v2842_v23, %v2841_v8  ;;  %v4951_v29 = vpack.c.bf16 %v2712_v24, %v2711_v9  ;;  %v2840_v30 = vsel %vm2328_vm7, %v1788_v14, %v2584_v18  ;;  %v2461_v34 = vmul.f32 0.2, %v1297_v19  ;;  %v6832_v41 = vpop.f32.mrb[43].mxu1 }
 0x14a   :  { %5524 = vst [vmem:[%s7815_s3 + $0x88] sm:$0xff] %v4956_v22   ;;  %v5271_v33 = vpack.c.bf16 %v2840_v30, %v2839_v12  ;;  %vm2333_vm9 = vcmp.ge.f32.partialorder %v1809_v25, 0.0  ;;  %v2589_v35 = vmul.f32 0.2, %v1809_v25  ;;  %v1289_v37 = vadd.f32 %v6574_v54, %v6784_v53 }
 0x14b   :  { %5588 = vst [vmem:[%s7815_s3 + $0x288] sm:$0xff] %v5276_v28   ;;  %5523 = vst [vmem:[%s7815_s3 + $0x80] sm:$0xff] %v4951_v29   ;;  %v1801_v38 = vadd.f32 %v6574_v54, %v6786_v55  ;;  %v1300_v39 = vadd.f32 %v5826_v60, %v6574_v54  ;;  %v1812_v40 = vadd.f32 %v5954_v61, %v6574_v54 }
 0x14c   :  { %5587 = vst [vmem:[%s7815_s3 + $0x280] sm:$0xff] %v5271_v33   ;;  %v2717_v42 = vsel %vm2205_vm8, %v1297_v19, %v2461_v34  ;;  %v2845_v43 = vsel %vm2333_vm9, %v1809_v25, %v2589_v35  ;;  %v1292_v44 = vadd.f32 %v6574_v54, %v1291_v1  ;;  %v1804_v45 = vadd.f32 %v6574_v54, %v1803_v2 }
 0x14d   :  { %vm2203_vm10 = vcmp.ge.f32.partialorder %v1289_v37, 0.0  ;;  %v2459_v46 = vmul.f32 0.2, %v1289_v37  ;;  %vm2331_vm11 = vcmp.ge.f32.partialorder %v1801_v38, 0.0  ;;  %v2587_v47 = vmul.f32 0.2, %v1801_v38 }
 0x14e   :  { %vm2206_vm12 = vcmp.ge.f32.partialorder %v1300_v39, 0.0  ;;  %v2462_v48 = vmul.f32 0.2, %v1300_v39  ;;  %vm2334_vm13 = vcmp.ge.f32.partialorder %v1812_v40, 0.0  ;;  %v2590_v49 = vmul.f32 0.2, %v1812_v40 }
 0x14f   :  { %v2715_v50 = vsel %vm2203_vm10, %v1289_v37, %v2459_v46  ;;  %v2843_v51 = vsel %vm2331_vm11, %v1801_v38, %v2587_v47  ;;  %vm2204_vm14 = vcmp.ge.f32.partialorder %v1292_v44, 0.0  ;;  %v2460_v52 = vmul.f32 0.2, %v1292_v44  ;;  %v5833_v53 = vpop.f32.mrb[44].mxu0  ;;  %v5961_v55 = vpop.f32.mrb[44].mxu1 }
 0x150   :  { %v2718_v56 = vsel %vm2206_vm12, %v1300_v39, %v2462_v48  ;;  %v2846_v57 = vsel %vm2334_vm13, %v1812_v40, %v2590_v49  ;;  %vm2332_vm15 = vcmp.ge.f32.partialorder %v1804_v45, 0.0  ;;  %v2588_v58 = vmul.f32 0.2, %v1804_v45  ;;  %v6840_v59 = vpop.f32.mrb[45].mxu0  ;;  %v6842_v54 = vpop.f32.mrb[45].mxu1 }
 0x151   :  { %v4966_v60 = vpack.c.bf16 %v2718_v56, %v2717_v42  ;;  %v5286_v61 = vpack.c.bf16 %v2846_v57, %v2845_v43  ;;  %v2716_v62 = vsel %vm2204_vm14, %v1292_v44, %v2460_v52  ;;  %v1313_v0 = vadd.f32 %v6847_v63, %v5829_v20  ;;  %v6850_v1 = vpop.f32.mrb[46].mxu0  ;;  %v6852_v2 = vpop.f32.mrb[46].mxu1 }
 0x152   :  { %v4961_v3 = vpack.c.bf16 %v2716_v62, %v2715_v50  ;;  %v2844_v4 = vsel %vm2332_vm15, %v1804_v45, %v2588_v58  ;;  %v1825_v5 = vadd.f32 %v6847_v63, %v5957_v21  ;;  %v1305_v6 = vadd.f32 %v6847_v63, %v1304_v26  ;;  %v6856_v7 = vpop.f32.mrb[47].mxu0  ;;  %v6858_v8 = vpop.f32.mrb[47].mxu1 }
 0x153   :  { %5526 = vst [vmem:[%s7815_s3 + $0x98] sm:$0xff] %v4966_v60   ;;  %5590 = vst [vmem:[%s7815_s3 + $0x298] sm:$0xff] %v5286_v61   ;;  %v5281_v9 = vpack.c.bf16 %v2844_v4, %v2843_v51  ;;  %vm2209_vm0 = vcmp.ge.f32.partialorder %v1313_v0, 0.0  ;;  %v2465_v10 = vmul.f32 0.2, %v1313_v0  ;;  %v1817_v11 = vadd.f32 %v6847_v63, %v6809_v27 }
 0x154   :  { %5525 = vst [vmem:[%s7815_s3 + $0x90] sm:$0xff] %v4961_v3   ;;  %vm2337_vm1 = vcmp.ge.f32.partialorder %v1825_v5, 0.0  ;;  %v2593_v12 = vmul.f32 0.2, %v1825_v5  ;;  %vm2207_vm2 = vcmp.ge.f32.partialorder %v1305_v6, 0.0  ;;  %v1316_v16 = vadd.f32 %v6847_v63, %v6811_v31 }
 0x155   :  { %v2463_v13 = vmul.f32 0.2, %v1305_v6  ;;  %5589 = vst [vmem:[%s7815_s3 + $0x290] sm:$0xff] %v5281_v9   ;;  %v2721_v14 = vsel %vm2209_vm0, %v1313_v0, %v2465_v10  ;;  %vm2335_vm3 = vcmp.ge.f32.partialorder %v1817_v11, 0.0  ;;  %v2591_v15 = vmul.f32 0.2, %v1817_v11 }
 0x156   :  { %v2849_v17 = vsel %vm2337_vm1, %v1825_v5, %v2593_v12  ;;  %v1828_v19 = vadd.f32 %v6847_v63, %v6813_v32  ;;  %v1308_v20 = vadd.f32 %v6847_v63, %v6818_v36  ;;  %v6880_v21 = vpop.f32.mrb[48].mxu0  ;;  %v6882_v22 = vpop.f32.mrb[48].mxu1  ;;  %vm2210_vm4 = vcmp.ge.f32.partialorder %v1316_v16, 0.0 }
 0x157   :  { %v2719_v18 = vsel %vm2207_vm2, %v1305_v6, %v2463_v13  ;;  %v2847_v23 = vsel %vm2335_vm3, %v1817_v11, %v2591_v15  ;;  %v2466_v24 = vmul.f32 0.2, %v1316_v16  ;;  %v1820_v25 = vadd.f32 %v6847_v63, %v6832_v41  ;;  %v6886_v26 = vpop.f32.mrb[49].mxu0  ;;  %v6888_v27 = vpop.f32.mrb[49].mxu1 }
 0x158   :  { %vm2338_vm5 = vcmp.ge.f32.partialorder %v1828_v19, 0.0  ;;  %v2594_v28 = vmul.f32 0.2, %v1828_v19  ;;  %vm2208_vm6 = vcmp.ge.f32.partialorder %v1308_v20, 0.0  ;;  %v2464_v29 = vmul.f32 0.2, %v1308_v20 }
 0x159   :  { %v2722_v30 = vsel %vm2210_vm4, %v1316_v16, %v2466_v24  ;;  %vm2336_vm7 = vcmp.ge.f32.partialorder %v1820_v25, 0.0  ;;  %v2592_v31 = vmul.f32 0.2, %v1820_v25  ;;  %v1329_v32 = vadd.f32 %v6847_v63, %v5833_v53  ;;  %v6891_v33 = vpop.f32.mrb[50].mxu0  ;;  %v6893_v34 = vpop.f32.mrb[50].mxu1 }
 0x15a   :  { %v4976_v35 = vpack.c.bf16 %v2722_v30, %v2721_v14  ;;  %v2850_v36 = vsel %vm2338_vm5, %v1828_v19, %v2594_v28  ;;  %v2720_v37 = vsel %vm2208_vm6, %v1308_v20, %v2464_v29  ;;  %v1841_v38 = vadd.f32 %v6847_v63, %v5961_v55  ;;  %v6896_v39 = vpop.f32.mrb[51].mxu0  ;;  %v6898_v40 = vpop.f32.mrb[51].mxu1 }
 0x15b   :  { %v5296_v41 = vpack.c.bf16 %v2850_v36, %v2849_v17  ;;  %v4971_v42 = vpack.c.bf16 %v2720_v37, %v2719_v18  ;;  %v2848_v43 = vsel %vm2336_vm7, %v1820_v25, %v2592_v31  ;;  %vm2213_vm8 = vcmp.ge.f32.partialorder %v1329_v32, 0.0 }
 0x15c   :  { %5528 = vst [vmem:[%s7815_s3 + $0xa8] sm:$0xff] %v4976_v35   ;;  %v5291_v44 = vpack.c.bf16 %v2848_v43, %v2847_v23  ;;  %v2469_v45 = vmul.f32 0.2, %v1329_v32  ;;  %vm2341_vm9 = vcmp.ge.f32.partialorder %v1841_v38, 0.0  ;;  %v2597_v46 = vmul.f32 0.2, %v1841_v38 }
 0x15d   :  { %5592 = vst [vmem:[%s7815_s3 + $0x2a8] sm:$0xff] %v5296_v41   ;;  %5527 = vst [vmem:[%s7815_s3 + $0xa0] sm:$0xff] %v4971_v42   ;;  %v1321_v47 = vadd.f32 %v6847_v63, %v6840_v59  ;;  %v1833_v48 = vadd.f32 %v6847_v63, %v6842_v54  ;;  %v1332_v49 = vadd.f32 %v6847_v63, %v6850_v1  ;;  %v6924_v56 = vpop.f32.mrb[52].mxu0  ;;  %v6926_v57 = vpop.f32.mrb[52].mxu1 }
 0x15e   :  { %v1844_v50 = vadd.f32 %v6847_v63, %v6852_v2  ;;  %5591 = vst [vmem:[%s7815_s3 + $0x2a0] sm:$0xff] %v5291_v44   ;;  %v2725_v51 = vsel %vm2213_vm8, %v1329_v32, %v2469_v45  ;;  %v2853_v52 = vsel %vm2341_vm9, %v1841_v38, %v2597_v46  ;;  %v1324_v53 = vadd.f32 %v6847_v63, %v6856_v7  ;;  %v6928_v1 = vpop.f32.mrb[53].mxu0  ;;  %v6930_v2 = vpop.f32.mrb[53].mxu1 }
 0x15f   :  { %v1836_v55 = vadd.f32 %v6847_v63, %v6858_v8  ;;  %vm2211_vm10 = vcmp.ge.f32.partialorder %v1321_v47, 0.0  ;;  %v2467_v58 = vmul.f32 0.2, %v1321_v47  ;;  %vm2339_vm11 = vcmp.ge.f32.partialorder %v1833_v48, 0.0  ;;  %v6932_v6 = vpop.f32.mrb[54].mxu0  ;;  %v6934_v7 = vpop.f32.mrb[54].mxu1 }
 0x160   :  { %v2595_v59 = vmul.f32 0.2, %v1833_v48  ;;  %vm2214_vm12 = vcmp.ge.f32.partialorder %v1332_v49, 0.0  ;;  %v2470_v54 = vmul.f32 0.2, %v1332_v49  ;;  %vm2342_vm13 = vcmp.ge.f32.partialorder %v1844_v50, 0.0 }
 0x161   :  { %v2598_v60 = vmul.f32 0.2, %v1844_v50  ;;  %v2723_v61 = vsel %vm2211_vm10, %v1321_v47, %v2467_v58  ;;  %vm2212_vm14 = vcmp.ge.f32.partialorder %v1324_v53, 0.0  ;;  %v2468_v0 = vmul.f32 0.2, %v1324_v53  ;;  %v6938_v12 = vpop.f32.mrb[55].mxu0 }
 0x162   :  { %v2851_v62 = vsel %vm2339_vm11, %v1833_v48, %v2595_v59  ;;  %v2726_v3 = vsel %vm2214_vm12, %v1332_v49, %v2470_v54  ;;  %vm2340_vm15 = vcmp.ge.f32.partialorder %v1836_v55, 0.0  ;;  %v2596_v5 = vmul.f32 0.2, %v1836_v55  ;;  %v6940_v13 = vpop.f32.mrb[55].mxu1 }
 0x163   :  { %v2854_v4 = vsel %vm2342_vm13, %v1844_v50, %v2598_v60  ;;  %v4986_v8 = vpack.c.bf16 %v2726_v3, %v2725_v51  ;;  %v2724_v10 = vsel %vm2212_vm14, %v1324_v53, %v2468_v0  ;;  %v1345_v11 = vadd.f32 %v6847_v63, %v6880_v21 }
 0x164   :  { %v5306_v9 = vpack.c.bf16 %v2854_v4, %v2853_v52  ;;  %v4981_v14 = vpack.c.bf16 %v2724_v10, %v2723_v61  ;;  %v2852_v15 = vsel %vm2340_vm15, %v1836_v55, %v2596_v5  ;;  %v1857_v16 = vadd.f32 %v6847_v63, %v6882_v22 }
 0x165   :  { %v1337_v17 = vadd.f32 %v6847_v63, %v6886_v26  ;;  %5530 = vst [vmem:[%s7815_s3 + $0xb8] sm:$0xff] %v4986_v8   ;;  %v5301_v18 = vpack.c.bf16 %v2852_v15, %v2851_v62  ;;  %vm2217_vm0 = vcmp.ge.f32.partialorder %v1345_v11, 0.0  ;;  %v2473_v19 = vmul.f32 0.2, %v1345_v11  ;;  %v6962_v26 = vpop.f32.mrb[56].mxu0 }
 0x166   :  { %5594 = vst [vmem:[%s7815_s3 + $0x2b8] sm:$0xff] %v5306_v9   ;;  %v1849_v20 = vadd.f32 %v6847_v63, %v6888_v27  ;;  %5529 = vst [vmem:[%s7815_s3 + $0xb0] sm:$0xff] %v4981_v14   ;;  %vm2345_vm1 = vcmp.ge.f32.partialorder %v1857_v16, 0.0  ;;  %v2601_v21 = vmul.f32 0.2, %v1857_v16  ;;  %v1348_v25 = vadd.f32 %v6847_v63, %v6891_v33  ;;  %v6964_v27 = vpop.f32.mrb[56].mxu1 }
 0x167   :  { %vm2215_vm2 = vcmp.ge.f32.partialorder %v1337_v17, 0.0  ;;  %v2471_v22 = vmul.f32 0.2, %v1337_v17  ;;  %5593 = vst [vmem:[%s7815_s3 + $0x2b0] sm:$0xff] %v5301_v18   ;;  %v2729_v23 = vsel %vm2217_vm0, %v1345_v11, %v2473_v19  ;;  %v1860_v30 = vadd.f32 %v6847_v63, %v6893_v34  ;;  %v6970_v32 = vpop.f32.mrb[57].mxu0  ;;  %v6972_v35 = vpop.f32.mrb[57].mxu1 }
 0x168   :  { %vm2343_vm3 = vcmp.ge.f32.partialorder %v1849_v20, 0.0  ;;  %v2599_v24 = vmul.f32 0.2, %v1849_v20  ;;  %v2857_v28 = vsel %vm2345_vm1, %v1857_v16, %v2601_v21  ;;  %v1340_v31 = vadd.f32 %v6847_v63, %v6896_v39  ;;  %v6976_v38 = vpop.f32.mrb[58].mxu0  ;;  %v6978_v41 = vpop.f32.mrb[58].mxu1 }
 0x169   :  { %v2727_v29 = vsel %vm2215_vm2, %v1337_v17, %v2471_v22  ;;  %vm2218_vm4 = vcmp.ge.f32.partialorder %v1348_v25, 0.0  ;;  %v2474_v37 = vmul.f32 0.2, %v1348_v25  ;;  %v1852_v33 = vadd.f32 %v6847_v63, %v6898_v40  ;;  %v6982_v45 = vpop.f32.mrb[59].mxu0  ;;  %v6984_v46 = vpop.f32.mrb[59].mxu1 }
 0x16a   :  { %v2855_v36 = vsel %vm2343_vm3, %v1849_v20, %v2599_v24  ;;  %vm2346_vm5 = vcmp.ge.f32.partialorder %v1860_v30, 0.0  ;;  %v2602_v42 = vmul.f32 0.2, %v1860_v30  ;;  %vm2216_vm6 = vcmp.ge.f32.partialorder %v1340_v31, 0.0 }
 0x16b   :  { %v2472_v34 = vmul.f32 0.2, %v1340_v31  ;;  %v2730_v43 = vsel %vm2218_vm4, %v1348_v25, %v2474_v37  ;;  %vm2344_vm7 = vcmp.ge.f32.partialorder %v1852_v33, 0.0  ;;  %v2600_v39 = vmul.f32 0.2, %v1852_v33 }
 0x16c   :  { %v1361_v44 = vadd.f32 %v6847_v63, %v6924_v56  ;;  %v4996_v47 = vpack.c.bf16 %v2730_v43, %v2729_v23  ;;  %v2858_v40 = vsel %vm2346_vm5, %v1860_v30, %v2602_v42  ;;  %v1873_v49 = vadd.f32 %v6847_v63, %v6926_v57 }
 0x16d   :  { %v2728_v48 = vsel %vm2216_vm6, %v1340_v31, %v2472_v34  ;;  %v5316_v50 = vpack.c.bf16 %v2858_v40, %v2857_v28  ;;  %v2856_v52 = vsel %vm2344_vm7, %v1852_v33, %v2600_v39  ;;  %v6991_v58 = vpop.f32.mrb[60].mxu0  ;;  %v1353_v57 = vadd.f32 %v6847_v63, %v6928_v1  ;;  %v7007_v61 = vpop.f32.mrb[60].mxu1 }
 0x16e   :  { %v4991_v51 = vpack.c.bf16 %v2728_v48, %v2727_v29  ;;  %vm2221_vm8 = vcmp.ge.f32.partialorder %v1361_v44, 0.0  ;;  %5532 = vst [vmem:[%s7815_s3 + $0xc8] sm:$0xff] %v4996_v47   ;;  %v5311_v53 = vpack.c.bf16 %v2856_v52, %v2855_v36  ;;  %v2477_v55 = vmul.f32 0.2, %v1361_v44  ;;  %v7009_v62 = vpop.f32.mrb[61].mxu0  ;;  %v7019_v4 = vpop.f32.mrb[61].mxu1 }
 0x16f   :  { %vm2349_vm9 = vcmp.ge.f32.partialorder %v1873_v49, 0.0  ;;  %v2605_v56 = vmul.f32 0.2, %v1873_v49  ;;  %5596 = vst [vmem:[%s7815_s3 + $0x2c8] sm:$0xff] %v5316_v50   ;;  %v1865_v59 = vadd.f32 %v6847_v63, %v6930_v2  ;;  %v1364_v54 = vadd.f32 %v6847_v63, %v6932_v6  ;;  %v7021_v5 = vpop.f32.mrb[62].mxu0 }
 0x170   :  { %5531 = vst [vmem:[%s7815_s3 + $0xc0] sm:$0xff] %v4991_v51   ;;  %v1876_v60 = vadd.f32 %v6847_v63, %v6934_v7  ;;  %5595 = vst [vmem:[%s7815_s3 + $0x2c0] sm:$0xff] %v5311_v53   ;;  %v2733_v0 = vsel %vm2221_vm8, %v1361_v44, %v2477_v55  ;;  %v1356_v2 = vadd.f32 %v6847_v63, %v6938_v12  ;;  %vm2219_vm10 = vcmp.ge.f32.partialorder %v1353_v57, 0.0  ;;  %v7023_v12 = vpop.f32.mrb[62].mxu1  ;;  %v7025_v15 = vpop.f32.mrb[63].mxu0 }
 0x171   :  { %v2861_v1 = vsel %vm2349_vm9, %v1873_v49, %v2605_v56  ;;  %v1868_v3 = vadd.f32 %v6847_v63, %v6940_v13  ;;  %v2475_v6 = vmul.f32 0.2, %v1353_v57  ;;  %vm2347_vm11 = vcmp.ge.f32.partialorder %v1865_v59, 0.0  ;;  %v7027_v18 = vpop.f32.mrb[63].mxu1 }
 0x172   :  { %v2603_v7 = vmul.f32 0.2, %v1865_v59  ;;  %vm2222_vm12 = vcmp.ge.f32.partialorder %v1364_v54, 0.0  ;;  %v2478_v8 = vmul.f32 0.2, %v1364_v54  ;;  %vm2350_vm13 = vcmp.ge.f32.partialorder %v1876_v60, 0.0 }
 0x173   :  { %v2606_v9 = vmul.f32 0.2, %v1876_v60  ;;  %v2731_v10 = vsel %vm2219_vm10, %v1353_v57, %v2475_v6  ;;  %vm2220_vm14 = vcmp.ge.f32.partialorder %v1356_v2, 0.0  ;;  %v2476_v14 = vmul.f32 0.2, %v1356_v2 }
 0x174   :  { %v2859_v11 = vsel %vm2347_vm11, %v1865_v59, %v2603_v7  ;;  %v2734_v13 = vsel %vm2222_vm12, %v1364_v54, %v2478_v8  ;;  %vm2348_vm15 = vcmp.ge.f32.partialorder %v1868_v3, 0.0  ;;  %v2604_v17 = vmul.f32 0.2, %v1868_v3 }
 0x175   :  { %v2862_v16 = vsel %vm2350_vm13, %v1876_v60, %v2606_v9  ;;  %v5006_v19 = vpack.c.bf16 %v2734_v13, %v2733_v0  ;;  %v2732_v21 = vsel %vm2220_vm14, %v1356_v2, %v2476_v14  ;;  %v1377_v22 = vadd.f32 %v6847_v63, %v6962_v26  ;;  %v7035_v29 = vpop.f32.mrb[64].mxu0  ;;  %v7037_v30 = vpop.f32.mrb[64].mxu1 }
 0x176   :  { %v5326_v20 = vpack.c.bf16 %v2862_v16, %v2861_v1  ;;  %v5001_v23 = vpack.c.bf16 %v2732_v21, %v2731_v10  ;;  %v2860_v24 = vsel %vm2348_vm15, %v1868_v3, %v2604_v17  ;;  %v1889_v25 = vadd.f32 %v6847_v63, %v6964_v27  ;;  %v7047_v36 = vpop.f32.mrb[65].mxu0 }
 0x177   :  { %v1369_v28 = vadd.f32 %v6847_v63, %v6970_v32  ;;  %5534 = vst [vmem:[%s7815_s3 + $0xd8] sm:$0xff] %v5006_v19   ;;  %v5321_v26 = vpack.c.bf16 %v2860_v24, %v2859_v11  ;;  %vm2225_vm0 = vcmp.ge.f32.partialorder %v1377_v22, 0.0  ;;  %v2481_v31 = vmul.f32 0.2, %v1377_v22  ;;  %v7049_v32 = vpop.f32.mrb[65].mxu1  ;;  %v7059_v43 = vpop.f32.mrb[66].mxu0 }
 0x178   :  { %5598 = vst [vmem:[%s7815_s3 + $0x2d8] sm:$0xff] %v5326_v20   ;;  %v1881_v27 = vadd.f32 %v6847_v63, %v6972_v35  ;;  %5533 = vst [vmem:[%s7815_s3 + $0xd0] sm:$0xff] %v5001_v23   ;;  %vm2353_vm1 = vcmp.ge.f32.partialorder %v1889_v25, 0.0  ;;  %v2609_v37 = vmul.f32 0.2, %v1889_v25  ;;  %v1380_v35 = vadd.f32 %v6847_v63, %v6976_v38  ;;  %v7061_v39 = vpop.f32.mrb[66].mxu1 }
 0x179   :  { %vm2223_vm2 = vcmp.ge.f32.partialorder %v1369_v28, 0.0  ;;  %v2479_v33 = vmul.f32 0.2, %v1369_v28  ;;  %5597 = vst [vmem:[%s7815_s3 + $0x2d0] sm:$0xff] %v5321_v26   ;;  %v2737_v42 = vsel %vm2225_vm0, %v1377_v22, %v2481_v31  ;;  %v1892_v40 = vadd.f32 %v6847_v63, %v6978_v41  ;;  %v7067_v49 = vpop.f32.mrb[67].mxu0  ;;  %v7069_v50 = vpop.f32.mrb[67].mxu1 }
 0x17a   :  { %vm2351_vm3 = vcmp.ge.f32.partialorder %v1881_v27, 0.0  ;;  %v2607_v34 = vmul.f32 0.2, %v1881_v27  ;;  %v2865_v44 = vsel %vm2353_vm1, %v1889_v25, %v2609_v37  ;;  %v1372_v48 = vadd.f32 %v6847_v63, %v6982_v45 }
 0x17b   :  { %v2735_v47 = vsel %vm2223_vm2, %v1369_v28, %v2479_v33  ;;  %vm2226_vm4 = vcmp.ge.f32.partialorder %v1380_v35, 0.0  ;;  %v2482_v52 = vmul.f32 0.2, %v1380_v35  ;;  %v1884_v38 = vadd.f32 %v6847_v63, %v6984_v46 }
 0x17c   :  { %v2863_v51 = vsel %vm2351_vm3, %v1881_v27, %v2607_v34  ;;  %vm2354_vm5 = vcmp.ge.f32.partialorder %v1892_v40, 0.0  ;;  %v2610_v53 = vmul.f32 0.2, %v1892_v40  ;;  %vm2224_vm6 = vcmp.ge.f32.partialorder %v1372_v48, 0.0 }
 0x17d   :  { %v2480_v55 = vmul.f32 0.2, %v1372_v48  ;;  %v2738_v56 = vsel %vm2226_vm4, %v1380_v35, %v2482_v52  ;;  %vm2352_vm7 = vcmp.ge.f32.partialorder %v1884_v38, 0.0  ;;  %v2608_v41 = vmul.f32 0.2, %v1884_v38  ;;  %v7077_v0 = vpop.f32.mrb[68].mxu0 }
 0x17e   :  { %v1393_v45 = vadd.f32 %v6847_v63, %v6991_v58  ;;  %v5016_v57 = vpack.c.bf16 %v2738_v56, %v2737_v42  ;;  %v2866_v59 = vsel %vm2354_vm5, %v1892_v40, %v2610_v53  ;;  %v1905_v60 = vadd.f32 %v6847_v63, %v7007_v61  ;;  %v7079_v1 = vpop.f32.mrb[68].mxu1  ;;  %v7081_v6 = vpop.f32.mrb[69].mxu0 }
 0x17f   :  { %v2736_v54 = vsel %vm2224_vm6, %v1372_v48, %v2480_v55  ;;  %v5336_v46 = vpack.c.bf16 %v2866_v59, %v2865_v44  ;;  %v2864_v3 = vsel %vm2352_vm7, %v1884_v38, %v2608_v41  ;;  %v7083_v7 = vpop.f32.mrb[69].mxu1  ;;  %v7088_v9 = vpop.f32.mrb[70].mxu0  ;;  %v1385_v10 = vadd.f32 %v6847_v63, %v7009_v62 }
 0x180   :  { %v5011_v2 = vpack.c.bf16 %v2736_v54, %v2735_v47  ;;  %vm2229_vm8 = vcmp.ge.f32.partialorder %v1393_v45, 0.0  ;;  %5536 = vst [vmem:[%s7815_s3 + $0xe8] sm:$0xff] %v5016_v57   ;;  %v5331_v58 = vpack.c.bf16 %v2864_v3, %v2863_v51  ;;  %v2485_v8 = vmul.f32 0.2, %v1393_v45  ;;  %v7104_v16 = vpop.f32.mrb[70].mxu1  ;;  %v7106_v17 = vpop.f32.mrb[71].mxu0 }
 0x181   :  { %vm2357_vm9 = vcmp.ge.f32.partialorder %v1905_v60, 0.0  ;;  %v2613_v61 = vmul.f32 0.2, %v1905_v60  ;;  %5600 = vst [vmem:[%s7815_s3 + $0x2e8] sm:$0xff] %v5336_v46   ;;  %v1897_v11 = vadd.f32 %v6847_v63, %v7019_v4  ;;  %v1396_v14 = vadd.f32 %v6847_v63, %v7021_v5  ;;  %v7116_v20 = vpop.f32.mrb[71].mxu1 }
 0x182   :  { %5535 = vst [vmem:[%s7815_s3 + $0xe0] sm:$0xff] %v5011_v2   ;;  %v1908_v13 = vadd.f32 %v6847_v63, %v7023_v12  ;;  %5599 = vst [vmem:[%s7815_s3 + $0x2e0] sm:$0xff] %v5331_v58   ;;  %v2741_v19 = vsel %vm2229_vm8, %v1393_v45, %v2485_v8  ;;  %v1388_v4 = vadd.f32 %v6847_v63, %v7025_v15  ;;  %vm2227_vm10 = vcmp.ge.f32.partialorder %v1385_v10, 0.0 }
 0x183   :  { %v2869_v62 = vsel %vm2357_vm9, %v1905_v60, %v2613_v61  ;;  %v1900_v5 = vadd.f32 %v6847_v63, %v7027_v18  ;;  %v2483_v12 = vmul.f32 0.2, %v1385_v10  ;;  %vm2355_vm11 = vcmp.ge.f32.partialorder %v1897_v11, 0.0 }
 0x184   :  { %v2611_v21 = vmul.f32 0.2, %v1897_v11  ;;  %vm2230_vm12 = vcmp.ge.f32.partialorder %v1396_v14, 0.0  ;;  %v2486_v22 = vmul.f32 0.2, %v1396_v14  ;;  %vm2358_vm13 = vcmp.ge.f32.partialorder %v1908_v13, 0.0 }
 0x185   :  { %v2614_v23 = vmul.f32 0.2, %v1908_v13  ;;  %v2739_v24 = vsel %vm2227_vm10, %v1385_v10, %v2483_v12  ;;  %vm2228_vm14 = vcmp.ge.f32.partialorder %v1388_v4, 0.0  ;;  %v2484_v28 = vmul.f32 0.2, %v1388_v4  ;;  %v7118_v27 = vpop.f32.mrb[72].mxu0 }
 0x186   :  { %v2867_v25 = vsel %vm2355_vm11, %v1897_v11, %v2611_v21  ;;  %v2742_v26 = vsel %vm2230_vm12, %v1396_v14, %v2486_v22  ;;  %vm2356_vm15 = vcmp.ge.f32.partialorder %v1900_v5, 0.0  ;;  %v2612_v15 = vmul.f32 0.2, %v1900_v5  ;;  %v7120_v18 = vpop.f32.mrb[72].mxu1  ;;  %v7124_v35 = vpop.f32.mrb[73].mxu0 }
 0x187   :  { %v2870_v31 = vsel %vm2358_vm13, %v1908_v13, %v2614_v23  ;;  %v5026_v37 = vpack.c.bf16 %v2742_v26, %v2741_v19  ;;  %v2740_v42 = vsel %vm2228_vm14, %v1388_v4, %v2484_v28  ;;  %v1409_v34 = vadd.f32 %v6847_v63, %v7035_v29  ;;  %v7126_v44 = vpop.f32.mrb[73].mxu1  ;;  %v7132_v52 = vpop.f32.mrb[74].mxu0 }
 0x188   :  { %v5346_v33 = vpack.c.bf16 %v2870_v31, %v2869_v62  ;;  %v5021_v47 = vpack.c.bf16 %v2740_v42, %v2739_v24  ;;  %v2868_v40 = vsel %vm2356_vm15, %v1900_v5, %v2612_v15  ;;  %v1921_v48 = vadd.f32 %v6847_v63, %v7037_v30  ;;  %v7134_v38 = vpop.f32.mrb[74].mxu1  ;;  %v7144_v55 = vpop.f32.mrb[75].mxu0 }
 0x189   :  { %v1401_v51 = vadd.f32 %v6847_v63, %v7047_v36  ;;  %5538 = vst [vmem:[%s7815_s3 + $0xf8] sm:$0xff] %v5026_v37   ;;  %v5341_v29 = vpack.c.bf16 %v2868_v40, %v2867_v25  ;;  %vm2233_vm0 = vcmp.ge.f32.partialorder %v1409_v34, 0.0  ;;  %v2489_v53 = vmul.f32 0.2, %v1409_v34  ;;  %v7146_v36 = vpop.f32.mrb[75].mxu1 }
 0x18a   :  { %5602 = vst [vmem:[%s7815_s3 + $0x2f8] sm:$0xff] %v5346_v33   ;;  %v1913_v30 = vadd.f32 %v6847_v63, %v7049_v32  ;;  %5537 = vst [vmem:[%s7815_s3 + $0xf0] sm:$0xff] %v5021_v47   ;;  %vm2361_vm1 = vcmp.ge.f32.partialorder %v1921_v48, 0.0  ;;  %v2617_v56 = vmul.f32 0.2, %v1921_v48  ;;  %v1412_v32 = vadd.f32 %v6847_v63, %v7059_v43 }
 0x18b   :  { %vm2231_vm2 = vcmp.ge.f32.partialorder %v1401_v51, 0.0  ;;  %v2487_v41 = vmul.f32 0.2, %v1401_v51  ;;  %5601 = vst [vmem:[%s7815_s3 + $0x2f0] sm:$0xff] %v5341_v29   ;;  %v2745_v45 = vsel %vm2233_vm0, %v1409_v34, %v2489_v53  ;;  %v1924_v60 = vadd.f32 %v6847_v63, %v7061_v39 }
 0x18c   :  { %vm2359_vm3 = vcmp.ge.f32.partialorder %v1913_v30, 0.0  ;;  %v2615_v57 = vmul.f32 0.2, %v1913_v30  ;;  %v2873_v59 = vsel %vm2361_vm1, %v1921_v48, %v2617_v56  ;;  %v1404_v46 = vadd.f32 %v6847_v63, %v7067_v49 }
 0x18d   :  { %v2743_v54 = vsel %vm2231_vm2, %v1401_v51, %v2487_v41  ;;  %vm2234_vm4 = vcmp.ge.f32.partialorder %v1412_v32, 0.0  ;;  %v2490_v3 = vmul.f32 0.2, %v1412_v32  ;;  %v1916_v58 = vadd.f32 %v6847_v63, %v7069_v50  ;;  %v7164_v39 = vpop.f32.mrb[76].mxu0  ;;  %v7166_v14 = vpop.f32.mrb[76].mxu1 }
 0x18e   :  { %v2871_v2 = vsel %vm2359_vm3, %v1913_v30, %v2615_v57  ;;  %vm2362_vm5 = vcmp.ge.f32.partialorder %v1924_v60, 0.0  ;;  %v2618_v8 = vmul.f32 0.2, %v1924_v60  ;;  %vm2232_vm6 = vcmp.ge.f32.partialorder %v1404_v46, 0.0  ;;  %v7170_v62 = vpop.f32.mrb[77].mxu0  ;;  %v7172_v4 = vpop.f32.mrb[77].mxu1 }
 0x18f   :  { %v2488_v61 = vmul.f32 0.2, %v1404_v46  ;;  %v2746_v10 = vsel %vm2234_vm4, %v1412_v32, %v2490_v3  ;;  %vm2360_vm7 = vcmp.ge.f32.partialorder %v1916_v58, 0.0  ;;  %v2616_v43 = vmul.f32 0.2, %v1916_v58  ;;  %v7174_v22 = vpop.f32.mrb[78].mxu0 }
 0x190   :  { %v1425_v11 = vadd.f32 %v6847_v63, %v7077_v0  ;;  %v5036_v49 = vpack.c.bf16 %v2746_v10, %v2745_v45  ;;  %v2874_v13 = vsel %vm2362_vm5, %v1924_v60, %v2618_v8  ;;  %v1937_v50 = vadd.f32 %v6847_v63, %v7079_v1  ;;  %v7176_v0 = vpop.f32.mrb[78].mxu1  ;;  %v7181_v25 = vpop.f32.mrb[79].mxu0 }
 0x191   :  { %v2744_v19 = vsel %vm2232_vm6, %v1404_v46, %v2488_v61  ;;  %v5356_v5 = vpack.c.bf16 %v2874_v13, %v2873_v59  ;;  %v2872_v21 = vsel %vm2360_vm7, %v1916_v58, %v2616_v43  ;;  %v1417_v28 = vadd.f32 %v6847_v63, %v7081_v6  ;;  %v7197_v37 = vpop.f32.mrb[79].mxu1 }
 0x192   :  { %v5031_v12 = vpack.c.bf16 %v2744_v19, %v2743_v54  ;;  %vm2237_vm8 = vcmp.ge.f32.partialorder %v1425_v11, 0.0  ;;  %5540 = vst [vmem:[%s7815_s3 + $0x108] sm:$0xff] %v5036_v49   ;;  %v5351_v23 = vpack.c.bf16 %v2872_v21, %v2871_v2  ;;  %v2493_v24 = vmul.f32 0.2, %v1425_v11 }
 0x193   :  { %vm2365_vm9 = vcmp.ge.f32.partialorder %v1937_v50, 0.0  ;;  %v2621_v1 = vmul.f32 0.2, %v1937_v50  ;;  %5604 = vst [vmem:[%s7815_s3 + $0x308] sm:$0xff] %v5356_v5   ;;  %v1929_v26 = vadd.f32 %v6847_v63, %v7083_v7  ;;  %v1428_v31 = vadd.f32 %v6847_v63, %v7088_v9 }
 0x194   :  { %5539 = vst [vmem:[%s7815_s3 + $0x100] sm:$0xff] %v5031_v12   ;;  %v1940_v15 = vadd.f32 %v6847_v63, %v7104_v16  ;;  %5603 = vst [vmem:[%s7815_s3 + $0x300] sm:$0xff] %v5351_v23   ;;  %v2749_v33 = vsel %vm2237_vm8, %v1425_v11, %v2493_v24  ;;  %v1420_v6 = vadd.f32 %v6847_v63, %v7106_v17  ;;  %vm2235_vm10 = vcmp.ge.f32.partialorder %v1417_v28, 0.0 }
 0x195   :  { %v2877_v42 = vsel %vm2365_vm9, %v1937_v50, %v2621_v1  ;;  %v1932_v7 = vadd.f32 %v6847_v63, %v7116_v20  ;;  %v2491_v9 = vmul.f32 0.2, %v1417_v28  ;;  %vm2363_vm11 = vcmp.ge.f32.partialorder %v1929_v26, 0.0  ;;  %v7207_v29 = vpop.f32.mrb[80].mxu0  ;;  %v7209_v53 = vpop.f32.mrb[80].mxu1 }
 0x196   :  { %v2619_v34 = vmul.f32 0.2, %v1929_v26  ;;  %vm2238_vm12 = vcmp.ge.f32.partialorder %v1428_v31, 0.0  ;;  %v2494_v16 = vmul.f32 0.2, %v1428_v31  ;;  %vm2366_vm13 = vcmp.ge.f32.partialorder %v1940_v15, 0.0 }
 0x197   :  { %v2622_v47 = vmul.f32 0.2, %v1940_v15  ;;  %v2747_v40 = vsel %vm2235_vm10, %v1417_v28, %v2491_v9  ;;  %vm2236_vm14 = vcmp.ge.f32.partialorder %v1420_v6, 0.0  ;;  %v2492_v51 = vmul.f32 0.2, %v1420_v6  ;;  %v7211_v56 = vpop.f32.mrb[81].mxu0 }
 0x198   :  { %v2875_v48 = vsel %vm2363_vm11, %v1929_v26, %v2619_v34  ;;  %v2750_v17 = vsel %vm2238_vm12, %v1428_v31, %v2494_v16  ;;  %vm2364_vm15 = vcmp.ge.f32.partialorder %v1932_v7, 0.0  ;;  %v2620_v20 = vmul.f32 0.2, %v1932_v7  ;;  %v7213_v41 = vpop.f32.mrb[81].mxu1  ;;  %v7217_v54 = vpop.f32.mrb[82].mxu0 }
 0x199   :  { %v2878_v30 = vsel %vm2366_vm13, %v1940_v15, %v2622_v47  ;;  %v5046_v45 = vpack.c.bf16 %v2750_v17, %v2749_v33  ;;  %v2748_v32 = vsel %vm2236_vm14, %v1420_v6, %v2492_v51  ;;  %v1441_v59 = vadd.f32 %v6847_v63, %v7118_v27  ;;  %v7219_v60 = vpop.f32.mrb[82].mxu1  ;;  %v7225_v8 = vpop.f32.mrb[83].mxu0 }
 0x19a   :  { %v5366_v57 = vpack.c.bf16 %v2878_v30, %v2877_v42  ;;  %v5041_v46 = vpack.c.bf16 %v2748_v32, %v2747_v40  ;;  %v2876_v2 = vsel %vm2364_vm15, %v1932_v7, %v2620_v20  ;;  %v1953_v3 = vadd.f32 %v6847_v63, %v7120_v18  ;;  %v7227_v61 = vpop.f32.mrb[83].mxu1 }
 0x19b   :  { %v1433_v58 = vadd.f32 %v6847_v63, %v7124_v35  ;;  %5542 = vst [vmem:[%s7815_s3 + $0x118] sm:$0xff] %v5046_v45   ;;  %v5361_v27 = vpack.c.bf16 %v2876_v2, %v2875_v48  ;;  %vm2241_vm0 = vcmp.ge.f32.partialorder %v1441_v59, 0.0  ;;  %v2497_v10 = vmul.f32 0.2, %v1441_v59 }
 0x19c   :  { %5606 = vst [vmem:[%s7815_s3 + $0x318] sm:$0xff] %v5366_v57   ;;  %v1945_v18 = vadd.f32 %v6847_v63, %v7126_v44  ;;  %5541 = vst [vmem:[%s7815_s3 + $0x110] sm:$0xff] %v5041_v46   ;;  %vm2369_vm1 = vcmp.ge.f32.partialorder %v1953_v3, 0.0  ;;  %v2625_v35 = vmul.f32 0.2, %v1953_v3  ;;  %v1444_v13 = vadd.f32 %v6847_v63, %v7132_v52 }
 0x19d   :  { %vm2239_vm2 = vcmp.ge.f32.partialorder %v1433_v58, 0.0  ;;  %v2495_v43 = vmul.f32 0.2, %v1433_v58  ;;  %5605 = vst [vmem:[%s7815_s3 + $0x310] sm:$0xff] %v5361_v27   ;;  %v2753_v11 = vsel %vm2241_vm0, %v1441_v59, %v2497_v10  ;;  %v1956_v50 = vadd.f32 %v6847_v63, %v7134_v38  ;;  %v7249_v12 = vpop.f32.mrb[84].mxu0  ;;  %v7251_v21 = vpop.f32.mrb[84].mxu1 }
 0x19e   :  { %vm2367_vm3 = vcmp.ge.f32.partialorder %v1945_v18, 0.0  ;;  %v2623_v49 = vmul.f32 0.2, %v1945_v18  ;;  %v2881_v19 = vsel %vm2369_vm1, %v1953_v3, %v2625_v35  ;;  %v1436_v5 = vadd.f32 %v6847_v63, %v7144_v55  ;;  %v7255_v28 = vpop.f32.mrb[85].mxu0  ;;  %v7257_v52 = vpop.f32.mrb[85].mxu1 }
 0x19f   :  { %v2751_v44 = vsel %vm2239_vm2, %v1433_v58, %v2495_v43  ;;  %vm2242_vm4 = vcmp.ge.f32.partialorder %v1444_v13, 0.0  ;;  %v2498_v24 = vmul.f32 0.2, %v1444_v13  ;;  %v1948_v1 = vadd.f32 %v6847_v63, %v7146_v36  ;;  %v7261_v33 = vpop.f32.mrb[86].mxu0  ;;  %v7263_v42 = vpop.f32.mrb[86].mxu1 }
 0x1a0   :  { %v2879_v23 = vsel %vm2367_vm3, %v1945_v18, %v2623_v49  ;;  %vm2370_vm5 = vcmp.ge.f32.partialorder %v1956_v50, 0.0  ;;  %v2626_v26 = vmul.f32 0.2, %v1956_v50  ;;  %vm2240_vm6 = vcmp.ge.f32.partialorder %v1436_v5, 0.0  ;;  %v7267_v34 = vpop.f32.mrb[87].mxu0  ;;  %v7269_v16 = vpop.f32.mrb[87].mxu1 }
 0x1a1   :  { %v2496_v38 = vmul.f32 0.2, %v1436_v5  ;;  %v2754_v31 = vsel %vm2242_vm4, %v1444_v13, %v2498_v24  ;;  %vm2368_vm7 = vcmp.ge.f32.partialorder %v1948_v1, 0.0  ;;  %v2624_v55 = vmul.f32 0.2, %v1948_v1 }
 0x1a2   :  { %v1457_v15 = vadd.f32 %v6847_v63, %v7164_v39  ;;  %v5056_v6 = vpack.c.bf16 %v2754_v31, %v2753_v11  ;;  %v2882_v36 = vsel %vm2370_vm5, %v1956_v50, %v2626_v26  ;;  %v1969_v9 = vadd.f32 %v6847_v63, %v7166_v14 }
 0x1a3   :  { %v2752_v7 = vsel %vm2240_vm6, %v1436_v5, %v2496_v38  ;;  %v5376_v47 = vpack.c.bf16 %v2882_v36, %v2881_v19  ;;  %v2880_v48 = vsel %vm2368_vm7, %v1948_v1, %v2624_v55  ;;  %v1449_v14 = vadd.f32 %v6847_v63, %v7170_v62  ;;  %v7334_v36 = vld [vmem:[%s7814_s2] ss:$0 sm:$0xff] }
 0x1a4   :  { %v5051_v40 = vpack.c.bf16 %v2752_v7, %v2751_v44  ;;  %vm2245_vm8 = vcmp.ge.f32.partialorder %v1457_v15, 0.0  ;;  %5544 = vst [vmem:[%s7815_s3 + $0x128] sm:$0xff] %v5056_v6   ;;  %v5371_v39 = vpack.c.bf16 %v2880_v48, %v2879_v23  ;;  %v2501_v51 = vmul.f32 0.2, %v1457_v15 }
 0x1a5   :  { %vm2373_vm9 = vcmp.ge.f32.partialorder %v1969_v9, 0.0  ;;  %v2629_v17 = vmul.f32 0.2, %v1969_v9  ;;  %5608 = vst [vmem:[%s7815_s3 + $0x328] sm:$0xff] %v5376_v47   ;;  %v1961_v30 = vadd.f32 %v6847_v63, %v7172_v4  ;;  %v1460_v20 = vadd.f32 %v6847_v63, %v7174_v22  ;;  %v7295_v46 = vpop.f32.mrb[88].mxu0  ;;  %v7297_v4 = vpop.f32.mrb[88].mxu1 }
 0x1a6   :  { %5543 = vst [vmem:[%s7815_s3 + $0x120] sm:$0xff] %v5051_v40   ;;  %v1972_v45 = vadd.f32 %v6847_v63, %v7176_v0  ;;  %5607 = vst [vmem:[%s7815_s3 + $0x320] sm:$0xff] %v5371_v39   ;;  %v2757_v57 = vsel %vm2245_vm8, %v1457_v15, %v2501_v51  ;;  %v1452_v59 = vadd.f32 %v6847_v63, %v7181_v25  ;;  %vm2243_vm10 = vcmp.ge.f32.partialorder %v1449_v14, 0.0  ;;  %v7299_v25 = vpop.f32.mrb[89].mxu0  ;;  %v7301_v18 = vpop.f32.mrb[89].mxu1 }
 0x1a7   :  { %v2885_v32 = vsel %vm2373_vm9, %v1969_v9, %v2629_v17  ;;  %v1964_v62 = vadd.f32 %v6847_v63, %v7197_v37  ;;  %v2499_v22 = vmul.f32 0.2, %v1449_v14  ;;  %vm2371_vm11 = vcmp.ge.f32.partialorder %v1961_v30, 0.0  ;;  %v7303_v11 = vpop.f32.mrb[90].mxu0  ;;  %v7305_v49 = vpop.f32.mrb[90].mxu1 }
 0x1a8   :  { %v2627_v0 = vmul.f32 0.2, %v1961_v30  ;;  %vm2246_vm12 = vcmp.ge.f32.partialorder %v1460_v20, 0.0  ;;  %v2502_v2 = vmul.f32 0.2, %v1460_v20  ;;  %vm2374_vm13 = vcmp.ge.f32.partialorder %v1972_v45, 0.0 }
 0x1a9   :  { %v2630_v3 = vmul.f32 0.2, %v1972_v45  ;;  %v2755_v58 = vsel %vm2243_vm10, %v1449_v14, %v2499_v22  ;;  %vm2244_vm14 = vcmp.ge.f32.partialorder %v1452_v59, 0.0  ;;  %v2500_v10 = vmul.f32 0.2, %v1452_v59  ;;  %v7309_v5 = vpop.f32.mrb[91].mxu0 }
 0x1aa   :  { %v2883_v27 = vsel %vm2371_vm11, %v1961_v30, %v2627_v0  ;;  %v2758_v37 = vsel %vm2246_vm12, %v1460_v20, %v2502_v2  ;;  %vm2372_vm15 = vcmp.ge.f32.partialorder %v1964_v62, 0.0  ;;  %v2628_v43 = vmul.f32 0.2, %v1964_v62  ;;  %v7311_v23 = vpop.f32.mrb[91].mxu1 }
 0x1ab   :  { %v2886_v35 = vsel %vm2374_vm13, %v1972_v45, %v2630_v3  ;;  %v5066_v13 = vpack.c.bf16 %v2758_v37, %v2757_v57  ;;  %v2756_v44 = vsel %vm2244_vm14, %v1452_v59, %v2500_v10  ;;  %v1473_v50 = vadd.f32 %v6847_v63, %v7207_v29 }
 0x1ac   :  { %v5386_v19 = vpack.c.bf16 %v2886_v35, %v2885_v32  ;;  %v5061_v24 = vpack.c.bf16 %v2756_v44, %v2755_v58  ;;  %v2884_v1 = vsel %vm2372_vm15, %v1964_v62, %v2628_v43  ;;  %v1985_v26 = vadd.f32 %v6847_v63, %v7209_v53 }
 0x1ad   :  { %v1465_v38 = vadd.f32 %v6847_v63, %v7211_v56  ;;  %5546 = vst [vmem:[%s7815_s3 + $0x138] sm:$0xff] %v5066_v13   ;;  %v5381_v29 = vpack.c.bf16 %v2884_v1, %v2883_v27  ;;  %vm2249_vm0 = vcmp.ge.f32.partialorder %v1473_v50, 0.0  ;;  %v2505_v31 = vmul.f32 0.2, %v1473_v50  ;;  %v7340_v7 = vpop.f32.mrb[92].mxu1 }
 0x1ae   :  { %5610 = vst [vmem:[%s7815_s3 + $0x338] sm:$0xff] %v5386_v19   ;;  %v1977_v55 = vadd.f32 %v6847_v63, %v7213_v41  ;;  %5545 = vst [vmem:[%s7815_s3 + $0x130] sm:$0xff] %v5061_v24   ;;  %vm2377_vm1 = vcmp.ge.f32.partialorder %v1985_v26, 0.0  ;;  %v2633_v53 = vmul.f32 0.2, %v1985_v26  ;;  %v1476_v63 = vadd.f32 %v7334_v36, %v7217_v54  ;;  %v7338_v41 = vpop.f32.mrb[92].mxu0 }
 0x1af   :  { %vm2247_vm2 = vcmp.ge.f32.partialorder %v1465_v38, 0.0  ;;  %v2503_v56 = vmul.f32 0.2, %v1465_v38  ;;  %5609 = vst [vmem:[%s7815_s3 + $0x330] sm:$0xff] %v5381_v29   ;;  %v2761_v15 = vsel %vm2249_vm0, %v1473_v50, %v2505_v31  ;;  %v1988_v40 = vadd.f32 %v7334_v36, %v7219_v60  ;;  %v7346_v39 = vpop.f32.mrb[93].mxu0  ;;  %v7348_v51 = vpop.f32.mrb[93].mxu1 }
 0x1b0   :  { %vm2375_vm3 = vcmp.ge.f32.partialorder %v1977_v55, 0.0  ;;  %v2631_v6 = vmul.f32 0.2, %v1977_v55  ;;  %v2889_v9 = vsel %vm2377_vm1, %v1985_v26, %v2633_v53  ;;  %v1468_v48 = vadd.f32 %v7334_v36, %v7225_v8  ;;  %v7352_v30 = vpop.f32.mrb[94].mxu0  ;;  %v7354_v20 = vpop.f32.mrb[94].mxu1 }
 0x1b1   :  { %v2759_v47 = vsel %vm2247_vm2, %v1465_v38, %v2503_v56  ;;  %vm2250_vm4 = vcmp.ge.f32.partialorder %v1476_v63, 0.0  ;;  %v2506_v14 = vmul.f32 0.2, %v1476_v63  ;;  %v1980_v54 = vadd.f32 %v7334_v36, %v7227_v61  ;;  %v7358_v59 = vpop.f32.mrb[95].mxu0  ;;  %v7360_v62 = vpop.f32.mrb[95].mxu1 }
 0x1b2   :  { %v2887_v17 = vsel %vm2375_vm3, %v1977_v55, %v2631_v6  ;;  %vm2378_vm5 = vcmp.ge.f32.partialorder %v1988_v40, 0.0  ;;  %v2634_v45 = vmul.f32 0.2, %v1988_v40  ;;  %vm2248_vm6 = vcmp.ge.f32.partialorder %v1468_v48, 0.0 }
 0x1b3   :  { %v2504_v60 = vmul.f32 0.2, %v1468_v48  ;;  %v2762_v57 = vsel %vm2250_vm4, %v1476_v63, %v2506_v14  ;;  %vm2376_vm7 = vcmp.ge.f32.partialorder %v1980_v54, 0.0  ;;  %v2632_v8 = vmul.f32 0.2, %v1980_v54 }
 0x1b4   :  { %v1489_v32 = vadd.f32 %v7334_v36, %v7249_v12  ;;  %v5076_v22 = vpack.c.bf16 %v2762_v57, %v2761_v15  ;;  %v2890_v61 = vsel %vm2378_vm5, %v1988_v40, %v2634_v45  ;;  %v2001_v2 = vadd.f32 %v7334_v36, %v7251_v21 }
 0x1b5   :  { %v2760_v0 = vsel %vm2248_vm6, %v1468_v48, %v2504_v60  ;;  %v5396_v3 = vpack.c.bf16 %v2890_v61, %v2889_v9  ;;  %v2888_v27 = vsel %vm2376_vm7, %v1980_v54, %v2632_v8  ;;  %v7367_v35 = vpop.f32.mrb[96].mxu0  ;;  %v1481_v21 = vadd.f32 %v7334_v36, %v7255_v28  ;;  %v7383_v44 = vpop.f32.mrb[96].mxu1 }
 0x1b6   :  { %v5071_v58 = vpack.c.bf16 %v2760_v0, %v2759_v47  ;;  %vm2253_vm8 = vcmp.ge.f32.partialorder %v1489_v32, 0.0  ;;  %5548 = vst [vmem:[%s7815_s3 + $0x148] sm:$0xff] %v5076_v22   ;;  %v5391_v10 = vpack.c.bf16 %v2888_v27, %v2887_v17  ;;  %v2509_v12 = vmul.f32 0.2, %v1489_v32  ;;  %v7385_v50 = vpop.f32.mrb[97].mxu0  ;;  %v7395_v1 = vpop.f32.mrb[97].mxu1 }
 0x1b7   :  { %vm2381_vm9 = vcmp.ge.f32.partialorder %v2001_v2, 0.0  ;;  %v2637_v37 = vmul.f32 0.2, %v2001_v2  ;;  %5612 = vst [vmem:[%s7815_s3 + $0x348] sm:$0xff] %v5396_v3   ;;  %v1993_v43 = vadd.f32 %v7334_v36, %v7257_v52  ;;  %v1492_v13 = vadd.f32 %v7334_v36, %v7261_v33 }
 0x1b8   :  { %5547 = vst [vmem:[%s7815_s3 + $0x140] sm:$0xff] %v5071_v58   ;;  %v2004_v19 = vadd.f32 %v7334_v36, %v7263_v42  ;;  %5611 = vst [vmem:[%s7815_s3 + $0x340] sm:$0xff] %v5391_v10   ;;  %v2765_v24 = vsel %vm2253_vm8, %v1489_v32, %v2509_v12  ;;  %v1484_v52 = vadd.f32 %v7334_v36, %v7267_v34  ;;  %v7397_v42 = vpop.f32.mrb[98].mxu0  ;;  %vm2251_vm10 = vcmp.ge.f32.partialorder %v1481_v21, 0.0  ;;  %v7399_v34 = vpop.f32.mrb[98].mxu1 }
 0x1b9   :  { %v2893_v28 = vsel %vm2381_vm9, %v2001_v2, %v2637_v37  ;;  %v1996_v33 = vadd.f32 %v7334_v36, %v7269_v16  ;;  %v2507_v26 = vmul.f32 0.2, %v1481_v21  ;;  %vm2379_vm11 = vcmp.ge.f32.partialorder %v1993_v43, 0.0  ;;  %v7401_v15 = vpop.f32.mrb[99].mxu0  ;;  %v7403_v9 = vpop.f32.mrb[99].mxu1 }
 0x1ba   :  { %v2635_v38 = vmul.f32 0.2, %v1993_v43  ;;  %vm2254_vm12 = vcmp.ge.f32.partialorder %v1492_v13, 0.0  ;;  %v2510_v29 = vmul.f32 0.2, %v1492_v13  ;;  %vm2382_vm13 = vcmp.ge.f32.partialorder %v2004_v19, 0.0 }
 0x1bb   :  { %v2638_v31 = vmul.f32 0.2, %v2004_v19  ;;  %v2763_v55 = vsel %vm2251_vm10, %v1481_v21, %v2507_v26  ;;  %vm2252_vm14 = vcmp.ge.f32.partialorder %v1484_v52, 0.0  ;;  %v2508_v56 = vmul.f32 0.2, %v1484_v52 }
 0x1bc   :  { %v2891_v53 = vsel %vm2379_vm11, %v1993_v43, %v2635_v38  ;;  %v2766_v16 = vsel %vm2254_vm12, %v1492_v13, %v2510_v29  ;;  %vm2380_vm15 = vcmp.ge.f32.partialorder %v1996_v33, 0.0  ;;  %v2636_v63 = vmul.f32 0.2, %v1996_v33 }
 0x1bd   :  { %v2894_v6 = vsel %vm2382_vm13, %v2004_v19, %v2638_v31  ;;  %v5086_v47 = vpack.c.bf16 %v2766_v16, %v2765_v24  ;;  %v2764_v48 = vsel %vm2252_vm14, %v1484_v52, %v2508_v56  ;;  %v1505_v17 = vadd.f32 %v7334_v36, %v7295_v46  ;;  %v7411_v57 = vpop.f32.mrb[100].mxu0  ;;  %v7413_v8 = vpop.f32.mrb[100].mxu1 }
 0x1be   :  { %v5406_v40 = vpack.c.bf16 %v2894_v6, %v2893_v28  ;;  %v5081_v14 = vpack.c.bf16 %v2764_v48, %v2763_v55  ;;  %v2892_v54 = vsel %vm2380_vm15, %v1996_v33, %v2636_v63  ;;  %v2017_v45 = vadd.f32 %v7334_v36, %v7297_v4  ;;  %v7423_v22 = vpop.f32.mrb[101].mxu0 }
 0x1bf   :  { %v1497_v60 = vadd.f32 %v7334_v36, %v7299_v25  ;;  %5550 = vst [vmem:[%s7815_s3 + $0x158] sm:$0xff] %v5086_v47   ;;  %v5401_v46 = vpack.c.bf16 %v2892_v54, %v2891_v53  ;;  %vm2257_vm0 = vcmp.ge.f32.partialorder %v1505_v17, 0.0  ;;  %v2513_v32 = vmul.f32 0.2, %v1505_v17  ;;  %v7425_v25 = vpop.f32.mrb[101].mxu1  ;;  %v7435_v58 = vpop.f32.mrb[102].mxu0 }
 0x1c0   :  { %5614 = vst [vmem:[%s7815_s3 + $0x358] sm:$0xff] %v5406_v40   ;;  %v2009_v4 = vadd.f32 %v7334_v36, %v7301_v18  ;;  %5549 = vst [vmem:[%s7815_s3 + $0x150] sm:$0xff] %v5081_v14   ;;  %vm2385_vm1 = vcmp.ge.f32.partialorder %v2017_v45, 0.0  ;;  %v2641_v61 = vmul.f32 0.2, %v2017_v45  ;;  %v1508_v18 = vadd.f32 %v7334_v36, %v7303_v11  ;;  %v7437_v27 = vpop.f32.mrb[102].mxu1 }
 0x1c1   :  { %vm2255_vm2 = vcmp.ge.f32.partialorder %v1497_v60, 0.0  ;;  %v2511_v0 = vmul.f32 0.2, %v1497_v60  ;;  %5613 = vst [vmem:[%s7815_s3 + $0x350] sm:$0xff] %v5401_v46   ;;  %v2769_v2 = vsel %vm2257_vm0, %v1505_v17, %v2513_v32  ;;  %v2020_v37 = vadd.f32 %v7334_v36, %v7305_v49  ;;  %v7443_v43 = vpop.f32.mrb[103].mxu0  ;;  %v7445_v13 = vpop.f32.mrb[103].mxu1 }
 0x1c2   :  { %vm2383_vm3 = vcmp.ge.f32.partialorder %v2009_v4, 0.0  ;;  %v2639_v3 = vmul.f32 0.2, %v2009_v4  ;;  %v2897_v10 = vsel %vm2385_vm1, %v2017_v45, %v2641_v61  ;;  %v1500_v21 = vadd.f32 %v7334_v36, %v7309_v5 }
 0x1c3   :  { %v2767_v12 = vsel %vm2255_vm2, %v1497_v60, %v2511_v0  ;;  %vm2258_vm4 = vcmp.ge.f32.partialorder %v1508_v18, 0.0  ;;  %v2514_v24 = vmul.f32 0.2, %v1508_v18  ;;  %v2012_v11 = vadd.f32 %v7334_v36, %v7311_v23 }
 0x1c4   :  { %v2895_v19 = vsel %vm2383_vm3, %v2009_v4, %v2639_v3  ;;  %vm2386_vm5 = vcmp.ge.f32.partialorder %v2020_v37, 0.0  ;;  %v2642_v28 = vmul.f32 0.2, %v2020_v37  ;;  %vm2256_vm6 = vcmp.ge.f32.partialorder %v1500_v21, 0.0 }
 0x1c5   :  { %v2512_v52 = vmul.f32 0.2, %v1500_v21  ;;  %v2770_v33 = vsel %vm2258_vm4, %v1508_v18, %v2514_v24  ;;  %vm2384_vm7 = vcmp.ge.f32.partialorder %v2012_v11, 0.0  ;;  %v2640_v49 = vmul.f32 0.2, %v2012_v11  ;;  %v7453_v55 = vpop.f32.mrb[104].mxu0 }
 0x1c6   :  { %v1521_v5 = vadd.f32 %v7334_v36, %v7338_v41  ;;  %v5096_v26 = vpack.c.bf16 %v2770_v33, %v2769_v2  ;;  %v2898_v38 = vsel %vm2386_vm5, %v2020_v37, %v2642_v28  ;;  %v2033_v31 = vadd.f32 %v7334_v36, %v7340_v7  ;;  %v7455_v53 = vpop.f32.mrb[104].mxu1  ;;  %v7457_v6 = vpop.f32.mrb[105].mxu0 }
 0x1c7   :  { %v2768_v29 = vsel %vm2256_vm6, %v1500_v21, %v2512_v52  ;;  %v5416_v23 = vpack.c.bf16 %v2898_v38, %v2897_v10  ;;  %v2896_v16 = vsel %vm2384_vm7, %v2012_v11, %v2640_v49  ;;  %v7459_v63 = vpop.f32.mrb[105].mxu1  ;;  %v7464_v40 = vpop.f32.mrb[106].mxu0  ;;  %v1513_v48 = vadd.f32 %v7334_v36, %v7346_v39 }
 0x1c8   :  { %v5091_v56 = vpack.c.bf16 %v2768_v29, %v2767_v12  ;;  %vm2261_vm8 = vcmp.ge.f32.partialorder %v1521_v5, 0.0  ;;  %5552 = vst [vmem:[%s7815_s3 + $0x168] sm:$0xff] %v5096_v26   ;;  %v5411_v41 = vpack.c.bf16 %v2896_v16, %v2895_v19  ;;  %v2517_v47 = vmul.f32 0.2, %v1521_v5  ;;  %v7480_v45 = vpop.f32.mrb[106].mxu1  ;;  %v7482_v60 = vpop.f32.mrb[107].mxu0 }
 0x1c9   :  { %vm2389_vm9 = vcmp.ge.f32.partialorder %v2033_v31, 0.0  ;;  %v2645_v7 = vmul.f32 0.2, %v2033_v31  ;;  %5616 = vst [vmem:[%s7815_s3 + $0x368] sm:$0xff] %v5416_v23   ;;  %v2025_v17 = vadd.f32 %v7334_v36, %v7348_v51  ;;  %v1524_v14 = vadd.f32 %v7334_v36, %v7352_v30  ;;  %v7492_v32 = vpop.f32.mrb[107].mxu1 }
 0x1ca   :  { %5551 = vst [vmem:[%s7815_s3 + $0x160] sm:$0xff] %v5091_v56   ;;  %v2036_v54 = vadd.f32 %v7334_v36, %v7354_v20  ;;  %5615 = vst [vmem:[%s7815_s3 + $0x360] sm:$0xff] %v5411_v41   ;;  %v2773_v46 = vsel %vm2261_vm8, %v1521_v5, %v2517_v47  ;;  %v1516_v51 = vadd.f32 %v7334_v36, %v7358_v59  ;;  %vm2259_vm10 = vcmp.ge.f32.partialorder %v1513_v48, 0.0 }
 0x1cb   :  { %v2901_v39 = vsel %vm2389_vm9, %v2033_v31, %v2645_v7  ;;  %v2028_v30 = vadd.f32 %v7334_v36, %v7360_v62  ;;  %v2515_v20 = vmul.f32 0.2, %v1513_v48  ;;  %vm2387_vm11 = vcmp.ge.f32.partialorder %v2025_v17, 0.0 }
 0x1cc   :  { %v2643_v4 = vmul.f32 0.2, %v2025_v17  ;;  %vm2262_vm12 = vcmp.ge.f32.partialorder %v1524_v14, 0.0  ;;  %v2518_v61 = vmul.f32 0.2, %v1524_v14  ;;  %vm2390_vm13 = vcmp.ge.f32.partialorder %v2036_v54, 0.0 }
 0x1cd   :  { %v2646_v0 = vmul.f32 0.2, %v2036_v54  ;;  %v2771_v2 = vsel %vm2259_vm10, %v1513_v48, %v2515_v20  ;;  %vm2260_vm14 = vcmp.ge.f32.partialorder %v1516_v51, 0.0  ;;  %v2516_v18 = vmul.f32 0.2, %v1516_v51  ;;  %v7494_v37 = vpop.f32.mrb[108].mxu0 }
 0x1ce   :  { %v2899_v3 = vsel %vm2387_vm11, %v2025_v17, %v2643_v4  ;;  %v2774_v10 = vsel %vm2262_vm12, %v1524_v14, %v2518_v61  ;;  %vm2388_vm15 = vcmp.ge.f32.partialorder %v2028_v30, 0.0  ;;  %v2644_v59 = vmul.f32 0.2, %v2028_v30  ;;  %v7498_v11 = vpop.f32.mrb[108].mxu1  ;;  %v7500_v28 = vpop.f32.mrb[109].mxu0 }
 0x1cf   :  { %v2902_v12 = vsel %vm2390_vm13, %v2036_v54, %v2646_v0  ;;  %v5106_v62 = vpack.c.bf16 %v2774_v10, %v2773_v46  ;;  %v2772_v19 = vsel %vm2260_vm14, %v1516_v51, %v2516_v18  ;;  %v1537_v24 = vadd.f32 %v7334_v36, %v7367_v35  ;;  %v7506_v26 = vpop.f32.mrb[109].mxu1  ;;  %v7508_v38 = vpop.f32.mrb[110].mxu0 }
 0x1d0   :  { %v5426_v21 = vpack.c.bf16 %v2902_v12, %v2901_v39  ;;  %v5101_v52 = vpack.c.bf16 %v2772_v19, %v2771_v2  ;;  %v2900_v33 = vsel %vm2388_vm15, %v2028_v30, %v2644_v59  ;;  %v2049_v49 = vadd.f32 %v7334_v36, %v7383_v44  ;;  %v7518_v31 = vpop.f32.mrb[110].mxu1 }
 0x1d1   :  { %v1529_v5 = vadd.f32 %v7334_v36, %v7385_v50  ;;  %5554 = vst [vmem:[%s7815_s3 + $0x178] sm:$0xff] %v5106_v62   ;;  %v5421_v35 = vpack.c.bf16 %v2900_v33, %v2899_v3  ;;  %vm2265_vm0 = vcmp.ge.f32.partialorder %v1537_v24, 0.0  ;;  %v2521_v29 = vmul.f32 0.2, %v1537_v24  ;;  %v7520_v50 = vpop.f32.mrb[111].mxu0  ;;  %v7530_v47 = vpop.f32.mrb[111].mxu1 }
 0x1d2   :  { %5618 = vst [vmem:[%s7815_s3 + $0x378] sm:$0xff] %v5426_v21   ;;  %v2041_v44 = vadd.f32 %v7334_v36, %v7395_v1  ;;  %5553 = vst [vmem:[%s7815_s3 + $0x170] sm:$0xff] %v5101_v52   ;;  %vm2393_vm1 = vcmp.ge.f32.partialorder %v2049_v49, 0.0  ;;  %v2649_v23 = vmul.f32 0.2, %v2049_v49  ;;  %v1540_v1 = vadd.f32 %v7334_v36, %v7397_v42 }
 0x1d3   :  { %vm2263_vm2 = vcmp.ge.f32.partialorder %v1529_v5, 0.0  ;;  %v2519_v56 = vmul.f32 0.2, %v1529_v5  ;;  %5617 = vst [vmem:[%s7815_s3 + $0x370] sm:$0xff] %v5421_v35   ;;  %v2777_v16 = vsel %vm2265_vm0, %v1537_v24, %v2521_v29  ;;  %v2052_v17 = vadd.f32 %v7334_v36, %v7399_v34 }
 0x1d4   :  { %vm2391_vm3 = vcmp.ge.f32.partialorder %v2041_v44, 0.0  ;;  %v2647_v41 = vmul.f32 0.2, %v2041_v44  ;;  %v2905_v7 = vsel %vm2393_vm1, %v2049_v49, %v2649_v23  ;;  %v1532_v14 = vadd.f32 %v7334_v36, %v7401_v15 }
 0x1d5   :  { %v2775_v48 = vsel %vm2263_vm2, %v1529_v5, %v2519_v56  ;;  %vm2266_vm4 = vcmp.ge.f32.partialorder %v1540_v1, 0.0  ;;  %v2522_v46 = vmul.f32 0.2, %v1540_v1  ;;  %v2044_v39 = vadd.f32 %v7334_v36, %v7403_v9  ;;  %v7540_v34 = vpop.f32.mrb[112].mxu0 }
 0x1d6   :  { %v2903_v54 = vsel %vm2391_vm3, %v2041_v44, %v2647_v41  ;;  %vm2394_vm5 = vcmp.ge.f32.partialorder %v2052_v17, 0.0  ;;  %v2650_v51 = vmul.f32 0.2, %v2052_v17  ;;  %vm2264_vm6 = vcmp.ge.f32.partialorder %v1532_v14, 0.0  ;;  %v7542_v61 = vpop.f32.mrb[112].mxu1  ;;  %v7546_v3 = vpop.f32.mrb[113].mxu0 }
 0x1d7   :  { %v2520_v42 = vmul.f32 0.2, %v1532_v14  ;;  %v2778_v30 = vsel %vm2266_vm4, %v1540_v1, %v2522_v46  ;;  %vm2392_vm7 = vcmp.ge.f32.partialorder %v2044_v39, 0.0  ;;  %v2648_v20 = vmul.f32 0.2, %v2044_v39  ;;  %v7548_v18 = vpop.f32.mrb[113].mxu1 }
 0x1d8   :  { %v1553_v4 = vadd.f32 %v7334_v36, %v7411_v57  ;;  %v5116_v15 = vpack.c.bf16 %v2778_v30, %v2777_v16  ;;  %v2906_v0 = vsel %vm2394_vm5, %v2052_v17, %v2650_v51  ;;  %v2065_v9 = vadd.f32 %v7334_v36, %v7413_v8  ;;  %v7550_v62 = vpop.f32.mrb[114].mxu0  ;;  %v7552_v57 = vpop.f32.mrb[114].mxu1 }
 0x1d9   :  { %v2776_v2 = vsel %vm2264_vm6, %v1532_v14, %v2520_v42  ;;  %v5436_v10 = vpack.c.bf16 %v2906_v0, %v2905_v7  ;;  %v2904_v59 = vsel %vm2392_vm7, %v2044_v39, %v2648_v20  ;;  %v7557_v24 = vpop.f32.mrb[115].mxu0  ;;  %v1545_v52 = vadd.f32 %v7334_v36, %v7423_v22  ;;  %v7573_v35 = vpop.f32.mrb[115].mxu1 }
 0x1da   :  { %v5111_v12 = vpack.c.bf16 %v2776_v2, %v2775_v48  ;;  %vm2269_vm8 = vcmp.ge.f32.partialorder %v1553_v4, 0.0  ;;  %5556 = vst [vmem:[%s7815_s3 + $0x188] sm:$0xff] %v5116_v15   ;;  %v5431_v21 = vpack.c.bf16 %v2904_v59, %v2903_v54  ;;  %v2525_v19 = vmul.f32 0.2, %v1553_v4 }
 0x1db   :  { %vm2397_vm9 = vcmp.ge.f32.partialorder %v2065_v9, 0.0  ;;  %v2653_v8 = vmul.f32 0.2, %v2065_v9  ;;  %5620 = vst [vmem:[%s7815_s3 + $0x388] sm:$0xff] %v5436_v10   ;;  %v2057_v33 = vadd.f32 %v7334_v36, %v7425_v25  ;;  %v1556_v49 = vadd.f32 %v7334_v36, %v7435_v58 }
 0x1dc   :  { %5555 = vst [vmem:[%s7815_s3 + $0x180] sm:$0xff] %v5111_v12   ;;  %v2068_v5 = vadd.f32 %v7334_v36, %v7437_v27  ;;  %5619 = vst [vmem:[%s7815_s3 + $0x380] sm:$0xff] %v5431_v21   ;;  %v2781_v29 = vsel %vm2269_vm8, %v1553_v4, %v2525_v19  ;;  %v1548_v22 = vadd.f32 %v7334_v36, %v7443_v43  ;;  %vm2267_vm10 = vcmp.ge.f32.partialorder %v1545_v52, 0.0 }
 0x1dd   :  { %v2909_v44 = vsel %vm2397_vm9, %v2065_v9, %v2653_v8  ;;  %v2060_v25 = vadd.f32 %v7334_v36, %v7445_v13  ;;  %v2523_v58 = vmul.f32 0.2, %v1545_v52  ;;  %vm2395_vm11 = vcmp.ge.f32.partialorder %v2057_v33, 0.0  ;;  %v7583_v7 = vpop.f32.mrb[116].mxu0 }
 0x1de   :  { %v2651_v23 = vmul.f32 0.2, %v2057_v33  ;;  %vm2270_vm12 = vcmp.ge.f32.partialorder %v1556_v49, 0.0  ;;  %v2526_v27 = vmul.f32 0.2, %v1556_v49  ;;  %vm2398_vm13 = vcmp.ge.f32.partialorder %v2068_v5, 0.0 }
 0x1df   :  { %v2654_v56 = vmul.f32 0.2, %v2068_v5  ;;  %v2779_v16 = vsel %vm2267_vm10, %v1545_v52, %v2523_v58  ;;  %vm2268_vm14 = vcmp.ge.f32.partialorder %v1548_v22, 0.0  ;;  %v2524_v1 = vmul.f32 0.2, %v1548_v22  ;;  %v7585_v48 = vpop.f32.mrb[116].mxu1 }
 0x1e0   :  { %v2907_v41 = vsel %vm2395_vm11, %v2057_v33, %v2651_v23  ;;  %v2782_v43 = vsel %vm2270_vm12, %v1556_v49, %v2526_v27  ;;  %vm2396_vm15 = vcmp.ge.f32.partialorder %v2060_v25, 0.0  ;;  %v2652_v13 = vmul.f32 0.2, %v2060_v25  ;;  %v7587_v14 = vpop.f32.mrb[117].mxu0  ;;  %v7589_v54 = vpop.f32.mrb[117].mxu1 }
 0x1e1   :  { %v2910_v17 = vsel %vm2398_vm13, %v2068_v5, %v2654_v56  ;;  %v5126_v46 = vpack.c.bf16 %v2782_v43, %v2781_v29  ;;  %v2780_v51 = vsel %vm2268_vm14, %v1548_v22, %v2524_v1  ;;  %v1569_v42 = vadd.f32 %v7334_v36, %v7453_v55  ;;  %v7593_v30 = vpop.f32.mrb[118].mxu0  ;;  %v7595_v20 = vpop.f32.mrb[118].mxu1 }
 0x1e2   :  { %v5446_v39 = vpack.c.bf16 %v2910_v17, %v2909_v44  ;;  %v5121_v4 = vpack.c.bf16 %v2780_v51, %v2779_v16  ;;  %v2908_v15 = vsel %vm2396_vm15, %v2060_v25, %v2652_v13  ;;  %v2081_v0 = vadd.f32 %v7334_v36, %v7455_v53  ;;  %v7601_v9 = vpop.f32.mrb[119].mxu0  ;;  %v7603_v10 = vpop.f32.mrb[119].mxu1 }
 0x1e3   :  { %v1561_v2 = vadd.f32 %v7334_v36, %v7457_v6  ;;  %5558 = vst [vmem:[%s7815_s3 + $0x198] sm:$0xff] %v5126_v46   ;;  %v5441_v55 = vpack.c.bf16 %v2908_v15, %v2907_v41  ;;  %vm2273_vm0 = vcmp.ge.f32.partialorder %v1569_v42, 0.0  ;;  %v2529_v12 = vmul.f32 0.2, %v1569_v42 }
 0x1e4   :  { %5622 = vst [vmem:[%s7815_s3 + $0x398] sm:$0xff] %v5446_v39   ;;  %v2073_v53 = vadd.f32 %v7334_v36, %v7459_v63  ;;  %5557 = vst [vmem:[%s7815_s3 + $0x190] sm:$0xff] %v5121_v4   ;;  %vm2401_vm1 = vcmp.ge.f32.partialorder %v2081_v0, 0.0  ;;  %v2657_v6 = vmul.f32 0.2, %v2081_v0  ;;  %v1572_v8 = vadd.f32 %v7334_v36, %v7464_v40 }
 0x1e5   :  { %vm2271_vm2 = vcmp.ge.f32.partialorder %v1561_v2, 0.0  ;;  %v2527_v59 = vmul.f32 0.2, %v1561_v2  ;;  %5621 = vst [vmem:[%s7815_s3 + $0x390] sm:$0xff] %v5441_v55   ;;  %v2785_v21 = vsel %vm2273_vm0, %v1569_v42, %v2529_v12  ;;  %v2084_v33 = vadd.f32 %v7334_v36, %v7480_v45  ;;  %v7625_v5 = vpop.f32.mrb[120].mxu0 }
 0x1e6   :  { %vm2399_vm3 = vcmp.ge.f32.partialorder %v2073_v53, 0.0  ;;  %v2655_v19 = vmul.f32 0.2, %v2073_v53  ;;  %v2913_v52 = vsel %vm2401_vm1, %v2081_v0, %v2657_v6  ;;  %v1564_v49 = vadd.f32 %v7334_v36, %v7482_v60  ;;  %v7629_v25 = vpop.f32.mrb[120].mxu1  ;;  %v7631_v58 = vpop.f32.mrb[121].mxu0 }
 0x1e7   :  { %v2783_v63 = vsel %vm2271_vm2, %v1561_v2, %v2527_v59  ;;  %vm2274_vm4 = vcmp.ge.f32.partialorder %v1572_v8, 0.0  ;;  %v2530_v44 = vmul.f32 0.2, %v1572_v8  ;;  %v2076_v22 = vadd.f32 %v7334_v36, %v7492_v32  ;;  %v7635_v56 = vpop.f32.mrb[121].mxu1  ;;  %v7637_v16 = vpop.f32.mrb[122].mxu0 }
 0x1e8   :  { %v2911_v29 = vsel %vm2399_vm3, %v2073_v53, %v2655_v19  ;;  %vm2402_vm5 = vcmp.ge.f32.partialorder %v2084_v33, 0.0  ;;  %v2658_v40 = vmul.f32 0.2, %v2084_v33  ;;  %vm2272_vm6 = vcmp.ge.f32.partialorder %v1564_v49, 0.0  ;;  %v7641_v17 = vpop.f32.mrb[122].mxu1  ;;  %v7643_v13 = vpop.f32.mrb[123].mxu0 }
 0x1e9   :  { %v2528_v23 = vmul.f32 0.2, %v1564_v49  ;;  %v2786_v45 = vsel %vm2274_vm4, %v1572_v8, %v2530_v44  ;;  %vm2400_vm7 = vcmp.ge.f32.partialorder %v2076_v22, 0.0  ;;  %v2656_v27 = vmul.f32 0.2, %v2076_v22  ;;  %v7645_v42 = vpop.f32.mrb[123].mxu1 }
 0x1ea   :  { %v1585_v60 = vadd.f32 %v7334_v36, %v7494_v37  ;;  %v5136_v41 = vpack.c.bf16 %v2786_v45, %v2785_v21  ;;  %v2914_v32 = vsel %vm2402_vm5, %v2084_v33, %v2658_v40  ;;  %v2097_v43 = vadd.f32 %v7334_v36, %v7498_v11 }
 0x1eb   :  { %v2784_v1 = vsel %vm2272_vm6, %v1564_v49, %v2528_v23  ;;  %v5456_v46 = vpack.c.bf16 %v2914_v32, %v2913_v52  ;;  %v2912_v51 = vsel %vm2400_vm7, %v2076_v22, %v2656_v27  ;;  %v1577_v11 = vadd.f32 %v7334_v36, %v7500_v28 }
 0x1ec   :  { %v5131_v39 = vpack.c.bf16 %v2784_v1, %v2783_v63  ;;  %vm2277_vm8 = vcmp.ge.f32.partialorder %v1585_v60, 0.0  ;;  %5560 = vst [vmem:[%s7815_s3 + $0x1a8] sm:$0xff] %v5136_v41   ;;  %v5451_v37 = vpack.c.bf16 %v2912_v51, %v2911_v29  ;;  %v2533_v4 = vmul.f32 0.2, %v1585_v60 }
 0x1ed   :  { %vm2405_vm9 = vcmp.ge.f32.partialorder %v2097_v43, 0.0  ;;  %v2661_v15 = vmul.f32 0.2, %v2097_v43  ;;  %5624 = vst [vmem:[%s7815_s3 + $0x3a8] sm:$0xff] %v5456_v46   ;;  %v2089_v0 = vadd.f32 %v7334_v36, %v7506_v26  ;;  %v1588_v2 = vadd.f32 %v7334_v36, %v7508_v38  ;;  %v7671_v59 = vpop.f32.mrb[124].mxu0 }
 0x1ee   :  { %5559 = vst [vmem:[%s7815_s3 + $0x1a0] sm:$0xff] %v5131_v39   ;;  %v2100_v55 = vadd.f32 %v7334_v36, %v7518_v31  ;;  %5623 = vst [vmem:[%s7815_s3 + $0x3a0] sm:$0xff] %v5451_v37   ;;  %v2789_v12 = vsel %vm2277_vm8, %v1585_v60, %v2533_v4  ;;  %v1580_v6 = vadd.f32 %v7334_v36, %v7520_v50  ;;  %vm2275_vm10 = vcmp.ge.f32.partialorder %v1577_v11, 0.0  ;;  %v7673_v63 = vpop.f32.mrb[124].mxu1  ;;  %v7675_v50 = vpop.f32.mrb[125].mxu0 }
 0x1ef   :  { %v2917_v53 = vsel %vm2405_vm9, %v2097_v43, %v2661_v15  ;;  %v2092_v28 = vadd.f32 %v7334_v36, %v7530_v47  ;;  %v2531_v26 = vmul.f32 0.2, %v1577_v11  ;;  %vm2403_vm11 = vcmp.ge.f32.partialorder %v2089_v0, 0.0  ;;  %v7677_v29 = vpop.f32.mrb[125].mxu1  ;;  %v7679_v44 = vpop.f32.mrb[126].mxu0 }
 0x1f0   :  { %v2659_v38 = vmul.f32 0.2, %v2089_v0  ;;  %vm2278_vm12 = vcmp.ge.f32.partialorder %v1588_v2, 0.0  ;;  %v2534_v31 = vmul.f32 0.2, %v1588_v2  ;;  %vm2406_vm13 = vcmp.ge.f32.partialorder %v2100_v55, 0.0 }
 0x1f1   :  { %v2662_v21 = vmul.f32 0.2, %v2100_v55  ;;  %v2787_v19 = vsel %vm2275_vm10, %v1577_v11, %v2531_v26  ;;  %vm2276_vm14 = vcmp.ge.f32.partialorder %v1580_v6, 0.0  ;;  %v2532_v52 = vmul.f32 0.2, %v1580_v6  ;;  %v7683_v27 = vpop.f32.mrb[126].mxu1 }
 0x1f2   :  { %v2915_v8 = vsel %vm2403_vm11, %v2089_v0, %v2659_v38  ;;  %v2790_v33 = vsel %vm2278_vm12, %v1588_v2, %v2534_v31  ;;  %vm2404_vm15 = vcmp.ge.f32.partialorder %v2092_v28, 0.0  ;;  %v2660_v49 = vmul.f32 0.2, %v2092_v28  ;;  %v7685_v60 = vpop.f32.mrb[127].mxu0  ;;  %v7691_v46 = vpop.f32.mrb[127].mxu1 }
 0x1f3   :  { %v2918_v47 = vsel %vm2406_vm13, %v2100_v55, %v2662_v21  ;;  %v5146_v22 = vpack.c.bf16 %v2790_v33, %v2789_v12  ;;  %v2788_v23 = vsel %vm2276_vm14, %v1580_v6, %v2532_v52  ;;  %v1601_v45 = vadd.f32 %v7334_v36, %v7540_v34 }
 0x1f4   :  { %v5466_v40 = vpack.c.bf16 %v2918_v47, %v2917_v53  ;;  %v5141_v41 = vpack.c.bf16 %v2788_v23, %v2787_v19  ;;  %v2916_v32 = vsel %vm2404_vm15, %v2092_v28, %v2660_v49  ;;  %v2113_v1 = vadd.f32 %v7334_v36, %v7542_v61 }
 0x1f5   :  { %v1593_v43 = vadd.f32 %v7334_v36, %v7546_v3  ;;  %5562 = vst [vmem:[%s7815_s3 + $0x1b8] sm:$0xff] %v5146_v22   ;;  %v5461_v34 = vpack.c.bf16 %v2916_v32, %v2915_v8  ;;  %vm2281_vm0 = vcmp.ge.f32.partialorder %v1601_v45, 0.0  ;;  %v2537_v39 = vmul.f32 0.2, %v1601_v45 }
 0x1f6   :  { %5626 = vst [vmem:[%s7815_s3 + $0x3b8] sm:$0xff] %v5466_v40   ;;  %v2105_v51 = vadd.f32 %v7334_v36, %v7548_v18  ;;  %5561 = vst [vmem:[%s7815_s3 + $0x1b0] sm:$0xff] %v5141_v41   ;;  %vm2409_vm1 = vcmp.ge.f32.partialorder %v2113_v1, 0.0  ;;  %v2665_v61 = vmul.f32 0.2, %v2113_v1  ;;  %v1604_v15 = vadd.f32 %v7334_v36, %v7550_v62 }
 0x1f7   :  { %vm2279_vm2 = vcmp.ge.f32.partialorder %v1593_v43, 0.0  ;;  %v2535_v3 = vmul.f32 0.2, %v1593_v43  ;;  %5625 = vst [vmem:[%s7815_s3 + $0x3b0] sm:$0xff] %v5461_v34   ;;  %v2793_v37 = vsel %vm2281_vm0, %v1601_v45, %v2537_v39  ;;  %v2116_v0 = vadd.f32 %v7334_v36, %v7552_v57 }
 0x1f8   :  { %vm2407_vm3 = vcmp.ge.f32.partialorder %v2105_v51, 0.0  ;;  %v2663_v4 = vmul.f32 0.2, %v2105_v51  ;;  %v2921_v11 = vsel %vm2409_vm1, %v2113_v1, %v2665_v61  ;;  %v1596_v2 = vadd.f32 %v7334_v36, %v7557_v24 }
 0x1f9   :  { %v2791_v18 = vsel %vm2279_vm2, %v1593_v43, %v2535_v3  ;;  %vm2282_vm4 = vcmp.ge.f32.partialorder %v1604_v15, 0.0  ;;  %v2538_v12 = vmul.f32 0.2, %v1604_v15  ;;  %v2108_v53 = vadd.f32 %v7334_v36, %v7573_v35 }
 0x1fa   :  { %v2919_v55 = vsel %vm2407_vm3, %v2105_v51, %v2663_v4  ;;  %vm2410_vm5 = vcmp.ge.f32.partialorder %v2116_v0, 0.0  ;;  %v2666_v6 = vmul.f32 0.2, %v2116_v0  ;;  %vm2280_vm6 = vcmp.ge.f32.partialorder %v1596_v2, 0.0 }
 0x1fb   :  { %v2536_v28 = vmul.f32 0.2, %v1596_v2  ;;  %v2794_v26 = vsel %vm2282_vm4, %v1604_v15, %v2538_v12  ;;  %vm2408_vm7 = vcmp.ge.f32.partialorder %v2108_v53, 0.0  ;;  %v2664_v62 = vmul.f32 0.2, %v2108_v53 }
 0x1fc   :  { %v1617_v38 = vadd.f32 %v7334_v36, %v7583_v7  ;;  %v5156_v57 = vpack.c.bf16 %v2794_v26, %v2793_v37  ;;  %v2922_v31 = vsel %vm2410_vm5, %v2116_v0, %v2666_v6  ;;  %v2129_v24 = vadd.f32 %v7334_v36, %v7585_v48 }
 0x1fd   :  { %v2792_v21 = vsel %vm2280_vm6, %v1596_v2, %v2536_v28  ;;  %v5476_v19 = vpack.c.bf16 %v2922_v31, %v2921_v11  ;;  %v2920_v52 = vsel %vm2408_vm7, %v2108_v53, %v2664_v62  ;;  %v1609_v7 = vadd.f32 %v7334_v36, %v7587_v14 }
 0x1fe   :  { %v5151_v8 = vpack.c.bf16 %v2792_v21, %v2791_v18  ;;  %vm2285_vm8 = vcmp.ge.f32.partialorder %v1617_v38, 0.0  ;;  %5564 = vst [vmem:[%s7815_s3 + $0x1c8] sm:$0xff] %v5156_v57   ;;  %v5471_v35 = vpack.c.bf16 %v2920_v52, %v2919_v55  ;;  %v2541_v33 = vmul.f32 0.2, %v1617_v38 }
 0x1ff   :  { %vm2413_vm9 = vcmp.ge.f32.partialorder %v2129_v24, 0.0  ;;  %v2669_v47 = vmul.f32 0.2, %v2129_v24  ;;  %5628 = vst [vmem:[%s7815_s3 + $0x3c8] sm:$0xff] %v5476_v19   ;;  %v2121_v48 = vadd.f32 %v7334_v36, %v7589_v54  ;;  %v1620_v49 = vadd.f32 %v7334_v36, %v7593_v30 }
 0x200   :  { %5563 = vst [vmem:[%s7815_s3 + $0x1c0] sm:$0xff] %v5151_v8   ;;  %v2132_v22 = vadd.f32 %v7334_v36, %v7595_v20  ;;  %5627 = vst [vmem:[%s7815_s3 + $0x3c0] sm:$0xff] %v5471_v35   ;;  %v2797_v40 = vsel %vm2285_vm8, %v1617_v38, %v2541_v33  ;;  %v1612_v45 = vadd.f32 %v7334_v36, %v7601_v9  ;;  %vm2283_vm10 = vcmp.ge.f32.partialorder %v1609_v7, 0.0 }
 0x201   :  { %v2925_v23 = vsel %vm2413_vm9, %v2129_v24, %v2669_v47  ;;  %v2124_v14 = vadd.f32 %v7334_v36, %v7603_v10  ;;  %v2539_v54 = vmul.f32 0.2, %v1609_v7  ;;  %vm2411_vm11 = vcmp.ge.f32.partialorder %v2121_v48, 0.0 }
 0x202   :  { %v2667_v41 = vmul.f32 0.2, %v2121_v48  ;;  %vm2286_vm12 = vcmp.ge.f32.partialorder %v1620_v49, 0.0  ;;  %v2542_v30 = vmul.f32 0.2, %v1620_v49  ;;  %vm2414_vm13 = vcmp.ge.f32.partialorder %v2132_v22, 0.0 }
 0x203   :  { %v2670_v20 = vmul.f32 0.2, %v2132_v22  ;;  %v2795_v32 = vsel %vm2283_vm10, %v1609_v7, %v2539_v54  ;;  %vm2284_vm14 = vcmp.ge.f32.partialorder %v1612_v45, 0.0  ;;  %v2540_v43 = vmul.f32 0.2, %v1612_v45 }
 0x204   :  { %v2923_v1 = vsel %vm2411_vm11, %v2121_v48, %v2667_v41  ;;  %v2798_v34 = vsel %vm2286_vm12, %v1620_v49, %v2542_v30  ;;  %vm2412_vm15 = vcmp.ge.f32.partialorder %v2124_v14, 0.0  ;;  %v2668_v51 = vmul.f32 0.2, %v2124_v14 }
 0x205   :  { %v2926_v39 = vsel %vm2414_vm13, %v2132_v22, %v2670_v20  ;;  %v5166_v9 = vpack.c.bf16 %v2798_v34, %v2797_v40  ;;  %v2796_v3 = vsel %vm2284_vm14, %v1612_v45, %v2540_v43  ;;  %v1633_v10 = vadd.f32 %v7334_v36, %v7625_v5 }
 0x206   :  { %v5486_v61 = vpack.c.bf16 %v2926_v39, %v2925_v23  ;;  %v5161_v37 = vpack.c.bf16 %v2796_v3, %v2795_v32  ;;  %v2924_v4 = vsel %vm2412_vm15, %v2124_v14, %v2668_v51  ;;  %v2145_v15 = vadd.f32 %v7334_v36, %v7629_v25 }
 0x207   :  { %v1625_v11 = vadd.f32 %v7334_v36, %v7631_v58  ;;  %5566 = vst [vmem:[%s7815_s3 + $0x1d8] sm:$0xff] %v5166_v9   ;;  %v5481_v18 = vpack.c.bf16 %v2924_v4, %v2923_v1  ;;  %vm2289_vm0 = vcmp.ge.f32.partialorder %v1633_v10, 0.0  ;;  %v2545_v0 = vmul.f32 0.2, %v1633_v10 }
 0x208   :  { %5630 = vst [vmem:[%s7815_s3 + $0x3d8] sm:$0xff] %v5486_v61   ;;  %v2137_v5 = vadd.f32 %v7334_v36, %v7635_v56  ;;  %5565 = vst [vmem:[%s7815_s3 + $0x1d0] sm:$0xff] %v5161_v37   ;;  %vm2417_vm1 = vcmp.ge.f32.partialorder %v2145_v15, 0.0  ;;  %v2673_v25 = vmul.f32 0.2, %v2145_v15  ;;  %v1636_v55 = vadd.f32 %v7334_v36, %v7637_v16 }
 0x209   :  { %vm2287_vm2 = vcmp.ge.f32.partialorder %v1625_v11, 0.0  ;;  %v2543_v58 = vmul.f32 0.2, %v1625_v11  ;;  %5629 = vst [vmem:[%s7815_s3 + $0x3d0] sm:$0xff] %v5481_v18   ;;  %v2801_v2 = vsel %vm2289_vm0, %v1633_v10, %v2545_v0  ;;  %v2148_v56 = vadd.f32 %v7334_v36, %v7641_v17 }
 0x20a   :  { %vm2415_vm3 = vcmp.ge.f32.partialorder %v2137_v5, 0.0  ;;  %v2929_v12 = vsel %vm2417_vm1, %v2145_v15, %v2673_v25  ;;  %v2671_v53 = vmul.f32 0.2, %v2137_v5  ;;  %v1628_v6 = vadd.f32 %v7334_v36, %v7643_v13 }
 0x20b   :  { %v2799_v28 = vsel %vm2287_vm2, %v1625_v11, %v2543_v58  ;;  %vm2290_vm4 = vcmp.ge.f32.partialorder %v1636_v55, 0.0  ;;  %v2546_v26 = vmul.f32 0.2, %v1636_v55  ;;  %v2140_v62 = vadd.f32 %v7334_v36, %v7645_v42 }
 0x20c   :  { %vm2418_vm5 = vcmp.ge.f32.partialorder %v2148_v56, 0.0  ;;  %v2674_v38 = vmul.f32 0.2, %v2148_v56  ;;  %vm2288_vm6 = vcmp.ge.f32.partialorder %v1628_v6, 0.0  ;;  %v2544_v57 = vmul.f32 0.2, %v1628_v6 }
 0x20d   :  { %v2802_v31 = vsel %vm2290_vm4, %v1636_v55, %v2546_v26  ;;  %vm2416_vm7 = vcmp.ge.f32.partialorder %v2140_v62, 0.0  ;;  %v2672_v16 = vmul.f32 0.2, %v2140_v62  ;;  %v1649_v21 = vadd.f32 %v7334_v36, %v7671_v59 }
 0x20e   :  { %v5176_v17 = vpack.c.bf16 %v2802_v31, %v2801_v2  ;;  %v2930_v24 = vsel %vm2418_vm5, %v2148_v56, %v2674_v38  ;;  %v2800_v19 = vsel %vm2288_vm6, %v1628_v6, %v2544_v57  ;;  %v2161_v13 = vadd.f32 %v7334_v36, %v7673_v63 }
 0x20f   :  { %v2927_v8 = vsel %vm2415_vm3, %v2137_v5, %v2671_v53  ;;  %v5496_v52 = vpack.c.bf16 %v2930_v24, %v2929_v12  ;;  %v5171_v42 = vpack.c.bf16 %v2800_v19, %v2799_v28  ;;  %v2928_v35 = vsel %vm2416_vm7, %v2140_v62, %v2672_v16 }
 0x210   :  { %5568 = vst [vmem:[%s7815_s3 + $0x1e8] sm:$0xff] %v5176_v17   ;;  %v5491_v33 = vpack.c.bf16 %v2928_v35, %v2927_v8  ;;  %vm2293_vm8 = vcmp.ge.f32.partialorder %v1649_v21, 0.0  ;;  %v2549_v47 = vmul.f32 0.2, %v1649_v21  ;;  %v2677_v7 = vmul.f32 0.2, %v2161_v13 }
 0x211   :  { %5632 = vst [vmem:[%s7815_s3 + $0x3e8] sm:$0xff] %v5496_v52   ;;  %5567 = vst [vmem:[%s7815_s3 + $0x1e0] sm:$0xff] %v5171_v42   ;;  %v1641_v59 = vadd.f32 %v7334_v36, %v7675_v50  ;;  %v2153_v63 = vadd.f32 %v7334_v36, %v7677_v29  ;;  %v1652_v48 = vadd.f32 %v7334_v36, %v7679_v44  ;;  %vm2421_vm9 = vcmp.ge.f32.partialorder %v2161_v13, 0.0 }
 0x212   :  { %v2164_v49 = vadd.f32 %v7334_v36, %v7683_v27  ;;  %5631 = vst [vmem:[%s7815_s3 + $0x3e0] sm:$0xff] %v5491_v33   ;;  %v1644_v22 = vadd.f32 %v7334_v36, %v7685_v60  ;;  %v2156_v50 = vadd.f32 %v7334_v36, %v7691_v46  ;;  %v2805_v40 = vsel %vm2293_vm8, %v1649_v21, %v2549_v47 }
 0x213   :  { %vm2291_vm10 = vcmp.ge.f32.partialorder %v1641_v59, 0.0  ;;  %v2547_v29 = vmul.f32 0.2, %v1641_v59  ;;  %v2675_v23 = vmul.f32 0.2, %v2153_v63  ;;  %vm2294_vm11 = vcmp.ge.f32.partialorder %v1652_v48, 0.0 }
 0x214   :  { %v2550_v44 = vmul.f32 0.2, %v1652_v48  ;;  %vm2422_vm12 = vcmp.ge.f32.partialorder %v2164_v49, 0.0  ;;  %v2678_v45 = vmul.f32 0.2, %v2164_v49  ;;  %v2933_v27 = vsel %vm2421_vm9, %v2161_v13, %v2677_v7 }
 0x215   :  { %vm2419_vm13 = vcmp.ge.f32.partialorder %v2153_v63, 0.0  ;;  %vm2292_vm14 = vcmp.ge.f32.partialorder %v1644_v22, 0.0  ;;  %v2548_v14 = vmul.f32 0.2, %v1644_v22  ;;  %vm2420_vm15 = vcmp.ge.f32.partialorder %v2156_v50, 0.0 }
 0x216   :  { %v2806_v54 = vsel %vm2294_vm11, %v1652_v48, %v2550_v44  ;;  %v2934_v41 = vsel %vm2422_vm12, %v2164_v49, %v2678_v45  ;;  %v2676_v30 = vmul.f32 0.2, %v2156_v50  ;;  %v2803_v60 = vsel %vm2291_vm10, %v1641_v59, %v2547_v29 }
 0x217   :  { %v5186_v20 = vpack.c.bf16 %v2806_v54, %v2805_v40  ;;  %v5506_v32 = vpack.c.bf16 %v2934_v41, %v2933_v27  ;;  %v2804_v36 = vsel %vm2292_vm14, %v1644_v22, %v2548_v14  ;;  %v2931_v46 = vsel %vm2419_vm13, %v2153_v63, %v2675_v23 }
 0x218   :  { %v5181_v1 = vpack.c.bf16 %v2804_v36, %v2803_v60  ;;  %v2932_v43 = vsel %vm2420_vm15, %v2156_v50, %v2676_v30 }
 0x219   :  { %5570 = vst [vmem:[%s7815_s3 + $0x1f8] sm:$0xff] %v5186_v20   ;;  %5634 = vst [vmem:[%s7815_s3 + $0x3f8] sm:$0xff] %v5506_v32   ;;  %v5501_v34 = vpack.c.bf16 %v2932_v43, %v2931_v46 }
 0x21a   :  { %5569 = vst [vmem:[%s7815_s3 + $0x1f0] sm:$0xff] %v5181_v1  }
 0x21b   :  { %5633 = vst [vmem:[%s7815_s3 + $0x3f0] sm:$0xff] %v5501_v34  }

// kernel: discriminator_forward.5
= control target key start
LH: loop header
LB: loop body
LE: loop exit
PB: predicated region body
PF: predicated region fallthrough
CT: control target
= control target key end

     0   :  { %v2984_v40 = vmov 0.0   ;;  %s4753_s1 = inlined_call_operand.vmem [shape: bf16[128,128], index: 1, kind: input, shape index: {}]   ;;  %s4754_s0 = inlined_call_operand.vmem [shape: bf16[512,128], index: 0, kind: input, shape index: {}]   ;;  %s4755_s2 = inlined_call_operand.vmem [shape: f32[1,128], index: 2, kind: input, shape index: {}]   ;;  %s4756_s3 = inlined_call_operand.vmem [shape: f32[1,128], index: 3, kind: input, shape index: {}]   ;;  %s4757_s4 = inlined_call_operand.vmem [shape: bf16[512,128], index: 4, kind: output, shape index: {}]  }
   0x1   :  { %v2942_v0 = vld [vmem:[%s4753_s1] sm:$0xff]   ;;  %v2943_v1 = vld [vmem:[%s4753_s1 + $0x8] sm:$0xff]   ;;  %v2944_v2 = vld [vmem:[%s4753_s1 + $0x10] sm:$0xff]   ;;  %631 = vst [vmem:[#allocation2] sm:$0x1] %v2984_v40 }
   0x2   :  { %2845 = vmatprep.subr.bf16.mxu0 %v2942_v0  ;;  %2925 = vmatprep.subr.bf16.mxu1 %v2942_v0  ;;  %v2945_v3 = vld [vmem:[%s4753_s1 + $0x18] sm:$0xff]   ;;  %v2950_v4 = vld [vmem:[%s4754_s0] sm:$0xff]   ;;  %v2947_v6 = vld [vmem:[%s4753_s1 + $0x28] sm:$0xff]   ;;  %632 = vst [vmem:[#allocation3] sm:$0x1] %v2984_v40 }
   0x3   :  { %2846 = vmatpush3.bf16.msra.mxu0 %v2942_v0  ;;  %2933 = vmatpush3.bf16.msra.mxu1 %v2942_v0  ;;  %v2946_v5 = vld [vmem:[%s4753_s1 + $0x20] sm:$0xff]   ;;  %v2948_v7 = vld [vmem:[%s4753_s1 + $0x30] sm:$0xff]   ;;  %v2949_v8 = vld [vmem:[%s4753_s1 + $0x38] sm:$0xff]  }
   0x4   :  { %2847 = vmatprep.subr.bf16.mxu0 %v2943_v1  ;;  %2926 = vmatprep.subr.bf16.mxu1 %v2943_v1  ;;  %v2966_v9 = vld [vmem:[%s4754_s0 + $0x80] sm:$0xff]   ;;  %v2951_v10 = vld [vmem:[%s4754_s0 + $0x8] sm:$0xff]   ;;  %v2952_v11 = vld [vmem:[%s4754_s0 + $0x10] sm:$0xff]  }
   0x5   :  { %2861 = vmatprep.mubr.bf16.mxu0 %v2950_v4  ;;  %2893 = vmatprep.mubr.bf16.mxu1 %v2966_v9  ;;  %v2967_v12 = vld [vmem:[%s4754_s0 + $0x88] sm:$0xff]   ;;  %v2968_v13 = vld [vmem:[%s4754_s0 + $0x90] sm:$0xff]   ;;  %v2953_v14 = vld [vmem:[%s4754_s0 + $0x18] sm:$0xff]  }
   0x6   :  { %v2954_v15 = vld [vmem:[%s4754_s0 + $0x20] sm:$0xff]   ;;  %v2969_v16 = vld [vmem:[%s4754_s0 + $0x98] sm:$0xff]   ;;  %v2955_v18 = vld [vmem:[%s4754_s0 + $0x28] sm:$0xff]  }
   0x7   :  { %2848 = vmatpush3.bf16.msra.mxu0 %v2943_v1  ;;  %2934 = vmatpush3.bf16.msra.mxu1 %v2943_v1  ;;  %v2970_v17 = vld [vmem:[%s4754_s0 + $0xa0] sm:$0xff]   ;;  %v2971_v19 = vld [vmem:[%s4754_s0 + $0xa8] sm:$0xff]   ;;  %v2956_v20 = vld [vmem:[%s4754_s0 + $0x30] sm:$0xff]  }
   0x8   :  { %2849 = vmatprep.subr.bf16.mxu0 %v2944_v2  ;;  %2927 = vmatprep.subr.bf16.mxu1 %v2944_v2  ;;  %v2972_v21 = vld [vmem:[%s4754_s0 + $0xb0] sm:$0xff]   ;;  %v2957_v22 = vld [vmem:[%s4754_s0 + $0x38] sm:$0xff]   ;;  %v2958_v24 = vld [vmem:[%s4754_s0 + $0x40] sm:$0xff]  }
   0x9   :  { %v2973_v23 = vld [vmem:[%s4754_s0 + $0xb8] sm:$0xff]   ;;  %v2974_v25 = vld [vmem:[%s4754_s0 + $0xc0] sm:$0xff]   ;;  %v2959_v26 = vld [vmem:[%s4754_s0 + $0x48] sm:$0xff]  }
   0xa   :  { %v2975_v27 = vld [vmem:[%s4754_s0 + $0xc8] sm:$0xff]   ;;  %v2960_v28 = vld [vmem:[%s4754_s0 + $0x50] sm:$0xff]   ;;  %v2961_v30 = vld [vmem:[%s4754_s0 + $0x58] sm:$0xff]  }
   0xb   :  { %2850 = vmatpush3.bf16.msra.mxu0 %v2944_v2  ;;  %2935 = vmatpush3.bf16.msra.mxu1 %v2944_v2  ;;  %v2976_v29 = vld [vmem:[%s4754_s0 + $0xd0] sm:$0xff]   ;;  %v2977_v31 = vld [vmem:[%s4754_s0 + $0xd8] sm:$0xff]   ;;  %v2962_v32 = vld [vmem:[%s4754_s0 + $0x60] sm:$0xff]  }
   0xc   :  { %2851 = vmatprep.subr.bf16.mxu0 %v2945_v3  ;;  %2928 = vmatprep.subr.bf16.mxu1 %v2945_v3  ;;  %v2978_v33 = vld [vmem:[%s4754_s0 + $0xe0] sm:$0xff]   ;;  %v2963_v34 = vld [vmem:[%s4754_s0 + $0x68] sm:$0xff]   ;;  %v2964_v36 = vld [vmem:[%s4754_s0 + $0x70] sm:$0xff]  }
   0xd   :  { %v2979_v35 = vld [vmem:[%s4754_s0 + $0xe8] sm:$0xff]   ;;  %v2980_v37 = vld [vmem:[%s4754_s0 + $0xf0] sm:$0xff]   ;;  %v2965_v38 = vld [vmem:[%s4754_s0 + $0x78] sm:$0xff]  }
   0xe   :  { %v2981_v39 = vld [vmem:[%s4754_s0 + $0xf8] sm:$0xff]  }
   0xf   :  { %2852 = vmatpush3.bf16.msra.mxu0 %v2945_v3  ;;  %2936 = vmatpush3.bf16.msra.mxu1 %v2945_v3 }
  0x10   :  { %2853 = vmatprep.subr.bf16.mxu0 %v2946_v5  ;;  %2929 = vmatprep.subr.bf16.mxu1 %v2946_v5 }
  0x13   :  { %2854 = vmatpush3.bf16.msra.mxu0 %v2946_v5  ;;  %2937 = vmatpush3.bf16.msra.mxu1 %v2946_v5 }
  0x14   :  { %2855 = vmatprep.subr.bf16.mxu0 %v2947_v6  ;;  %2930 = vmatprep.subr.bf16.mxu1 %v2947_v6 }
  0x17   :  { %2856 = vmatpush3.bf16.msra.mxu0 %v2947_v6  ;;  %2938 = vmatpush3.bf16.msra.mxu1 %v2947_v6 }
  0x18   :  { %2857 = vmatprep.subr.bf16.mxu0 %v2948_v7  ;;  %2931 = vmatprep.subr.bf16.mxu1 %v2948_v7 }
  0x1b   :  { %2858 = vmatpush3.bf16.msra.mxu0 %v2948_v7  ;;  %2939 = vmatpush3.bf16.msra.mxu1 %v2948_v7 }
  0x1c   :  { %2859 = vmatprep.subr.bf16.mxu0 %v2949_v8  ;;  %2932 = vmatprep.subr.bf16.mxu1 %v2949_v8 }
  0x1f   :  { %2860 = vmatpush3.bf16.msra.mxu0 %v2949_v8  ;;  %2940 = vmatpush3.bf16.msra.mxu1 %v2949_v8 }
  0x22   :  { %2862 = vmatmul.mubr.bf16.vlgmr.msra.gmra.mrb[0].mxu0 %v2951_v10  ;;  %2894 = vmatmul.mubr.bf16.vlgmr.msra.gmra.mrb[0].mxu1 %v2967_v12 }
  0x23   :  { %2865 = vmatprep.mubr.bf16.mxu0 %v2952_v11  ;;  %2897 = vmatprep.mubr.bf16.mxu1 %v2968_v13 }
  0x2a   :  { %2866 = vmatmul.mubr.bf16.gmra.mrb[4].mxu0 %v2953_v14  ;;  %2898 = vmatmul.mubr.bf16.gmra.mrb[4].mxu1 %v2969_v16 }
  0x2b   :  { %2869 = vmatprep.mubr.bf16.mxu0 %v2954_v15  ;;  %2901 = vmatprep.mubr.bf16.mxu1 %v2970_v17 }
  0x32   :  { %2870 = vmatmul.mubr.bf16.gmra.mrb[8].mxu0 %v2955_v18  ;;  %2902 = vmatmul.mubr.bf16.gmra.mrb[8].mxu1 %v2971_v19 }
  0x33   :  { %2873 = vmatprep.mubr.bf16.mxu0 %v2956_v20  ;;  %2905 = vmatprep.mubr.bf16.mxu1 %v2972_v21 }
  0x3a   :  { %2874 = vmatmul.mubr.bf16.gmra.mrb[12].mxu0 %v2957_v22  ;;  %2906 = vmatmul.mubr.bf16.gmra.mrb[12].mxu1 %v2973_v23 }
  0x3b   :  { %2877 = vmatprep.mubr.bf16.mxu0 %v2958_v24  ;;  %2909 = vmatprep.mubr.bf16.mxu1 %v2974_v25 }
  0x42   :  { %2878 = vmatmul.mubr.bf16.gmra.mrb[16].mxu0 %v2959_v26  ;;  %2910 = vmatmul.mubr.bf16.gmra.mrb[16].mxu1 %v2975_v27 }
  0x43   :  { %2881 = vmatprep.mubr.bf16.mxu0 %v2960_v28  ;;  %2913 = vmatprep.mubr.bf16.mxu1 %v2976_v29 }
  0x4a   :  { %2882 = vmatmul.mubr.bf16.gmra.mrb[20].mxu0 %v2961_v30  ;;  %2914 = vmatmul.mubr.bf16.gmra.mrb[20].mxu1 %v2977_v31 }
  0x4b   :  { %2885 = vmatprep.mubr.bf16.mxu0 %v2962_v32  ;;  %2917 = vmatprep.mubr.bf16.mxu1 %v2978_v33 }
  0x52   :  { %2886 = vmatmul.mubr.bf16.gmra.mrb[24].mxu0 %v2963_v34  ;;  %2918 = vmatmul.mubr.bf16.gmra.mrb[24].mxu1 %v2979_v35 }
  0x53   :  { %2889 = vmatprep.mubr.bf16.mxu0 %v2964_v36  ;;  %2921 = vmatprep.mubr.bf16.mxu1 %v2980_v37 }
  0x5a   :  { %2890 = vmatmul.mubr.bf16.gmra.mrb[28].mxu0 %v2965_v38  ;;  %2922 = vmatmul.mubr.bf16.gmra.mrb[28].mxu1 %v2981_v39 }
  0xf5   :  { %v2863_v41 = vpop.f32.mrb[0].mxu0  ;;  %v3130_v42 = vpop.f32.mrb[0].mxu1 }
  0xf6   :  { %v372_v43 = vpop.f32.mrb[1].mxu0  ;;  %v3132_v44 = vpop.f32.mrb[1].mxu1  ;;  %v708_v55 = vmul.f32 %v2863_v41, %v2863_v41 }
  0xf7   :  { %v2864_v45 = vpop.f32.mrb[2].mxu0  ;;  %v3134_v46 = vpop.f32.mrb[2].mxu1  ;;  %v706_v51 = vmul.f32 %v372_v43, %v372_v43 }
  0xf8   :  { %v3136_v47 = vpack.c.bf16 %v2864_v45, %v2863_v41  ;;  %v375_v48 = vpop.f32.mrb[3].mxu0  ;;  %v3140_v49 = vpack.c.bf16 %v3134_v46, %v3130_v42  ;;  %v3142_v50 = vpop.f32.mrb[3].mxu1  ;;  %v709_v59 = vmul.f32 %v2864_v45, %v2864_v45 }
  0xf9   :  { %v634_v52 = vadd.f32 %v375_v48, %v372_v43  ;;  %v707_v53 = vmul.f32 %v375_v48, %v375_v48  ;;  %v3144_v54 = vpack.c.bf16 %v375_v48, %v372_v43  ;;  %v3148_v58 = vpack.c.bf16 %v3142_v50, %v3132_v44 }
  0xfb   :  { %v635_v56 = vadd.f32 %v2863_v41, %v634_v52  ;;  %v770_v57 = vadd.f32 %v707_v53, %v706_v51 }
  0xfd   :  { %v771_v60 = vadd.f32 %v770_v57, %v708_v55  ;;  %v2867_v61 = vpop.f32.mrb[4].mxu0  ;;  %v636_v62 = vadd.f32 %v2864_v45, %v635_v56  ;;  %v3150_v63 = vpop.f32.mrb[4].mxu1 }
  0xfe   :  { %v388_v0 = vpop.f32.mrb[5].mxu0  ;;  %v3152_v1 = vpop.f32.mrb[5].mxu1  ;;  %v712_v15 = vmul.f32 %v2867_v61, %v2867_v61 }
  0xff   :  { %v637_v2 = vadd.f32 %v636_v62, %v388_v0  ;;  %v710_v3 = vmul.f32 %v388_v0, %v388_v0  ;;  %v772_v4 = vadd.f32 %v771_v60, %v709_v59  ;;  %v2868_v5 = vpop.f32.mrb[6].mxu0  ;;  %v3154_v6 = vpop.f32.mrb[6].mxu1 }
 0x100   :  { %v3156_v7 = vpack.c.bf16 %v2868_v5, %v2867_v61  ;;  %v391_v8 = vpop.f32.mrb[7].mxu0  ;;  %v3160_v9 = vpack.c.bf16 %v3154_v6, %v3150_v63  ;;  %v3162_v10 = vpop.f32.mrb[7].mxu1  ;;  %v713_v19 = vmul.f32 %v2868_v5, %v2868_v5 }
 0x101   :  { %v773_v11 = vadd.f32 %v772_v4, %v710_v3  ;;  %v638_v12 = vadd.f32 %v637_v2, %v391_v8  ;;  %v711_v13 = vmul.f32 %v391_v8, %v391_v8  ;;  %v3164_v14 = vpack.c.bf16 %v391_v8, %v388_v0 }
 0x102   :  { %v3168_v18 = vpack.c.bf16 %v3162_v10, %v3152_v1 }
 0x103   :  { %v639_v16 = vadd.f32 %v2867_v61, %v638_v12  ;;  %v774_v17 = vadd.f32 %v773_v11, %v711_v13 }
 0x105   :  { %v775_v20 = vadd.f32 %v774_v17, %v712_v15  ;;  %v2871_v21 = vpop.f32.mrb[8].mxu0  ;;  %v640_v22 = vadd.f32 %v2868_v5, %v639_v16  ;;  %v3170_v23 = vpop.f32.mrb[8].mxu1 }
 0x106   :  { %v404_v24 = vpop.f32.mrb[9].mxu0  ;;  %v3172_v25 = vpop.f32.mrb[9].mxu1  ;;  %v716_v39 = vmul.f32 %v2871_v21, %v2871_v21 }
 0x107   :  { %v641_v26 = vadd.f32 %v640_v22, %v404_v24  ;;  %v714_v27 = vmul.f32 %v404_v24, %v404_v24  ;;  %v776_v28 = vadd.f32 %v775_v20, %v713_v19  ;;  %v2872_v29 = vpop.f32.mrb[10].mxu0  ;;  %v3174_v30 = vpop.f32.mrb[10].mxu1 }
 0x108   :  { %v3176_v31 = vpack.c.bf16 %v2872_v29, %v2871_v21  ;;  %v407_v32 = vpop.f32.mrb[11].mxu0  ;;  %v3180_v33 = vpack.c.bf16 %v3174_v30, %v3170_v23  ;;  %v3182_v34 = vpop.f32.mrb[11].mxu1  ;;  %v717_v45 = vmul.f32 %v2872_v29, %v2872_v29 }
 0x109   :  { %v777_v35 = vadd.f32 %v776_v28, %v714_v27  ;;  %v642_v36 = vadd.f32 %v641_v26, %v407_v32  ;;  %v715_v37 = vmul.f32 %v407_v32, %v407_v32  ;;  %v3184_v38 = vpack.c.bf16 %v407_v32, %v404_v24 }
 0x10a   :  { %v3188_v43 = vpack.c.bf16 %v3182_v34, %v3172_v25 }
 0x10b   :  { %v643_v40 = vadd.f32 %v2871_v21, %v642_v36  ;;  %v778_v41 = vadd.f32 %v777_v35, %v715_v37 }
 0x10c   :  { %4809 = vst [vmem:[#allocation4_spill] sm:$0xff] %v3188_v43 }
 0x10d   :  { %v779_v48 = vadd.f32 %v778_v41, %v716_v39  ;;  %v2875_v51 = vpop.f32.mrb[12].mxu0  ;;  %v644_v52 = vadd.f32 %v2872_v29, %v643_v40  ;;  %v3190_v53 = vpop.f32.mrb[12].mxu1 }
 0x10e   :  { %v420_v55 = vpop.f32.mrb[13].mxu0  ;;  %v3192_v56 = vpop.f32.mrb[13].mxu1  ;;  %v720_v13 = vmul.f32 %v2875_v51, %v2875_v51 }
 0x10f   :  { %v645_v57 = vadd.f32 %v644_v52, %v420_v55  ;;  %v718_v59 = vmul.f32 %v420_v55, %v420_v55  ;;  %v780_v60 = vadd.f32 %v779_v48, %v717_v45  ;;  %v2876_v61 = vpop.f32.mrb[14].mxu0  ;;  %v3194_v62 = vpop.f32.mrb[14].mxu1 }
 0x110   :  { %v3196_v0 = vpack.c.bf16 %v2876_v61, %v2875_v51  ;;  %v423_v2 = vpop.f32.mrb[15].mxu0  ;;  %v3200_v3 = vpack.c.bf16 %v3194_v62, %v3190_v53  ;;  %v3202_v4 = vpop.f32.mrb[15].mxu1  ;;  %v721_v19 = vmul.f32 %v2876_v61, %v2876_v61 }
 0x111   :  { %v781_v5 = vadd.f32 %v780_v60, %v718_v59  ;;  %v646_v8 = vadd.f32 %v645_v57, %v423_v2  ;;  %v719_v11 = vmul.f32 %v423_v2, %v423_v2  ;;  %v3204_v12 = vpack.c.bf16 %v423_v2, %v420_v55 }
 0x112   :  { %4810 = vst [vmem:[#allocation5_spill] sm:$0xff] %v3200_v3  ;;  %v3208_v17 = vpack.c.bf16 %v3202_v4, %v3192_v56 }
 0x113   :  { %4811 = vst [vmem:[#allocation6_spill] sm:$0xff] %v3204_v12  ;;  %v647_v15 = vadd.f32 %v2875_v51, %v646_v8  ;;  %v782_v16 = vadd.f32 %v781_v5, %v719_v11 }
 0x114   :  { %4812 = vst [vmem:[#allocation7_spill] sm:$0xff] %v3208_v17 }
 0x115   :  { %v783_v20 = vadd.f32 %v782_v16, %v720_v13  ;;  %v2879_v21 = vpop.f32.mrb[16].mxu0  ;;  %v648_v22 = vadd.f32 %v2876_v61, %v647_v15  ;;  %v3210_v24 = vpop.f32.mrb[16].mxu1 }
 0x116   :  { %v436_v26 = vpop.f32.mrb[17].mxu0  ;;  %v3212_v27 = vpop.f32.mrb[17].mxu1  ;;  %v724_v55 = vmul.f32 %v2879_v21, %v2879_v21 }
 0x117   :  { %v649_v28 = vadd.f32 %v648_v22, %v436_v26  ;;  %v722_v29 = vmul.f32 %v436_v26, %v436_v26  ;;  %v784_v32 = vadd.f32 %v783_v20, %v721_v19  ;;  %v2880_v35 = vpop.f32.mrb[18].mxu0  ;;  %v3214_v36 = vpop.f32.mrb[18].mxu1 }
 0x118   :  { %v3216_v37 = vpack.c.bf16 %v2880_v35, %v2879_v21  ;;  %v439_v39 = vpop.f32.mrb[19].mxu0  ;;  %v3220_v40 = vpack.c.bf16 %v3214_v36, %v3210_v24  ;;  %v3222_v41 = vpop.f32.mrb[19].mxu1  ;;  %v725_v61 = vmul.f32 %v2880_v35, %v2880_v35 }
 0x119   :  { %v785_v45 = vadd.f32 %v784_v32, %v722_v29  ;;  %v650_v48 = vadd.f32 %v649_v28, %v439_v39  ;;  %v723_v51 = vmul.f32 %v439_v39, %v439_v39  ;;  %v3224_v52 = vpack.c.bf16 %v439_v39, %v436_v26 }
 0x11a   :  { %4813 = vst [vmem:[#allocation8_spill] sm:$0xff] %v3216_v37  ;;  %4814 = vst [vmem:[#allocation9_spill] sm:$0xff] %v3220_v40  ;;  %v3228_v60 = vpack.c.bf16 %v3222_v41, %v3212_v27 }
 0x11b   :  { %4815 = vst [vmem:[#allocation10_spill] sm:$0xff] %v3224_v52  ;;  %v651_v57 = vadd.f32 %v2879_v21, %v650_v48  ;;  %v786_v59 = vadd.f32 %v785_v45, %v723_v51 }
 0x11c   :  { %4816 = vst [vmem:[#allocation11_spill] sm:$0xff] %v3228_v60 }
 0x11d   :  { %v787_v2 = vadd.f32 %v786_v59, %v724_v55  ;;  %v2883_v5 = vpop.f32.mrb[20].mxu0  ;;  %v652_v8 = vadd.f32 %v2880_v35, %v651_v57  ;;  %v3230_v11 = vpop.f32.mrb[20].mxu1 }
 0x11e   :  { %v452_v13 = vpop.f32.mrb[21].mxu0  ;;  %v3232_v15 = vpop.f32.mrb[21].mxu1  ;;  %v728_v51 = vmul.f32 %v2883_v5, %v2883_v5 }
 0x11f   :  { %v653_v16 = vadd.f32 %v652_v8, %v452_v13  ;;  %v726_v19 = vmul.f32 %v452_v13, %v452_v13  ;;  %v788_v20 = vadd.f32 %v787_v2, %v725_v61  ;;  %v2884_v22 = vpop.f32.mrb[22].mxu0  ;;  %v3234_v26 = vpop.f32.mrb[22].mxu1 }
 0x120   :  { %v3236_v21 = vpack.c.bf16 %v2884_v22, %v2883_v5  ;;  %v455_v28 = vpop.f32.mrb[23].mxu0  ;;  %v3240_v29 = vpack.c.bf16 %v3234_v26, %v3230_v11  ;;  %v3242_v32 = vpop.f32.mrb[23].mxu1  ;;  %v729_v61 = vmul.f32 %v2884_v22, %v2884_v22 }
 0x121   :  { %v789_v35 = vadd.f32 %v788_v20, %v726_v19  ;;  %v654_v39 = vadd.f32 %v653_v16, %v455_v28  ;;  %v727_v45 = vmul.f32 %v455_v28, %v455_v28  ;;  %v3244_v48 = vpack.c.bf16 %v455_v28, %v452_v13 }
 0x122   :  { %4817 = vst [vmem:[#allocation12_spill] sm:$0xff] %v3236_v21  ;;  %4818 = vst [vmem:[#allocation13_spill] sm:$0xff] %v3240_v29  ;;  %v3248_v59 = vpack.c.bf16 %v3242_v32, %v3232_v15 }
 0x123   :  { %4819 = vst [vmem:[#allocation14_spill] sm:$0xff] %v3244_v48  ;;  %v655_v55 = vadd.f32 %v2883_v5, %v654_v39  ;;  %v790_v57 = vadd.f32 %v789_v35, %v727_v45 }
 0x124   :  { %4820 = vst [vmem:[#allocation15_spill] sm:$0xff] %v3248_v59 }
 0x125   :  { %v791_v2 = vadd.f32 %v790_v57, %v728_v51  ;;  %v2887_v8 = vpop.f32.mrb[24].mxu0  ;;  %v656_v21 = vadd.f32 %v2884_v22, %v655_v55  ;;  %v3250_v60 = vpop.f32.mrb[24].mxu1 }
 0x126   :  { %v468_v29 = vpop.f32.mrb[25].mxu0  ;;  %v3252_v52 = vpop.f32.mrb[25].mxu1 }
 0x127   :  { %v657_v16 = vadd.f32 %v656_v21, %v468_v29  ;;  %v730_v19 = vmul.f32 %v468_v29, %v468_v29  ;;  %v792_v13 = vadd.f32 %v791_v2, %v729_v61  ;;  %v2888_v20 = vpop.f32.mrb[26].mxu0  ;;  %v3254_v28 = vpop.f32.mrb[26].mxu1  ;;  %v732_v21 = vmul.f32 %v2887_v8, %v2887_v8 }
 0x128   :  { %v3256_v5 = vpack.c.bf16 %v2888_v20, %v2887_v8  ;;  %v471_v35 = vpop.f32.mrb[27].mxu0  ;;  %v3260_v39 = vpack.c.bf16 %v3254_v28, %v3250_v60  ;;  %v3262_v45 = vpop.f32.mrb[27].mxu1 }
 0x129   :  { %v793_v22 = vadd.f32 %v792_v13, %v730_v19  ;;  %v658_v51 = vadd.f32 %v657_v16, %v471_v35  ;;  %v731_v55 = vmul.f32 %v471_v35, %v471_v35  ;;  %v3264_v57 = vpack.c.bf16 %v471_v35, %v468_v29 }
 0x12a   :  { %4821 = vst [vmem:[#allocation16_spill] sm:$0xff] %v3256_v5  ;;  %4822 = vst [vmem:[#allocation17_spill] sm:$0xff] %v3260_v39  ;;  %v3268_v2 = vpack.c.bf16 %v3262_v45, %v3252_v52  ;;  %v733_v5 = vmul.f32 %v2888_v20, %v2888_v20 }
 0x12b   :  { %4823 = vst [vmem:[#allocation18_spill] sm:$0xff] %v3264_v57  ;;  %v659_v59 = vadd.f32 %v2887_v8, %v658_v51  ;;  %v794_v61 = vadd.f32 %v793_v22, %v731_v55 }
 0x12c   :  { %4824 = vst [vmem:[#allocation19_spill] sm:$0xff] %v3268_v2 }
 0x12d   :  { %v795_v48 = vadd.f32 %v794_v61, %v732_v21  ;;  %v2891_v40 = vpop.f32.mrb[28].mxu0  ;;  %v660_v17 = vadd.f32 %v2888_v20, %v659_v59  ;;  %v3270_v37 = vpop.f32.mrb[28].mxu1 }
 0x12e   :  { %v484_v39 = vpop.f32.mrb[29].mxu0  ;;  %v3272_v3 = vpop.f32.mrb[29].mxu1 }
 0x12f   :  { %v661_v16 = vadd.f32 %v660_v17, %v484_v39  ;;  %v734_v19 = vmul.f32 %v484_v39, %v484_v39  ;;  %v796_v29 = vadd.f32 %v795_v48, %v733_v5  ;;  %v2892_v13 = vpop.f32.mrb[30].mxu0  ;;  %v3274_v35 = vpop.f32.mrb[30].mxu1  ;;  %v736_v17 = vmul.f32 %v2891_v40, %v2891_v40 }
 0x130   :  { %v3276_v8 = vpack.c.bf16 %v2892_v13, %v2891_v40  ;;  %v487_v22 = vpop.f32.mrb[31].mxu0  ;;  %v3280_v51 = vpack.c.bf16 %v3274_v35, %v3270_v37  ;;  %v3282_v55 = vpop.f32.mrb[31].mxu1 }
 0x131   :  { %v797_v59 = vadd.f32 %v796_v29, %v734_v19  ;;  %v662_v20 = vadd.f32 %v661_v16, %v487_v22  ;;  %v735_v21 = vmul.f32 %v487_v22, %v487_v22  ;;  %v3284_v61 = vpack.c.bf16 %v487_v22, %v484_v39 }
 0x132   :  { %4825 = vst [vmem:[#allocation20_spill] sm:$0xff] %v3276_v8  ;;  %4826 = vst [vmem:[#allocation21_spill] sm:$0xff] %v3280_v51  ;;  %v3288_v5 = vpack.c.bf16 %v3282_v55, %v3272_v3  ;;  %v737_v8 = vmul.f32 %v2892_v13, %v2892_v13  ;;  %v738_v51 = vmul.f32 %v3132_v44, %v3132_v44 }
 0x133   :  { %v663_v2 = vadd.f32 %v2891_v40, %v662_v20  ;;  %v798_v48 = vadd.f32 %v797_v59, %v735_v21  ;;  %v739_v40 = vmul.f32 %v3142_v50, %v3142_v50  ;;  %v740_v29 = vmul.f32 %v3130_v42, %v3130_v42 }
 0x135   :  { %v799_v57 = vadd.f32 %v798_v48, %v736_v17  ;;  %v664_v12 = vadd.f32 %v2892_v13, %v663_v2  ;;  %v741_v2 = vmul.f32 %v3134_v46, %v3134_v46 }
 0x137   :  { %v665_v43 = vadd.f32 %v664_v12, %v3132_v44  ;;  %v800_v19 = vadd.f32 %v799_v57, %v737_v8  ;;  %v742_v44 = vmul.f32 %v3152_v1, %v3152_v1  ;;  %v743_v8 = vmul.f32 %v3162_v10, %v3162_v10 }
 0x139   :  { %v801_v16 = vadd.f32 %v800_v19, %v738_v51  ;;  %v666_v39 = vadd.f32 %v665_v43, %v3142_v50 }
 0x13b   :  { %v667_v22 = vadd.f32 %v3130_v42, %v666_v39  ;;  %v802_v59 = vadd.f32 %v801_v16, %v739_v40  ;;  %v744_v42 = vmul.f32 %v3150_v63, %v3150_v63  ;;  %v747_v40 = vmul.f32 %v3182_v34, %v3182_v34 }
 0x13d   :  { %v803_v13 = vadd.f32 %v802_v59, %v740_v29  ;;  %v668_v20 = vadd.f32 %v3134_v46, %v667_v22  ;;  %v745_v46 = vmul.f32 %v3154_v6, %v3154_v6 }
 0x13f   :  { %v669_v43 = vadd.f32 %v668_v20, %v3152_v1  ;;  %v804_v12 = vadd.f32 %v803_v13, %v741_v2  ;;  %v746_v1 = vmul.f32 %v3172_v25, %v3172_v25 }
 0x141   :  { %v805_v57 = vadd.f32 %v804_v12, %v742_v44  ;;  %v670_v50 = vadd.f32 %v669_v43, %v3162_v10  ;;  %v751_v43 = vmul.f32 %v3202_v4, %v3202_v4 }
 0x143   :  { %v671_v51 = vadd.f32 %v3150_v63, %v670_v50  ;;  %v806_v21 = vadd.f32 %v805_v57, %v743_v8  ;;  %v748_v63 = vmul.f32 %v3170_v23, %v3170_v23 }
 0x145   :  { %v807_v17 = vadd.f32 %v806_v21, %v744_v42  ;;  %v672_v48 = vadd.f32 %v3154_v6, %v671_v51  ;;  %v749_v6 = vmul.f32 %v3174_v30, %v3174_v30 }
 0x147   :  { %v673_v19 = vadd.f32 %v672_v48, %v3172_v25  ;;  %v808_v16 = vadd.f32 %v807_v17, %v745_v46  ;;  %v750_v25 = vmul.f32 %v3192_v56, %v3192_v56  ;;  %v755_v46 = vmul.f32 %v3222_v41, %v3222_v41 }
 0x149   :  { %v809_v39 = vadd.f32 %v808_v16, %v746_v1  ;;  %v674_v10 = vadd.f32 %v673_v19, %v3182_v34 }
 0x14b   :  { %v675_v29 = vadd.f32 %v3170_v23, %v674_v10  ;;  %v810_v22 = vadd.f32 %v809_v39, %v747_v40  ;;  %v752_v23 = vmul.f32 %v3190_v53, %v3190_v53  ;;  %v759_v40 = vmul.f32 %v3242_v32, %v3242_v32 }
 0x14d   :  { %v811_v59 = vadd.f32 %v810_v22, %v748_v63  ;;  %v676_v2 = vadd.f32 %v3174_v30, %v675_v29  ;;  %v753_v30 = vmul.f32 %v3194_v62, %v3194_v62 }
 0x14f   :  { %v677_v13 = vadd.f32 %v676_v2, %v3192_v56  ;;  %v812_v20 = vadd.f32 %v811_v59, %v749_v6  ;;  %v754_v56 = vmul.f32 %v3212_v27, %v3212_v27 }
 0x151   :  { %v813_v44 = vadd.f32 %v812_v20, %v750_v25  ;;  %v678_v34 = vadd.f32 %v677_v13, %v3202_v4  ;;  %v763_v13 = vmul.f32 %v3262_v45, %v3262_v45 }
 0x153   :  { %v679_v12 = vadd.f32 %v3190_v53, %v678_v34  ;;  %v814_v57 = vadd.f32 %v813_v44, %v751_v43  ;;  %v756_v53 = vmul.f32 %v3210_v24, %v3210_v24 }
 0x155   :  { %v815_v50 = vadd.f32 %v814_v57, %v752_v23  ;;  %v680_v8 = vadd.f32 %v3194_v62, %v679_v12  ;;  %v757_v62 = vmul.f32 %v3214_v36, %v3214_v36 }
 0x157   :  { %v681_v42 = vadd.f32 %v680_v8, %v3212_v27  ;;  %v816_v51 = vadd.f32 %v815_v50, %v753_v30  ;;  %v758_v27 = vmul.f32 %v3232_v15, %v3232_v15  ;;  %v767_v30 = vmul.f32 %v3282_v55, %v3282_v55 }
 0x159   :  { %v817_v21 = vadd.f32 %v816_v51, %v754_v56  ;;  %v682_v4 = vadd.f32 %v681_v42, %v3222_v41 }
 0x15b   :  { %v683_v17 = vadd.f32 %v3210_v24, %v682_v4  ;;  %v818_v48 = vadd.f32 %v817_v21, %v755_v46  ;;  %v760_v24 = vmul.f32 %v3230_v11, %v3230_v11 }
 0x15d   :  { %v819_v1 = vadd.f32 %v818_v48, %v756_v53  ;;  %v684_v19 = vadd.f32 %v3214_v36, %v683_v17  ;;  %v761_v36 = vmul.f32 %v3234_v26, %v3234_v26 }
 0x15f   :  { %v685_v16 = vadd.f32 %v684_v19, %v3232_v15  ;;  %v820_v39 = vadd.f32 %v819_v1, %v757_v62  ;;  %v762_v15 = vmul.f32 %v3252_v52, %v3252_v52  ;;  %v633_v1 = vld [vmem:[#allocation2] sm:$0x1] }
 0x161   :  { %v821_v10 = vadd.f32 %v820_v39, %v758_v27  ;;  %v686_v41 = vadd.f32 %v685_v16, %v3242_v32  ;;  %v705_v27 = vld [vmem:[#allocation3] sm:$0x1] }
 0x163   :  { %v687_v63 = vadd.f32 %v3230_v11, %v686_v41  ;;  %v822_v29 = vadd.f32 %v821_v10, %v759_v40  ;;  %v764_v11 = vmul.f32 %v3250_v60, %v3250_v60 }
 0x165   :  { %v823_v22 = vadd.f32 %v822_v29, %v760_v24  ;;  %v688_v6 = vadd.f32 %v3234_v26, %v687_v63  ;;  %v765_v26 = vmul.f32 %v3254_v28, %v3254_v28 }
 0x167   :  { %v689_v59 = vadd.f32 %v688_v6, %v3252_v52  ;;  %v824_v2 = vadd.f32 %v823_v22, %v761_v36  ;;  %v766_v52 = vmul.f32 %v3272_v3, %v3272_v3  ;;  %v2430_v22 = vunpack.c.l.bf16 %v3136_v47 }
 0x168   :  { %v2431_v6 = vunpack.c.h.bf16 %v3136_v47 }
 0x169   :  { %v825_v25 = vadd.f32 %v824_v2, %v762_v15  ;;  %v690_v32 = vadd.f32 %v689_v59, %v3262_v45  ;;  %v2426_v59 = vunpack.c.l.bf16 %v3144_v54  ;;  %v2427_v2 = vunpack.c.h.bf16 %v3144_v54 }
 0x16a   :  { %v2482_v15 = vunpack.c.l.bf16 %v3284_v61 }
 0x16b   :  { %v691_v20 = vadd.f32 %v3250_v60, %v690_v32  ;;  %v826_v44 = vadd.f32 %v825_v25, %v763_v13  ;;  %v768_v60 = vmul.f32 %v3270_v37, %v3270_v37  ;;  %v2438_v13 = vunpack.c.l.bf16 %v3156_v7 }
 0x16d   :  { %v827_v34 = vadd.f32 %v826_v44, %v764_v11  ;;  %v692_v43 = vadd.f32 %v3254_v28, %v691_v20  ;;  %v769_v28 = vmul.f32 %v3274_v35, %v3274_v35  ;;  %v2439_v11 = vunpack.c.h.bf16 %v3156_v7 }
 0x16e   :  { %v1311_v44 = vlaneseq  ;;  %v4847_v7 = vunpack.c.h.bf16 %v3176_v31 }
 0x16f   :  { %v693_v23 = vadd.f32 %v692_v43, %v3272_v3  ;;  %v828_v12 = vadd.f32 %v827_v34, %v765_v26  ;;  %v2434_v26 = vunpack.c.l.bf16 %v3164_v14  ;;  %v2435_v34 = vunpack.c.h.bf16 %v3164_v14 }
 0x170   :  { %v4845_v14 = vunpack.c.h.bf16 %v3184_v38 }
 0x171   :  { %v829_v57 = vadd.f32 %v828_v12, %v766_v52  ;;  %v694_v45 = vadd.f32 %v693_v23, %v3282_v55  ;;  %v4839_v52 = vld [vmem:[#allocation16_spill] sm:$0xff]  ;;  %v4853_v23 = vunpack.c.l.bf16 %v3168_v18  ;;  %v4855_v12 = vunpack.c.l.bf16 %v3160_v9 }
 0x172   :  { %v2479_v43 = vunpack.c.h.bf16 %v4839_v52 }
 0x173   :  { %v695_v50 = vadd.f32 %v3270_v37, %v694_v45  ;;  %v830_v8 = vadd.f32 %v829_v57, %v767_v30  ;;  %v2442_v30 = vunpack.c.l.bf16 %v3184_v38  ;;  %v4842_v45 = vld [vmem:[#allocation20_spill] sm:$0xff]  ;;  %v4848_v38 = vunpack.c.l.bf16 %v3196_v0 }
 0x174   :  { %v2487_v25 = vunpack.c.h.bf16 %v4842_v45 }
 0x175   :  { %v696_v56 = vadd.f32 %v3274_v35, %v695_v50  ;;  %v831_v42 = vadd.f32 %v830_v8, %v768_v60  ;;  %v4835_v8 = vld [vmem:[#allocation12_spill] sm:$0xff]  ;;  %v2483_v60 = vunpack.c.h.bf16 %v3284_v61 }
 0x176   :  { %v2470_v50 = vunpack.c.l.bf16 %v4835_v8 }
 0x177   :  { %v697_v3 = vrot.slane %v696_v56, 4  ;;  %v832_v51 = vadd.f32 %v831_v42, %v769_v28  ;;  %v4827_v42 = vld [vmem:[#allocation4_spill] sm:$0xff] }
 0x179   :  { %v698_v21 = vadd.f32 %v697_v3, %v696_v56  ;;  %v833_v4 = vrot.slane %v832_v51, 4  ;;  %v4844_v56 = vld [vmem:[#allocation21_spill] sm:$0xff] }
 0x17b   :  { %v699_v46 = vrot.slane %v698_v21, 2  ;;  %v834_v53 = vadd.f32 %v833_v4, %v832_v51  ;;  %v3418_v4 = vshrl.u32 %v1311_v44, 7  ;;  %v4841_v51 = vld [vmem:[#allocation17_spill] sm:$0xff] }
 0x17d   :  { %v700_v17 = vadd.f32 %v699_v46, %v698_v21  ;;  %v835_v55 = vrot.slane %v834_v53, 2  ;;  %v1177_v21 = vld [vmem:[%s4755_s2] sm:$0x1]  ;;  %v2455_v46 = vunpack.c.h.bf16 %v3196_v0 }
 0x17f   :  { %v701_v48 = vrot.slane %v700_v17, 1  ;;  %v836_v62 = vadd.f32 %v835_v55, %v834_v53  ;;  %v4828_v53 = vld [vmem:[#allocation6_spill] sm:$0xff]  ;;  %v4829_v55 = vld [vmem:[#allocation5_spill] sm:$0xff] }
 0x181   :  { %v702_v19 = vadd.f32 %v701_v48, %v700_v17  ;;  %v837_v37 = vrot.slane %v836_v62, 1  ;;  %v2450_v17 = vunpack.c.l.bf16 %v4828_v53  ;;  %v2478_v48 = vunpack.c.l.bf16 %v4839_v52 }
 0x183   :  { %v703_v16 = vadd.f32 %v702_v19, %v633_v1  ;;  %v838_v39 = vadd.f32 %v837_v37, %v836_v62  ;;  %v2451_v1 = vunpack.c.h.bf16 %v4828_v53  ;;  %v4830_v19 = vld [vmem:[#allocation8_spill] sm:$0xff]  ;;  %v4834_v62 = vld [vmem:[#allocation11_spill] sm:$0xff]  ;;  %v4776_v53 = vsub.s32 0, %v3418_v4 }
 0x184   :  { %v2462_v37 = vunpack.c.l.bf16 %v4830_v19 }
 0x185   :  { %704 = vst [vmem:[#allocation2] sm:$0x1] %v703_v16  ;;  %v839_v10 = vadd.f32 %v838_v39, %v705_v27  ;;  %v4831_v27 = vld [vmem:[#allocation7_spill] sm:$0xff]  ;;  %v2471_v16 = vunpack.c.h.bf16 %v4835_v8  ;;  %v4840_v39 = vld [vmem:[#allocation18_spill] sm:$0xff] }
 0x186   :  { %v2474_v57 = vunpack.c.l.bf16 %v4840_v39  ;;  %v2475_v52 = vunpack.c.h.bf16 %v4840_v39  ;;  %v4860_v39 = vunpack.c.l.bf16 %v3180_v33  ;;  %v4863_v20 = vunpack.c.l.bf16 %v4831_v27 }
 0x187   :  { %840 = vst [vmem:[#allocation3] sm:$0x1] %v839_v10  ;;  %v2463_v10 = vunpack.c.h.bf16 %v4830_v19  ;;  %v4836_v19 = vld [vmem:[#allocation13_spill] sm:$0xff] }
 0x18c   :  { %v1169_v35 = vld [vmem:[#allocation2] sm:$0x1] }
 0x18d   :  { %v3386_v41 = vmul.f32 0.001953125, %v1169_v35  ;;  %v4832_v35 = vld [vmem:[#allocation9_spill] sm:$0xff] }
 0x18e   :  { %v1171_v40 = vld [vmem:[#allocation3] sm:$0x1] }
 0x18f   :  { %v1172_v24 = vmul.f32 0.001953125, %v1171_v40  ;;  %v1173_v63 = vmul.f32 %v3386_v41, %v3386_v41  ;;  %v4837_v40 = vld [vmem:[#allocation14_spill] sm:$0xff] }
 0x190   :  { %v2466_v3 = vunpack.c.l.bf16 %v4837_v40 }
 0x191   :  { %v1174_v29 = vsub.f32 %v1172_v24, %v1173_v63  ;;  %v4838_v24 = vld [vmem:[#allocation15_spill] sm:$0xff] }
 0x193   :  { %v1175_v36 = vadd.f32 1e-05, %v1174_v29  ;;  %v4833_v29 = vld [vmem:[#allocation10_spill] sm:$0xff] }
 0x194   :  { %v2459_v44 = vunpack.c.h.bf16 %v4833_v29 }
 0x195   :  { %2982 = vrsqrt.f32 %v1175_v36  ;;  %v2458_v36 = vunpack.c.l.bf16 %v4833_v29  ;;  %v4843_v29 = vld [vmem:[#allocation19_spill] sm:$0xff] }
 0x19f   :  { %v2983_v28 = vpop.eup %2982 }
 0x1a0   :  { %v1178_v63 = vmul.f32 %v2983_v28, %v1177_v21  ;;  %v2467_v28 = vunpack.c.h.bf16 %v4837_v40  ;;  %v3455_v40 = vld [vmem:[%s4756_s3] sm:$0x1] }
 0x1a2   :  { %v3447_v8 = vmul.f32 %v1178_v63, %v3386_v41  ;;  %v3459_v21 = vrot.slane %v1178_v63, %v4776_v53  ;;  %v2486_v41 = vunpack.c.l.bf16 %v4842_v45  ;;  %v4857_v53 = vunpack.c.l.bf16 %v4827_v42 }
 0x1a4   :  { %v1181_v63 = vsub.f32 %v3455_v40, %v3447_v8  ;;  %v3477_v32 = vmul.f32 %v2426_v59, %v3459_v21  ;;  %v3482_v45 = vmul.f32 %v2427_v2, %v3459_v21  ;;  %v3487_v61 = vmul.f32 %v2430_v22, %v3459_v21 }
 0x1a5   :  { %v3492_v8 = vmul.f32 %v2431_v6, %v3459_v21  ;;  %v3497_v59 = vmul.f32 %v2434_v26, %v3459_v21  ;;  %v3502_v54 = vmul.f32 %v2435_v34, %v3459_v21  ;;  %v3507_v22 = vmul.f32 %v2438_v13, %v3459_v21 }
 0x1a6   :  { %v3512_v47 = vmul.f32 %v2439_v11, %v3459_v21  ;;  %v3517_v6 = vmul.f32 %v2442_v30, %v3459_v21  ;;  %v3522_v2 = vmul.f32 %v4845_v14, %v3459_v21  ;;  %v4846_v26 = vunpack.c.l.bf16 %v3176_v31 }
 0x1a7   :  { %v3532_v11 = vmul.f32 %v4847_v7, %v3459_v21  ;;  %v3535_v34 = vmul.f32 %v2450_v17, %v3459_v21  ;;  %v3538_v30 = vmul.f32 %v2451_v1, %v3459_v21  ;;  %v3543_v40 = vmul.f32 %v4848_v38, %v3459_v21 }
 0x1a8   :  { %v3527_v13 = vmul.f32 %v4846_v26, %v3459_v21  ;;  %v3546_v14 = vmul.f32 %v2455_v46, %v3459_v21  ;;  %v3549_v26 = vmul.f32 %v2458_v36, %v3459_v21  ;;  %v3552_v31 = vmul.f32 %v2459_v44, %v3459_v21 }
 0x1a9   :  { %v3555_v17 = vmul.f32 %v2462_v37, %v3459_v21  ;;  %v3558_v1 = vmul.f32 %v2463_v10, %v3459_v21  ;;  %v3561_v7 = vmul.f32 %v2466_v3, %v3459_v21  ;;  %v3564_v0 = vmul.f32 %v2467_v28, %v3459_v21 }
 0x1aa   :  { %v3567_v46 = vmul.f32 %v2470_v50, %v3459_v21  ;;  %v3570_v36 = vmul.f32 %v2471_v16, %v3459_v21  ;;  %v3573_v44 = vmul.f32 %v2474_v57, %v3459_v21  ;;  %v3576_v37 = vmul.f32 %v2475_v52, %v3459_v21 }
 0x1ab   :  { %v3579_v10 = vmul.f32 %v2478_v48, %v3459_v21  ;;  %v3582_v3 = vmul.f32 %v2479_v43, %v3459_v21  ;;  %v3585_v28 = vmul.f32 %v2482_v15, %v3459_v21  ;;  %v3588_v50 = vmul.f32 %v2483_v60, %v3459_v21 }
 0x1ac   :  { %v3591_v16 = vmul.f32 %v2486_v41, %v3459_v21  ;;  %v3594_v57 = vmul.f32 %v2487_v25, %v3459_v21  ;;  %v4849_v52 = vunpack.c.l.bf16 %v3148_v58  ;;  %v4850_v43 = vunpack.c.h.bf16 %v3148_v58 }
 0x1ad   :  { %v4851_v15 = vunpack.c.l.bf16 %v3140_v49  ;;  %v4852_v41 = vunpack.c.h.bf16 %v3140_v49  ;;  %v4854_v58 = vunpack.c.h.bf16 %v3168_v18  ;;  %v4856_v49 = vunpack.c.h.bf16 %v3160_v9 }
 0x1ae   :  { %v3599_v48 = vmul.f32 %v4849_v52, %v3459_v21  ;;  %v3604_v38 = vmul.f32 %v4850_v43, %v3459_v21  ;;  %v3619_v52 = vmul.f32 %v4853_v23, %v3459_v21  ;;  %v3639_v23 = vmul.f32 %v4857_v53, %v3459_v21 }
 0x1af   :  { %v3609_v60 = vmul.f32 %v4851_v15, %v3459_v21  ;;  %v3614_v25 = vmul.f32 %v4852_v41, %v3459_v21  ;;  %v3624_v43 = vmul.f32 %v4854_v58, %v3459_v21  ;;  %v3629_v15 = vmul.f32 %v4855_v12, %v3459_v21 }
 0x1b0   :  { %v3634_v41 = vmul.f32 %v4856_v49, %v3459_v21  ;;  %v4858_v18 = vunpack.c.h.bf16 %v4827_v42  ;;  %v3649_v12 = vmul.f32 %v4860_v39, %v3459_v21  ;;  %v4861_v9 = vunpack.c.h.bf16 %v3180_v33 }
 0x1b1   :  { %v3659_v53 = vmul.f32 %v4863_v20, %v3459_v21  ;;  %v4864_v42 = vunpack.c.h.bf16 %v4831_v27  ;;  %v4868_v33 = vunpack.c.h.bf16 %v4829_v55  ;;  %v4871_v27 = vunpack.c.h.bf16 %v4834_v62 }
 0x1b2   :  { %v3644_v58 = vmul.f32 %v4858_v18, %v3459_v21  ;;  %v3654_v49 = vmul.f32 %v4861_v9, %v3459_v21 }
 0x1b3   :  { %v3664_v18 = vmul.f32 %v4864_v42, %v3459_v21  ;;  %v3674_v9 = vmul.f32 %v4868_v33, %v3459_v21  ;;  %v3684_v42 = vmul.f32 %v4871_v27, %v3459_v21  ;;  %v4875_v33 = vunpack.c.h.bf16 %v4832_v35 }
 0x1b4   :  { %4859 = vst [vmem:[#allocation4_spill] sm:$0xff] %v3644_v58  ;;  %4862 = vst [vmem:[#allocation6_spill] sm:$0xff] %v3654_v49  ;;  %v4866_v58 = vunpack.c.l.bf16 %v4829_v55  ;;  %v4870_v49 = vunpack.c.l.bf16 %v4834_v62  ;;  %v4877_v27 = vunpack.c.h.bf16 %v4838_v24 }
 0x1b5   :  { %4865 = vst [vmem:[#allocation5_spill] sm:$0xff] %v3664_v18  ;;  %4869 = vst [vmem:[#allocation7_spill] sm:$0xff] %v3674_v9  ;;  %v4873_v18 = vunpack.c.l.bf16 %v4832_v35  ;;  %v3698_v9 = vmul.f32 %v4875_v33, %v3459_v21  ;;  %v4879_v35 = vunpack.c.h.bf16 %v4836_v19 }
 0x1b6   :  { %v3669_v39 = vmul.f32 %v4866_v58, %v3459_v21  ;;  %v3679_v20 = vmul.f32 %v4870_v49, %v3459_v21  ;;  %4872 = vst [vmem:[#allocation9_spill] sm:$0xff] %v3684_v42  ;;  %v4876_v49 = vunpack.c.l.bf16 %v4838_v24  ;;  %v3708_v42 = vmul.f32 %v4877_v27, %v3459_v21 }
 0x1b7   :  { %v3689_v58 = vmul.f32 %v4873_v18, %v3459_v21  ;;  %v3718_v18 = vmul.f32 %v4879_v35, %v3459_v21  ;;  %v4882_v24 = vunpack.c.h.bf16 %v4843_v29  ;;  %v4884_v27 = vunpack.c.l.bf16 %v4841_v51 }
 0x1b8   :  { %4867 = vst [vmem:[#allocation8_spill] sm:$0xff] %v3669_v39  ;;  %v4874_v39 = vsub.s32 0, %v3418_v4  ;;  %v3703_v62 = vmul.f32 %v4876_v49, %v3459_v21  ;;  %v4878_v4 = vunpack.c.l.bf16 %v4836_v19  ;;  %v4885_v19 = vunpack.c.h.bf16 %v4841_v51 }
 0x1b9   :  { %4880 = vst [vmem:[#allocation10_spill] sm:$0xff] %v3718_v18  ;;  %v3728_v49 = vmul.f32 %v4882_v24, %v3459_v21  ;;  %v4887_v18 = vunpack.c.l.bf16 %v3288_v5  ;;  %v4890_v51 = vunpack.c.h.bf16 %v4844_v56 }
 0x1ba   :  { %v3693_v55 = vrot.slane %v1181_v63, %v4874_v39  ;;  %v3713_v63 = vmul.f32 %v4878_v4, %v3459_v21  ;;  %v4881_v39 = vunpack.c.l.bf16 %v4843_v29  ;;  %v3733_v4 = vmul.f32 %v4884_v27, %v3459_v21 }
 0x1bb   :  { %4883 = vst [vmem:[#allocation11_spill] sm:$0xff] %v3728_v49  ;;  %v3738_v35 = vmul.f32 %v4885_v19, %v3459_v21  ;;  %v4888_v29 = vunpack.c.h.bf16 %v3288_v5  ;;  %v4889_v49 = vunpack.c.l.bf16 %v4844_v56  ;;  %v3758_v19 = vmul.f32 %v4890_v51, %v3459_v21 }
 0x1bc   :  { %v3723_v33 = vmul.f32 %v4881_v39, %v3459_v21  ;;  %v3743_v39 = vmul.f32 %v4887_v18, %v3459_v21  ;;  %v3766_v18 = vadd.f32 %v3693_v55, %v3482_v45  ;;  %v3770_v5 = vadd.f32 %v3693_v55, %v3487_v61  ;;  %v4896_v51 = vld [vmem:[#allocation5_spill] sm:$0xff] }
 0x1bd   :  { %4886 = vst [vmem:[#allocation12_spill] sm:$0xff] %v3738_v35  ;;  %v3748_v24 = vmul.f32 %v4888_v29, %v3459_v21  ;;  %v3753_v27 = vmul.f32 %v4889_v49, %v3459_v21  ;;  %v3762_v35 = vadd.f32 %v3693_v55, %v3477_v32  ;;  %v3774_v49 = vadd.f32 %v3693_v55, %v3492_v8  ;;  %v4894_v29 = vld [vmem:[#allocation6_spill] sm:$0xff] }
 0x1be   :  { %v3778_v56 = vadd.f32 %v3693_v55, %v3497_v59  ;;  %v3782_v32 = vadd.f32 %v3693_v55, %v3502_v54  ;;  %v3786_v21 = vadd.f32 %v3693_v55, %v3507_v22  ;;  %v3790_v45 = vadd.f32 %v3693_v55, %v3512_v47 }
 0x1bf   :  { %v3794_v61 = vadd.f32 %v3693_v55, %v3517_v6  ;;  %v3798_v8 = vadd.f32 %v3693_v55, %v3522_v2  ;;  %v3802_v59 = vadd.f32 %v3693_v55, %v3527_v13  ;;  %v3806_v54 = vadd.f32 %v3693_v55, %v3532_v11 }
 0x1c0   :  { %v3810_v22 = vadd.f32 %v3693_v55, %v3535_v34  ;;  %v3814_v47 = vadd.f32 %v3693_v55, %v3538_v30  ;;  %v3818_v6 = vadd.f32 %v3693_v55, %v3543_v40  ;;  %v3822_v2 = vadd.f32 %v3693_v55, %v3546_v14 }
 0x1c1   :  { %v3826_v13 = vadd.f32 %v3693_v55, %v3549_v26  ;;  %v3830_v11 = vadd.f32 %v3693_v55, %v3552_v31  ;;  %v3834_v34 = vadd.f32 %v3693_v55, %v3555_v17  ;;  %v3838_v30 = vadd.f32 %v3693_v55, %v3558_v1 }
 0x1c2   :  { %v3842_v40 = vadd.f32 %v3693_v55, %v3561_v7  ;;  %v3846_v14 = vadd.f32 %v3693_v55, %v3564_v0  ;;  %v3850_v26 = vadd.f32 %v3693_v55, %v3567_v46  ;;  %v3854_v31 = vadd.f32 %v3693_v55, %v3570_v36 }
 0x1c3   :  { %v3858_v17 = vadd.f32 %v3693_v55, %v3573_v44  ;;  %v3862_v1 = vadd.f32 %v3693_v55, %v3576_v37  ;;  %v3866_v7 = vadd.f32 %v3693_v55, %v3579_v10  ;;  %v3870_v0 = vadd.f32 %v3693_v55, %v3582_v3 }
 0x1c4   :  { %v3874_v46 = vadd.f32 %v3693_v55, %v3585_v28  ;;  %v3878_v36 = vadd.f32 %v3693_v55, %v3588_v50  ;;  %v3882_v44 = vadd.f32 %v3693_v55, %v3591_v16  ;;  %v3886_v37 = vadd.f32 %v3693_v55, %v3594_v57 }
 0x1c5   :  { %v3890_v10 = vadd.f32 %v3693_v55, %v3599_v48  ;;  %v3894_v3 = vadd.f32 %v3693_v55, %v3604_v38  ;;  %v3898_v28 = vadd.f32 %v3693_v55, %v3609_v60  ;;  %v3902_v50 = vadd.f32 %v3693_v55, %v3614_v25  ;;  %v4892_v25 = vld [vmem:[#allocation4_spill] sm:$0xff] }
 0x1c6   :  { %v3906_v16 = vadd.f32 %v3693_v55, %v3619_v52  ;;  %v3910_v57 = vadd.f32 %v3693_v55, %v3624_v43  ;;  %v3914_v48 = vadd.f32 %v3693_v55, %v3629_v15  ;;  %v3918_v38 = vadd.f32 %v3693_v55, %v3634_v41 }
 0x1c7   :  { %v3922_v60 = vadd.f32 %v3693_v55, %v3639_v23  ;;  %v3926_v52 = vadd.f32 %v3693_v55, %v4892_v25  ;;  %v3930_v43 = vadd.f32 %v3693_v55, %v3649_v12  ;;  %v3934_v15 = vadd.f32 %v3693_v55, %v4894_v29 }
 0x1c8   :  { %v3938_v41 = vadd.f32 %v3693_v55, %v3659_v53  ;;  %v3942_v23 = vadd.f32 %v3693_v55, %v4896_v51  ;;  %v3954_v29 = vadd.f32 %v3693_v55, %v3679_v20  ;;  %v3962_v51 = vadd.f32 %v3693_v55, %v3689_v58 }
 0x1c9   :  { %4891 = vst [vmem:[#allocation13_spill] sm:$0xff] %v3922_v60  ;;  %4893 = vst [vmem:[#allocation14_spill] sm:$0xff] %v3926_v52  ;;  %v4897_v60 = vld [vmem:[#allocation8_spill] sm:$0xff]  ;;  %v4898_v52 = vld [vmem:[#allocation7_spill] sm:$0xff]  ;;  %v3974_v20 = vadd.f32 %v3693_v55, %v3708_v42  ;;  %v3994_v42 = vadd.f32 %v3693_v55, %v3733_v4  ;;  %vm1450_vm0 = vcmp.ge.f32.partialorder %v3762_v35, 0.0  ;;  %vm1451_vm1 = vcmp.ge.f32.partialorder %v3766_v18, 0.0 }
 0x1ca   :  { %4895 = vst [vmem:[#allocation15_spill] sm:$0xff] %v3934_v15  ;;  %v3946_v25 = vadd.f32 %v3693_v55, %v4897_v60  ;;  %v3950_v12 = vadd.f32 %v3693_v55, %v4898_v52  ;;  %4899 = vst [vmem:[#allocation16_spill] sm:$0xff] %v3954_v29  ;;  %v4900_v15 = vld [vmem:[#allocation9_spill] sm:$0xff]  ;;  %v3966_v60 = vadd.f32 %v3693_v55, %v3698_v9  ;;  %vm1452_vm2 = vcmp.ge.f32.partialorder %v3770_v5, 0.0 }
 0x1cb   :  { %v3958_v53 = vadd.f32 %v3693_v55, %v4900_v15  ;;  %4902 = vst [vmem:[#allocation17_spill] sm:$0xff] %v3962_v51  ;;  %v3970_v52 = vadd.f32 %v3693_v55, %v3703_v62  ;;  %4905 = vst [vmem:[#allocation21_spill] sm:$0xff] %v3974_v20  ;;  %v3978_v15 = vadd.f32 %v3693_v55, %v3713_v63  ;;  %v4913_v20 = vld [vmem:[#allocation12_spill] sm:$0xff]  ;;  %vm1453_vm3 = vcmp.ge.f32.partialorder %v3774_v49, 0.0 }
 0x1cc   :  { %4903 = vst [vmem:[#allocation20_spill] sm:$0xff] %v3966_v60  ;;  %v3986_v9 = vadd.f32 %v3693_v55, %v3723_v33  ;;  %v4910_v60 = vld [vmem:[#allocation11_spill] sm:$0xff]  ;;  %4912 = vst [vmem:[#allocation7_spill] sm:$0xff] %v3994_v42  ;;  %v3998_v63 = vadd.f32 %v3693_v55, %v4913_v20  ;;  %v4006_v33 = vadd.f32 %v3693_v55, %v3748_v24  ;;  %vm1454_vm4 = vcmp.ge.f32.partialorder %v3778_v56, 0.0 }
 0x1cd   :  { %4901 = vst [vmem:[#allocation18_spill] sm:$0xff] %v3958_v53  ;;  %4904 = vst [vmem:[#allocation19_spill] sm:$0xff] %v3970_v52  ;;  %v4907_v53 = vld [vmem:[#allocation10_spill] sm:$0xff]  ;;  %v3990_v62 = vadd.f32 %v3693_v55, %v4910_v60  ;;  %vm1455_vm5 = vcmp.ge.f32.partialorder %v3782_v32, 0.0  ;;  %vm1456_vm6 = vcmp.ge.f32.partialorder %v3786_v21, 0.0  ;;  %vm1457_vm7 = vcmp.ge.f32.partialorder %v3790_v45, 0.0 }
 0x1ce   :  { %4906 = vst [vmem:[#allocation4_spill] sm:$0xff] %v3978_v15  ;;  %v3982_v58 = vadd.f32 %v3693_v55, %v4907_v53  ;;  %4909 = vst [vmem:[#allocation5_spill] sm:$0xff] %v3986_v9  ;;  %v4002_v53 = vadd.f32 %v3693_v55, %v3743_v39  ;;  %vm1458_vm8 = vcmp.ge.f32.partialorder %v3794_v61, 0.0  ;;  %v4019_v4 = vadd.f32 %v3693_v55, %v3753_v27 }
 0x1cf   :  { %4911 = vst [vmem:[#allocation8_spill] sm:$0xff] %v3990_v62  ;;  %4914 = vst [vmem:[#allocation9_spill] sm:$0xff] %v3998_v63  ;;  %vm1459_vm9 = vcmp.ge.f32.partialorder %v3798_v8, 0.0  ;;  %v1514_v39 = vmul.f32 0.2, %v3762_v35  ;;  %v4027_v20 = vadd.f32 %v3693_v55, %v3758_v19  ;;  %vm1460_vm10 = vcmp.ge.f32.partialorder %v3802_v59, 0.0 }
 0x1d0   :  { %4908 = vst [vmem:[#allocation6_spill] sm:$0xff] %v3982_v58  ;;  %4915 = vst [vmem:[#allocation10_spill] sm:$0xff] %v4002_v53  ;;  %v1515_v24 = vmul.f32 0.2, %v3766_v18  ;;  %v1516_v60 = vmul.f32 0.2, %v3770_v5 }
 0x1d1   :  { %4916 = vst [vmem:[#allocation11_spill] sm:$0xff] %v4006_v33  ;;  %4917 = vst [vmem:[#allocation12_spill] sm:$0xff] %v4019_v4  ;;  %v1517_v33 = vmul.f32 0.2, %v3774_v49  ;;  %v1518_v53 = vmul.f32 0.2, %v3778_v56  ;;  %v4040_v55 = vsel %vm1450_vm0, %v3762_v35, %v1514_v39 }
 0x1d2   :  { %4918 = vst [vmem:[#allocation22_spill] sm:$0xff] %v4027_v20  ;;  %v1519_v27 = vmul.f32 0.2, %v3782_v32  ;;  %vm1461_vm11 = vcmp.ge.f32.partialorder %v3806_v54, 0.0  ;;  %v1520_v4 = vmul.f32 0.2, %v3786_v21  ;;  %v4051_v9 = vsel %vm1451_vm1, %v3766_v18, %v1515_v24 }
 0x1d3   :  { %v1521_v63 = vmul.f32 0.2, %v3790_v45  ;;  %v1522_v42 = vmul.f32 0.2, %v3794_v61  ;;  %4919 = vst [vmem:[#allocation23_spill] sm:$0xff] %v4040_v55  ;;  %vm1462_vm12 = vcmp.ge.f32.partialorder %v3810_v22, 0.0  ;;  %v4066_v55 = vsel %vm1452_vm2, %v3770_v5, %v1516_v60 }
 0x1d4   :  { %v1523_v19 = vmul.f32 0.2, %v3798_v8  ;;  %v1524_v20 = vmul.f32 0.2, %v3802_v59  ;;  %v4046_v62 = vmul.f32 0.2, %v3806_v54  ;;  %v4081_v15 = vsel %vm1453_vm3, %v3774_v49, %v1517_v33 }
 0x1d5   :  { %4920 = vst [vmem:[#allocation24_spill] sm:$0xff] %v4051_v9  ;;  %vm1463_vm13 = vcmp.ge.f32.partialorder %v3814_v47, 0.0  ;;  %v4055_v58 = vmul.f32 0.2, %v3810_v22  ;;  %v4058_v35 = vmul.f32 0.2, %v3814_v47 }
 0x1d6   :  { %v4061_v39 = vmul.f32 0.2, %v3818_v6  ;;  %4921 = vst [vmem:[#allocation25_spill] sm:$0xff] %v4066_v55  ;;  %vm1464_vm14 = vcmp.ge.f32.partialorder %v3818_v6, 0.0  ;;  %v4070_v18 = vmul.f32 0.2, %v3822_v2 }
 0x1d7   :  { %v4073_v24 = vmul.f32 0.2, %v3826_v13  ;;  %v4076_v9 = vmul.f32 0.2, %v3830_v11  ;;  %4923 = vst [vmem:[#allocation27_spill] sm:$0xff] %v4081_v15  ;;  %vm1465_vm15 = vcmp.ge.f32.partialorder %v3822_v2, 0.0 }
 0x1d8   :  { %v4085_v5 = vmul.f32 0.2, %v3834_v34  ;;  %v4088_v60 = vmul.f32 0.2, %v3838_v30  ;;  %v4091_v55 = vmul.f32 0.2, %v3842_v40 }
 0x1d9   :  { %4922 = vst [vmem:[#allocation26_spill] sm:$0xff] %v4076_v9  ;;  %v4096_v9 = vsel %vm1454_vm4, %v3778_v56, %v1518_v53  ;;  %vm1466_vm0 = vcmp.ge.f32.partialorder %v3826_v13, 0.0  ;;  %v4100_v49 = vmul.f32 0.2, %v3846_v14  ;;  %v4103_v33 = vmul.f32 0.2, %v3850_v26 }
 0x1da   :  { %4924 = vst [vmem:[#allocation28_spill] sm:$0xff] %v4091_v55  ;;  %4925 = vst [vmem:[#allocation29_spill] sm:$0xff] %v4096_v9  ;;  %v4106_v15 = vmul.f32 0.2, %v3854_v31  ;;  %v4111_v55 = vsel %vm1455_vm5, %v3782_v32, %v1519_v27  ;;  %vm1467_vm1 = vcmp.ge.f32.partialorder %v3830_v11, 0.0  ;;  %vm1468_vm2 = vcmp.ge.f32.partialorder %v3834_v34, 0.0 }
 0x1db   :  { %4927 = vst [vmem:[#allocation31_spill] sm:$0xff] %v4111_v55  ;;  %v4115_v56 = vmul.f32 0.2, %v3858_v17  ;;  %v4118_v53 = vmul.f32 0.2, %v3862_v1  ;;  %vm1469_vm3 = vcmp.ge.f32.partialorder %v3838_v30, 0.0 }
 0x1dc   :  { %4926 = vst [vmem:[#allocation30_spill] sm:$0xff] %v4106_v15  ;;  %v4121_v9 = vmul.f32 0.2, %v3866_v7  ;;  %v4126_v15 = vsel %vm1456_vm6, %v3786_v21, %v1520_v4  ;;  %v4130_v32 = vmul.f32 0.2, %v3870_v0  ;;  %vm1472_vm6 = vcmp.ge.f32.partialorder %v3850_v26, 0.0 }
 0x1dd   :  { %4929 = vst [vmem:[#allocation33_spill] sm:$0xff] %v4126_v15  ;;  %v4133_v27 = vmul.f32 0.2, %v3874_v46  ;;  %v4136_v55 = vmul.f32 0.2, %v3878_v36 }
 0x1de   :  { %4928 = vst [vmem:[#allocation32_spill] sm:$0xff] %v4121_v9  ;;  %v4141_v9 = vsel %vm1457_vm7, %v3790_v45, %v1521_v63  ;;  %v4147_v21 = vmul.f32 0.2, %v3882_v44  ;;  %v4150_v4 = vmul.f32 0.2, %v3886_v37  ;;  %v4158_v45 = vsel %vm1458_vm8, %v3794_v61, %v1522_v42 }
 0x1df   :  { %4930 = vst [vmem:[#allocation34_spill] sm:$0xff] %v4141_v9  ;;  %v4153_v15 = vmul.f32 0.2, %v3890_v10  ;;  %4932 = vst [vmem:[#allocation36_spill] sm:$0xff] %v4158_v45  ;;  %v4165_v63 = vmul.f32 0.2, %v3894_v3  ;;  %v4176_v61 = vsel %vm1459_vm9, %v3798_v8, %v1523_v19  ;;  %v4194_v8 = vsel %vm1460_vm10, %v3802_v59, %v1524_v20 }
 0x1e0   :  { %v4168_v9 = vmul.f32 0.2, %v3898_v28  ;;  %4934 = vst [vmem:[#allocation38_spill] sm:$0xff] %v4176_v61  ;;  %vm1476_vm8 = vcmp.ge.f32.partialorder %v3866_v7, 0.0  ;;  %v4183_v42 = vmul.f32 0.2, %v3906_v16  ;;  %v4213_v59 = vsel %vm1461_vm11, %v3806_v54, %v4046_v62 }
 0x1e1   :  { %4931 = vst [vmem:[#allocation35_spill] sm:$0xff] %v4153_v15  ;;  %v4171_v15 = vmul.f32 0.2, %v3902_v50  ;;  %v4186_v45 = vmul.f32 0.2, %v3910_v57  ;;  %4938 = vst [vmem:[#allocation42_spill] sm:$0xff] %v4194_v8  ;;  %v4232_v54 = vsel %vm1462_vm12, %v3810_v22, %v4055_v58  ;;  %v4251_v22 = vsel %vm1463_vm13, %v3814_v47, %v4058_v35 }
 0x1e2   :  { %4935 = vst [vmem:[#allocation39_spill] sm:$0xff] %v4183_v42  ;;  %vm1480_vm9 = vcmp.ge.f32.partialorder %v3882_v44, 0.0  ;;  %v4201_v19 = vmul.f32 0.2, %v3918_v38  ;;  %v4939_v61 = vld [vmem:[#allocation13_spill] sm:$0xff]  ;;  %4943 = vst [vmem:[#allocation43_spill] sm:$0xff] %v4213_v59  ;;  %v4270_v47 = vsel %vm1464_vm14, %v3818_v6, %v4061_v39  ;;  %v4289_v6 = vsel %vm1465_vm15, %v3822_v2, %v4070_v18 }
 0x1e3   :  { %4933 = vst [vmem:[#allocation37_spill] sm:$0xff] %v4171_v15  ;;  %4936 = vst [vmem:[#allocation40_spill] sm:$0xff] %v4186_v45  ;;  %v4189_v15 = vmul.f32 0.2, %v3914_v48  ;;  %v4204_v45 = vmul.f32 0.2, %v4939_v61  ;;  %v4302_v2 = vsel %vm1466_vm0, %v3826_v13, %v4073_v24 }
 0x1e4   :  { %vm1484_vm10 = vcmp.ge.f32.partialorder %v3898_v28, 0.0  ;;  %v4220_v20 = vmul.f32 0.2, %v3930_v43  ;;  %v4944_v8 = vld [vmem:[#allocation15_spill] sm:$0xff]  ;;  %4946 = vst [vmem:[#allocation44_spill] sm:$0xff] %v4232_v54  ;;  %vm1488_vm11 = vcmp.ge.f32.partialorder %v3914_v48, 0.0 }
 0x1e5   :  { %4937 = vst [vmem:[#allocation41_spill] sm:$0xff] %v4189_v15  ;;  %4940 = vst [vmem:[#allocation13_spill] sm:$0xff] %v4204_v45  ;;  %v4941_v15 = vld [vmem:[#allocation14_spill] sm:$0xff]  ;;  %v4223_v45 = vmul.f32 0.2, %v4944_v8  ;;  %vm1492_vm12 = vcmp.ge.f32.partialorder %v3930_v43, 0.0 }
 0x1e6   :  { %v4207_v42 = vmul.f32 0.2, %v4941_v15  ;;  %v4239_v62 = vmul.f32 0.2, %v3942_v23  ;;  %v4242_v59 = vmul.f32 0.2, %v3946_v25 }
 0x1e7   :  { %4949 = vst [vmem:[#allocation47_spill] sm:$0xff] %v4251_v22  ;;  %v4258_v58 = vmul.f32 0.2, %v3954_v29  ;;  %v4951_v54 = vld [vmem:[#allocation18_spill] sm:$0xff]  ;;  %4954 = vst [vmem:[#allocation51_spill] sm:$0xff] %v4270_v47  ;;  %vm1496_vm13 = vcmp.ge.f32.partialorder %v3946_v25, 0.0 }
 0x1e8   :  { %4942 = vst [vmem:[#allocation14_spill] sm:$0xff] %v4207_v42  ;;  %v4226_v42 = vmul.f32 0.2, %v3938_v41  ;;  %4947 = vst [vmem:[#allocation45_spill] sm:$0xff] %v4242_v59  ;;  %v4261_v59 = vmul.f32 0.2, %v4951_v54 }
 0x1e9   :  { %4950 = vst [vmem:[#allocation48_spill] sm:$0xff] %v4258_v58  ;;  %v4955_v35 = vld [vmem:[#allocation20_spill] sm:$0xff]  ;;  %4960 = vst [vmem:[#allocation55_spill] sm:$0xff] %v4289_v6  ;;  %vm1500_vm14 = vcmp.ge.f32.partialorder %v3962_v51, 0.0  ;;  %v4963_v54 = vld [vmem:[#allocation5_spill] sm:$0xff]  ;;  %vm4975_vm7 = vcmp.ge.f32.partialorder %v3842_v40, 0.0 }
 0x1ea   :  { %4945 = vst [vmem:[#allocation15_spill] sm:$0xff] %v4226_v42  ;;  %v4245_v42 = vmul.f32 0.2, %v3950_v12  ;;  %4952 = vst [vmem:[#allocation49_spill] sm:$0xff] %v4261_v59  ;;  %v4277_v22 = vmul.f32 0.2, %v4955_v35 }
 0x1eb   :  { %v4280_v59 = vmul.f32 0.2, %v3970_v52  ;;  %v4961_v39 = vld [vmem:[#allocation4_spill] sm:$0xff]  ;;  %4964 = vst [vmem:[#allocation56_spill] sm:$0xff] %v4302_v2  ;;  %v4967_v35 = vld [vmem:[#allocation9_spill] sm:$0xff]  ;;  %v4968_v29 = vld [vmem:[#allocation26_spill] sm:$0xff] }
 0x1ec   :  { %4948 = vst [vmem:[#allocation46_spill] sm:$0xff] %v4245_v42  ;;  %v4264_v42 = vmul.f32 0.2, %v3962_v51  ;;  %4956 = vst [vmem:[#allocation52_spill] sm:$0xff] %v4277_v22  ;;  %v1568_v47 = vmul.f32 0.2, %v4961_v39  ;;  %v4315_v13 = vsel %vm1467_vm1, %v3830_v11, %v4968_v29  ;;  %v4328_v11 = vsel %vm1468_vm2, %v3834_v34, %v4085_v5 }
 0x1ed   :  { %4957 = vst [vmem:[#allocation53_spill] sm:$0xff] %v4280_v59  ;;  %v4962_v59 = vld [vmem:[#allocation6_spill] sm:$0xff]  ;;  %vm1504_vm15 = vcmp.ge.f32.partialorder %v4961_v39, 0.0  ;;  %v4965_v18 = vld [vmem:[#allocation8_spill] sm:$0xff]  ;;  %v1573_v51 = vmul.f32 0.2, %v4967_v35  ;;  %v4355_v5 = vsel %vm1472_vm6, %v3850_v26, %v4103_v33 }
 0x1ee   :  { %4953 = vst [vmem:[#allocation50_spill] sm:$0xff] %v4264_v42  ;;  %v4958_v42 = vld [vmem:[#allocation21_spill] sm:$0xff]  ;;  %v1569_v22 = vmul.f32 0.2, %v4962_v59  ;;  %v1571_v6 = vmul.f32 0.2, %v4965_v18 }
 0x1ef   :  { %v4283_v58 = vmul.f32 0.2, %v4958_v42  ;;  %v4966_v42 = vld [vmem:[#allocation7_spill] sm:$0xff]  ;;  %v4970_v24 = vld [vmem:[#allocation10_spill] sm:$0xff]  ;;  %v4972_v59 = vld [vmem:[#allocation12_spill] sm:$0xff]  ;;  %vm4976_vm2 = vcmp.ge.f32.partialorder %v3846_v14, 0.0 }
 0x1f0   :  { %v1572_v52 = vmul.f32 0.2, %v4966_v42  ;;  %4969 = vst [vmem:[#allocation7_spill] sm:$0xff] %v4315_v13  ;;  %vm1508_vm0 = vcmp.ge.f32.partialorder %v4966_v42, 0.0  ;;  %vm1510_vm4 = vcmp.ge.f32.partialorder %v4970_v24, 0.0  ;;  %v4971_v2 = vld [vmem:[#allocation11_spill] sm:$0xff]  ;;  %v4349_v34 = vsel %vm4976_vm2, %v3846_v14, %v4100_v49 }
 0x1f1   :  { %4959 = vst [vmem:[#allocation54_spill] sm:$0xff] %v4283_v58  ;;  %v1570_v58 = vmul.f32 0.2, %v4963_v54  ;;  %v1574_v18 = vmul.f32 0.2, %v4970_v24  ;;  %vm1512_vm1 = vcmp.ge.f32.partialorder %v4972_v59, 0.0  ;;  %v4337_v24 = vsel %vm1469_vm3, %v3838_v30, %v4088_v60 }
 0x1f2   :  { %v1575_v54 = vmul.f32 0.2, %v4971_v2  ;;  %v1576_v39 = vmul.f32 0.2, %v4972_v59  ;;  %v4973_v29 = vld [vmem:[#allocation22_spill] sm:$0xff]  ;;  %v4974_v2 = vld [vmem:[#allocation28_spill] sm:$0xff] }
 0x1f3   :  { %vm1513_vm5 = vcmp.ge.f32.partialorder %v4973_v29, 0.0  ;;  %v1577_v13 = vmul.f32 0.2, %v4973_v29  ;;  %v4343_v35 = vsel %vm4975_vm7, %v3842_v40, %v4974_v2  ;;  %v4977_v30 = vld [vmem:[#allocation30_spill] sm:$0xff]  ;;  %vm4978_vm3 = vcmp.ge.f32.partialorder %v3854_v31, 0.0  ;;  %v4981_v26 = vld [vmem:[#allocation32_spill] sm:$0xff] }
 0x1f4   :  { %v4361_v60 = vsel %vm4978_vm3, %v3854_v31, %v4977_v30  ;;  %vm4979_vm7 = vcmp.ge.f32.partialorder %v3858_v17, 0.0  ;;  %vm4980_vm2 = vcmp.ge.f32.partialorder %v3862_v1, 0.0  ;;  %v4379_v49 = vsel %vm1476_vm8, %v3866_v7, %v4981_v26  ;;  %v5015_v2 = vld [vmem:[#allocation17_spill] sm:$0xff]  ;;  %v5017_v26 = vld [vmem:[#allocation20_spill] sm:$0xff] }
 0x1f5   :  { %v4367_v40 = vsel %vm4979_vm7, %v3858_v17, %v4115_v56  ;;  %v4373_v14 = vsel %vm4980_vm2, %v3862_v1, %v4118_v53  ;;  %vm4982_vm6 = vcmp.ge.f32.partialorder %v3870_v0, 0.0  ;;  %vm4983_vm3 = vcmp.ge.f32.partialorder %v3874_v46, 0.0 }
 0x1f6   :  { %v4385_v31 = vsel %vm4982_vm6, %v3870_v0, %v4130_v32  ;;  %v4391_v17 = vsel %vm4983_vm3, %v3874_v46, %v4133_v27  ;;  %vm4984_vm7 = vcmp.ge.f32.partialorder %v3878_v36, 0.0  ;;  %v4403_v7 = vsel %vm1480_vm9, %v3882_v44, %v4147_v21  ;;  %v4986_v46 = vld [vmem:[#allocation35_spill] sm:$0xff] }
 0x1f7   :  { %v4397_v1 = vsel %vm4984_vm7, %v3878_v36, %v4136_v55  ;;  %vm4985_vm8 = vcmp.ge.f32.partialorder %v3886_v37, 0.0  ;;  %vm4987_vm2 = vcmp.ge.f32.partialorder %v3890_v10, 0.0  ;;  %vm4988_vm6 = vcmp.ge.f32.partialorder %v3894_v3, 0.0  ;;  %v5002_v21 = vld [vmem:[#allocation15_spill] sm:$0xff] }
 0x1f8   :  { %v4409_v0 = vsel %vm4985_vm8, %v3886_v37, %v4150_v4  ;;  %v4415_v33 = vsel %vm4987_vm2, %v3890_v10, %v4986_v46  ;;  %v4421_v36 = vsel %vm4988_vm6, %v3894_v3, %v4165_v63  ;;  %v4427_v44 = vsel %vm1484_vm10, %v3898_v28, %v4168_v9  ;;  %v4989_v37 = vld [vmem:[#allocation37_spill] sm:$0xff]  ;;  %v4991_v10 = vld [vmem:[#allocation39_spill] sm:$0xff]  ;;  %v4993_v3 = vld [vmem:[#allocation40_spill] sm:$0xff] }
 0x1f9   :  { %vm4990_vm9 = vcmp.ge.f32.partialorder %v3902_v50, 0.0  ;;  %vm4992_vm3 = vcmp.ge.f32.partialorder %v3906_v16, 0.0  ;;  %vm4994_vm7 = vcmp.ge.f32.partialorder %v3910_v57, 0.0  ;;  %v4995_v28 = vld [vmem:[#allocation41_spill] sm:$0xff]  ;;  %vm4996_vm10 = vcmp.ge.f32.partialorder %v3918_v38, 0.0 }
 0x1fa   :  { %v4433_v55 = vsel %vm4990_vm9, %v3902_v50, %v4989_v37  ;;  %v4439_v56 = vsel %vm4992_vm3, %v3906_v16, %v4991_v10  ;;  %v4445_v53 = vsel %vm4994_vm7, %v3910_v57, %v4993_v3  ;;  %v4451_v9 = vsel %vm1488_vm11, %v3914_v48, %v4995_v28  ;;  %v4997_v16 = vld [vmem:[#allocation13_spill] sm:$0xff]  ;;  %v4999_v57 = vld [vmem:[#allocation14_spill] sm:$0xff]  ;;  %v5020_v10 = vld [vmem:[#allocation19_spill] sm:$0xff] }
 0x1fb   :  { %v4457_v50 = vsel %vm4996_vm10, %v3918_v38, %v4201_v19  ;;  %vm4998_vm8 = vcmp.ge.f32.partialorder %v4939_v61, 0.0  ;;  %vm5000_vm2 = vcmp.ge.f32.partialorder %v4941_v15, 0.0  ;;  %v4475_v48 = vsel %vm1492_vm12, %v3930_v43, %v4220_v20  ;;  %v5005_v43 = vld [vmem:[#allocation45_spill] sm:$0xff]  ;;  %v5012_v20 = vld [vmem:[#allocation18_spill] sm:$0xff] }
 0x1fc   :  { %v4463_v32 = vsel %vm4998_vm8, %v4939_v61, %v4997_v16  ;;  %v4469_v27 = vsel %vm5000_vm2, %v4941_v15, %v4999_v57  ;;  %vm5001_vm11 = vcmp.ge.f32.partialorder %v4944_v8, 0.0  ;;  %vm5003_vm6 = vcmp.ge.f32.partialorder %v3938_v41, 0.0  ;;  %v5019_v37 = vld [vmem:[#allocation53_spill] sm:$0xff]  ;;  %v5022_v28 = vld [vmem:[#allocation54_spill] sm:$0xff] }
 0x1fd   :  { %v4481_v38 = vsel %vm5001_vm11, %v4944_v8, %v4223_v45  ;;  %v4487_v4 = vsel %vm5003_vm6, %v3938_v41, %v5002_v21  ;;  %vm5004_vm9 = vcmp.ge.f32.partialorder %v3942_v23, 0.0  ;;  %v4499_v63 = vsel %vm1496_vm13, %v3946_v25, %v5005_v43  ;;  %v5006_v45 = vld [vmem:[#allocation46_spill] sm:$0xff]  ;;  %v5008_v41 = vld [vmem:[#allocation48_spill] sm:$0xff]  ;;  %v5023_v16 = vld [vmem:[#allocation21_spill] sm:$0xff] }
 0x1fe   :  { %v4493_v15 = vsel %vm5004_vm9, %v3942_v23, %v4239_v62  ;;  %vm5007_vm12 = vcmp.ge.f32.partialorder %v3950_v12, 0.0  ;;  %v5009_v8 = vld [vmem:[#allocation16_spill] sm:$0xff]  ;;  %v5011_v23 = vld [vmem:[#allocation49_spill] sm:$0xff]  ;;  %vm5013_vm7 = vcmp.ge.f32.partialorder %v5012_v20, 0.0  ;;  %v5014_v25 = vld [vmem:[#allocation50_spill] sm:$0xff]  ;;  %vm5018_vm13 = vcmp.ge.f32.partialorder %v5017_v26, 0.0 }
 0x1ff   :  { %v4505_v61 = vsel %vm5007_vm12, %v3950_v12, %v5006_v45  ;;  %vm5010_vm3 = vcmp.ge.f32.partialorder %v5009_v8, 0.0  ;;  %v4517_v62 = vsel %vm5013_vm7, %v5012_v20, %v5011_v23  ;;  %v4523_v30 = vsel %vm1500_vm14, %v5015_v2, %v5014_v25  ;;  %v5016_v12 = vld [vmem:[#allocation52_spill] sm:$0xff]  ;;  %v5026_v45 = vld [vmem:[#allocation6_spill] sm:$0xff]  ;;  %v5032_v2 = vld [vmem:[#allocation9_spill] sm:$0xff] }
 0x200   :  { %v4511_v19 = vsel %vm5010_vm3, %v5009_v8, %v5008_v41  ;;  %v4529_v46 = vsel %vm5018_vm13, %v5017_v26, %v5016_v12  ;;  %vm5021_vm10 = vcmp.ge.f32.partialorder %v5020_v10, 0.0  ;;  %vm5024_vm8 = vcmp.ge.f32.partialorder %v5023_v16, 0.0  ;;  %v5025_v21 = vld [vmem:[#allocation4_spill] sm:$0xff]  ;;  %v5028_v8 = vld [vmem:[#allocation5_spill] sm:$0xff]  ;;  %v5034_v12 = vld [vmem:[#allocation10_spill] sm:$0xff] }
 0x201   :  { %v4535_v3 = vsel %vm5021_vm10, %v5020_v10, %v5019_v37  ;;  %v4541_v57 = vsel %vm5024_vm8, %v5023_v16, %v5022_v28  ;;  %v4546_v43 = vsel %vm1504_vm15, %v5025_v21, %v1568_v47  ;;  %vm5027_vm14 = vcmp.ge.f32.partialorder %v5026_v45, 0.0  ;;  %v5030_v20 = vld [vmem:[#allocation8_spill] sm:$0xff]  ;;  %v5035_v26 = vld [vmem:[#allocation11_spill] sm:$0xff]  ;;  %v5043_v21 = vld [vmem:[#allocation29_spill] sm:$0xff] }
 0x202   :  { %v4551_v41 = vsel %vm5027_vm14, %v5026_v45, %v1569_v22  ;;  %vm5029_vm2 = vcmp.ge.f32.partialorder %v5028_v8, 0.0  ;;  %vm5031_vm11 = vcmp.ge.f32.partialorder %v5030_v20, 0.0  ;;  %v4566_v47 = vsel %vm1508_vm0, %v4966_v42, %v1572_v52  ;;  %v5039_v42 = vld [vmem:[#allocation23_spill] sm:$0xff]  ;;  %v5040_v37 = vld [vmem:[#allocation24_spill] sm:$0xff] }
 0x203   :  { %v4556_v23 = vsel %vm5029_vm2, %v5028_v8, %v1570_v58  ;;  %v4561_v25 = vsel %vm5031_vm11, %v5030_v20, %v1571_v6  ;;  %vm5033_vm15 = vcmp.ge.f32.partialorder %v5032_v2, 0.0  ;;  %v4576_v58 = vsel %vm1510_vm4, %v5034_v12, %v1574_v18  ;;  %v5041_v18 = vld [vmem:[#allocation25_spill] sm:$0xff]  ;;  %v5042_v28 = vld [vmem:[#allocation27_spill] sm:$0xff]  ;;  %v5046_v20 = vld [vmem:[#allocation34_spill] sm:$0xff] }
 0x204   :  { %v4571_v22 = vsel %vm5033_vm15, %v5032_v2, %v1573_v51  ;;  %vm5036_vm6 = vcmp.ge.f32.partialorder %v5035_v26, 0.0  ;;  %v4586_v52 = vsel %vm1512_vm1, %v4972_v59, %v1576_v39  ;;  %v4591_v51 = vsel %vm1513_vm5, %v4973_v29, %v1577_v13  ;;  %v5044_v45 = vld [vmem:[#allocation31_spill] sm:$0xff]  ;;  %v5045_v8 = vld [vmem:[#allocation33_spill] sm:$0xff]  ;;  %v5047_v12 = vld [vmem:[#allocation36_spill] sm:$0xff] }
 0x205   :  { %v4581_v6 = vsel %vm5036_vm6, %v5035_v26, %v1575_v54  ;;  %5038 = vst [vmem:[#allocation12_spill] sm:$0xff] %v4586_v52  ;;  %v2555_v10 = vpack.c.bf16 %v5040_v37, %v5039_v42  ;;  %v2560_v16 = vpack.c.bf16 %v5042_v28, %v5041_v18  ;;  %v2565_v54 = vpack.c.bf16 %v5044_v45, %v5043_v21  ;;  %v5048_v59 = vld [vmem:[#allocation38_spill] sm:$0xff]  ;;  %v5050_v52 = vld [vmem:[#allocation43_spill] sm:$0xff]  ;;  %v5051_v13 = vld [vmem:[#allocation44_spill] sm:$0xff] }
 0x206   :  { %5037 = vst [vmem:[#allocation26_spill] sm:$0xff] %v4581_v6  ;;  %v2570_v2 = vpack.c.bf16 %v5046_v20, %v5045_v8  ;;  %v2575_v39 = vpack.c.bf16 %v5048_v59, %v5047_v12  ;;  %v5049_v26 = vld [vmem:[#allocation42_spill] sm:$0xff]  ;;  %v5052_v29 = vld [vmem:[#allocation47_spill] sm:$0xff]  ;;  %v5055_v21 = vld [vmem:[#allocation56_spill] sm:$0xff] }
 0x207   :  { %v2580_v6 = vpack.c.bf16 %v5050_v52, %v5049_v26  ;;  %2556 = vst [vmem:[%s4757_s4] sm:$0xff] %v2555_v10   ;;  %2774 = vst [vmem:[%s4757_s4 + $0x8] sm:$0xff] %v2560_v16   ;;  %v2585_v42 = vpack.c.bf16 %v5052_v29, %v5051_v13  ;;  %v5053_v37 = vld [vmem:[#allocation51_spill] sm:$0xff]  ;;  %v2600_v52 = vpack.c.bf16 %v4337_v24, %v4328_v11 }
 0x208   :  { %v5054_v18 = vld [vmem:[#allocation55_spill] sm:$0xff]  ;;  %2775 = vst [vmem:[%s4757_s4 + $0x10] sm:$0xff] %v2565_v54   ;;  %2776 = vst [vmem:[%s4757_s4 + $0x18] sm:$0xff] %v2570_v2   ;;  %v2605_v10 = vpack.c.bf16 %v4349_v34, %v4343_v35  ;;  %v2610_v24 = vpack.c.bf16 %v4361_v60, %v4355_v5  ;;  %v2615_v11 = vpack.c.bf16 %v4373_v14, %v4367_v40 }
 0x209   :  { %v2590_v28 = vpack.c.bf16 %v5054_v18, %v5053_v37  ;;  %v5056_v45 = vld [vmem:[#allocation7_spill] sm:$0xff]  ;;  %2777 = vst [vmem:[%s4757_s4 + $0x20] sm:$0xff] %v2575_v39   ;;  %2778 = vst [vmem:[%s4757_s4 + $0x28] sm:$0xff] %v2580_v6   ;;  %v2620_v16 = vpack.c.bf16 %v4385_v31, %v4379_v49  ;;  %v2625_v35 = vpack.c.bf16 %v4397_v1, %v4391_v17 }
 0x20a   :  { %v2595_v8 = vpack.c.bf16 %v5056_v45, %v5055_v21  ;;  %2779 = vst [vmem:[%s4757_s4 + $0x30] sm:$0xff] %v2585_v42   ;;  %2782 = vst [vmem:[%s4757_s4 + $0x48] sm:$0xff] %v2600_v52   ;;  %v2630_v34 = vpack.c.bf16 %v4409_v0, %v4403_v7  ;;  %v2635_v5 = vpack.c.bf16 %v4421_v36, %v4415_v33 }
 0x20b   :  { %2780 = vst [vmem:[%s4757_s4 + $0x38] sm:$0xff] %v2590_v28   ;;  %v2640_v60 = vpack.c.bf16 %v4433_v55, %v4427_v44  ;;  %2783 = vst [vmem:[%s4757_s4 + $0x50] sm:$0xff] %v2605_v10   ;;  %v2645_v40 = vpack.c.bf16 %v4445_v53, %v4439_v56  ;;  %v2650_v14 = vpack.c.bf16 %v4457_v50, %v4451_v9 }
 0x20c   :  { %2781 = vst [vmem:[%s4757_s4 + $0x40] sm:$0xff] %v2595_v8   ;;  %2784 = vst [vmem:[%s4757_s4 + $0x58] sm:$0xff] %v2610_v24   ;;  %v2655_v49 = vpack.c.bf16 %v4469_v27, %v4463_v32  ;;  %v2660_v31 = vpack.c.bf16 %v4481_v38, %v4475_v48  ;;  %v2665_v17 = vpack.c.bf16 %v4493_v15, %v4487_v4  ;;  %v5058_v9 = vld [vmem:[#allocation12_spill] sm:$0xff] }
 0x20d   :  { %2785 = vst [vmem:[%s4757_s4 + $0x60] sm:$0xff] %v2615_v11   ;;  %2786 = vst [vmem:[%s4757_s4 + $0x68] sm:$0xff] %v2620_v16   ;;  %v2670_v1 = vpack.c.bf16 %v4505_v61, %v4499_v63  ;;  %v2675_v7 = vpack.c.bf16 %v4517_v62, %v4511_v19  ;;  %v2680_v0 = vpack.c.bf16 %v4529_v46, %v4523_v30  ;;  %v5057_v56 = vld [vmem:[#allocation26_spill] sm:$0xff] }
 0x20e   :  { %2787 = vst [vmem:[%s4757_s4 + $0x70] sm:$0xff] %v2625_v35   ;;  %2788 = vst [vmem:[%s4757_s4 + $0x78] sm:$0xff] %v2630_v34   ;;  %v2685_v33 = vpack.c.bf16 %v4541_v57, %v4535_v3  ;;  %v2690_v36 = vpack.c.bf16 %v4551_v41, %v4546_v43  ;;  %v2695_v44 = vpack.c.bf16 %v4561_v25, %v4556_v23 }
 0x20f   :  { %2789 = vst [vmem:[%s4757_s4 + $0x80] sm:$0xff] %v2635_v5   ;;  %2790 = vst [vmem:[%s4757_s4 + $0x88] sm:$0xff] %v2640_v60   ;;  %v2700_v55 = vpack.c.bf16 %v4571_v22, %v4566_v47  ;;  %v2705_v53 = vpack.c.bf16 %v5057_v56, %v4576_v58  ;;  %v2710_v50 = vpack.c.bf16 %v4591_v51, %v5058_v9 }
 0x210   :  { %2791 = vst [vmem:[%s4757_s4 + $0x90] sm:$0xff] %v2645_v40   ;;  %2792 = vst [vmem:[%s4757_s4 + $0x98] sm:$0xff] %v2650_v14  }
 0x211   :  { %2793 = vst [vmem:[%s4757_s4 + $0xa0] sm:$0xff] %v2655_v49   ;;  %2794 = vst [vmem:[%s4757_s4 + $0xa8] sm:$0xff] %v2660_v31  }
 0x212   :  { %2795 = vst [vmem:[%s4757_s4 + $0xb0] sm:$0xff] %v2665_v17   ;;  %2796 = vst [vmem:[%s4757_s4 + $0xb8] sm:$0xff] %v2670_v1  }
 0x213   :  { %2797 = vst [vmem:[%s4757_s4 + $0xc0] sm:$0xff] %v2675_v7   ;;  %2798 = vst [vmem:[%s4757_s4 + $0xc8] sm:$0xff] %v2680_v0  }
 0x214   :  { %2799 = vst [vmem:[%s4757_s4 + $0xd0] sm:$0xff] %v2685_v33   ;;  %2800 = vst [vmem:[%s4757_s4 + $0xd8] sm:$0xff] %v2690_v36  }
 0x215   :  { %2801 = vst [vmem:[%s4757_s4 + $0xe0] sm:$0xff] %v2695_v44   ;;  %2802 = vst [vmem:[%s4757_s4 + $0xe8] sm:$0xff] %v2700_v55  }
 0x216   :  { %2803 = vst [vmem:[%s4757_s4 + $0xf0] sm:$0xff] %v2705_v53   ;;  %2804 = vst [vmem:[%s4757_s4 + $0xf8] sm:$0xff] %v2710_v50  }

// kernel: discriminator_forward.6
= control target key start
LH: loop header
LB: loop body
LE: loop exit
PB: predicated region body
PF: predicated region fallthrough
CT: control target
= control target key end

     0   :  { %v1072_v32 = vmov 0.0   ;;  %s1284_s1 = inlined_call_operand.vmem [shape: bf16[256,128], index: 1, kind: input, shape index: {}]   ;;  %s1285_s0 = inlined_call_operand.vmem [shape: bf16[128,256], index: 0, kind: input, shape index: {}]   ;;  %s1286_s2 = inlined_call_operand.vmem [shape: f32[1,128], index: 2, kind: input, shape index: {}]   ;;  %s1287_s3 = inlined_call_operand.vmem [shape: f32[1,128], index: 3, kind: input, shape index: {}]   ;;  %s1288_s4 = inlined_call_operand.vmem [shape: bf16[128,128], index: 4, kind: output, shape index: {}]  }
   0x1   :  { %v1030_v0 = vld [vmem:[%s1284_s1 + $0x40] sm:$0xff]   ;;  %v1032_v2 = vld [vmem:[%s1284_s1 + $0x48] sm:$0xff]   ;;  %v1034_v4 = vld [vmem:[%s1284_s1 + $0x50] sm:$0xff]   ;;  %343 = vst [vmem:[#allocation2] sm:$0x1] %v1072_v32 }
   0x2   :  { %v1031_v1 = vld [vmem:[%s1284_s1] sm:$0xff]   ;;  %949 = vmatprep.subr.bf16.mxu0 %v1030_v0  ;;  %1013 = vmatprep.subr.bf16.mxu1 %v1030_v0  ;;  %v1033_v3 = vld [vmem:[%s1284_s1 + $0x8] sm:$0xff]   ;;  %v1035_v5 = vld [vmem:[%s1284_s1 + $0x10] sm:$0xff]   ;;  %344 = vst [vmem:[#allocation3] sm:$0x1] %v1072_v32 }
   0x3   :  { %950 = vmatpush3.bf16.msra.mxu0 %v1031_v1  ;;  %1021 = vmatpush3.bf16.msra.mxu1 %v1031_v1  ;;  %v1036_v6 = vld [vmem:[%s1284_s1 + $0x58] sm:$0xff]   ;;  %v1038_v8 = vld [vmem:[%s1284_s1 + $0x60] sm:$0xff]   ;;  %v1040_v10 = vld [vmem:[%s1284_s1 + $0x68] sm:$0xff]  }
   0x4   :  { %951 = vmatprep.subr.bf16.mxu0 %v1032_v2  ;;  %1014 = vmatprep.subr.bf16.mxu1 %v1032_v2  ;;  %v1037_v7 = vld [vmem:[%s1284_s1 + $0x18] sm:$0xff]   ;;  %v1039_v9 = vld [vmem:[%s1284_s1 + $0x20] sm:$0xff]   ;;  %v1041_v12 = vld [vmem:[%s1284_s1 + $0x28] sm:$0xff]  }
   0x5   :  { %v1048_v11 = vld [vmem:[%s1285_s0 + $0x4] ss:$8 sps:$4 sm:$0xff]   ;;  %v1042_v14 = vld [vmem:[%s1284_s1 + $0x70] sm:$0xff]   ;;  %v1044_v16 = vld [vmem:[%s1284_s1 + $0x78] sm:$0xff]  }
   0x6   :  { %v1054_v13 = vld [vmem:[%s1285_s0 + $0x44] ss:$8 sps:$4 sm:$0xff]   ;;  %274 = vmatprep.mubr.bf16.mxu0 %v1048_v11  ;;  %v1043_v15 = vld [vmem:[%s1284_s1 + $0x30] sm:$0xff]   ;;  %v1045_v17 = vld [vmem:[%s1284_s1 + $0x38] sm:$0xff]  }
   0x7   :  { %952 = vmatpush3.bf16.msra.mxu0 %v1033_v3  ;;  %1022 = vmatpush3.bf16.msra.mxu1 %v1033_v3  ;;  %v1046_v18 = vld [vmem:[%s1285_s0] ss:$8 sps:$4 sm:$0xff]   ;;  %v1049_v20 = vld [vmem:[%s1285_s0 + $0x14] ss:$8 sps:$4 sm:$0xff]   ;;  %v1051_v22 = vld [vmem:[%s1285_s0 + $0x10] ss:$8 sps:$4 sm:$0xff]  }
   0x8   :  { %953 = vmatprep.subr.bf16.mxu0 %v1034_v4  ;;  %1015 = vmatprep.subr.bf16.mxu1 %v1034_v4  ;;  %v1052_v19 = vld [vmem:[%s1285_s0 + $0x40] ss:$8 sps:$4 sm:$0xff]   ;;  %v1058_v21 = vld [vmem:[%s1285_s0 + $0x54] ss:$8 sps:$4 sm:$0xff]   ;;  %v1060_v23 = vld [vmem:[%s1285_s0 + $0x50] ss:$8 sps:$4 sm:$0xff]  }
   0x9   :  { %306 = vmatprep.mubr.bf16.mxu1 %v1054_v13  ;;  %v1055_v24 = vld [vmem:[%s1285_s0 + $0x24] ss:$8 sps:$4 sm:$0xff]   ;;  %v1057_v26 = vld [vmem:[%s1285_s0 + $0x20] ss:$8 sps:$4 sm:$0xff]   ;;  %v1061_v28 = vld [vmem:[%s1285_s0 + $0x34] ss:$8 sps:$4 sm:$0xff]  }
   0xa   :  { %v1064_v25 = vld [vmem:[%s1285_s0 + $0x64] ss:$8 sps:$4 sm:$0xff]   ;;  %v1066_v27 = vld [vmem:[%s1285_s0 + $0x60] ss:$8 sps:$4 sm:$0xff]   ;;  %v1067_v29 = vld [vmem:[%s1285_s0 + $0x74] ss:$8 sps:$4 sm:$0xff]  }
   0xb   :  { %954 = vmatpush3.bf16.msra.mxu0 %v1035_v5  ;;  %1023 = vmatpush3.bf16.msra.mxu1 %v1035_v5  ;;  %v1063_v30 = vld [vmem:[%s1285_s0 + $0x30] ss:$8 sps:$4 sm:$0xff]  }
   0xc   :  { %955 = vmatprep.subr.bf16.mxu0 %v1036_v6  ;;  %1016 = vmatprep.subr.bf16.mxu1 %v1036_v6  ;;  %v1069_v31 = vld [vmem:[%s1285_s0 + $0x70] ss:$8 sps:$4 sm:$0xff]  }
   0xf   :  { %956 = vmatpush3.bf16.msra.mxu0 %v1037_v7  ;;  %1024 = vmatpush3.bf16.msra.mxu1 %v1037_v7 }
  0x10   :  { %957 = vmatprep.subr.bf16.mxu0 %v1038_v8  ;;  %1017 = vmatprep.subr.bf16.mxu1 %v1038_v8 }
  0x13   :  { %958 = vmatpush3.bf16.msra.mxu0 %v1039_v9  ;;  %1025 = vmatpush3.bf16.msra.mxu1 %v1039_v9 }
  0x14   :  { %959 = vmatprep.subr.bf16.mxu0 %v1040_v10  ;;  %1018 = vmatprep.subr.bf16.mxu1 %v1040_v10 }
  0x17   :  { %960 = vmatpush3.bf16.msra.mxu0 %v1041_v12  ;;  %1026 = vmatpush3.bf16.msra.mxu1 %v1041_v12 }
  0x18   :  { %961 = vmatprep.subr.bf16.mxu0 %v1042_v14  ;;  %1019 = vmatprep.subr.bf16.mxu1 %v1042_v14 }
  0x1b   :  { %962 = vmatpush3.bf16.msra.mxu0 %v1043_v15  ;;  %1027 = vmatpush3.bf16.msra.mxu1 %v1043_v15 }
  0x1c   :  { %963 = vmatprep.subr.bf16.mxu0 %v1044_v16  ;;  %1020 = vmatprep.subr.bf16.mxu1 %v1044_v16 }
  0x1f   :  { %964 = vmatpush3.bf16.msra.mxu0 %v1045_v17  ;;  %1028 = vmatpush3.bf16.msra.mxu1 %v1045_v17 }
  0x22   :  { %275 = vmatmul.mubr.bf16.vlgmr.msra.gmra.mrb[0].mxu0 %v1046_v18  ;;  %307 = vmatmul.mubr.bf16.vlgmr.msra.gmra.mrb[0].mxu1 %v1052_v19 }
  0x23   :  { %282 = vmatprep.mubr.bf16.mxu0 %v1049_v20  ;;  %314 = vmatprep.mubr.bf16.mxu1 %v1058_v21 }
  0x2a   :  { %283 = vmatmul.mubr.bf16.gmra.mrb[4].mxu0 %v1051_v22  ;;  %315 = vmatmul.mubr.bf16.gmra.mrb[4].mxu1 %v1060_v23 }
  0x2b   :  { %290 = vmatprep.mubr.bf16.mxu0 %v1055_v24  ;;  %322 = vmatprep.mubr.bf16.mxu1 %v1064_v25 }
  0x32   :  { %291 = vmatmul.mubr.bf16.gmra.mrb[8].mxu0 %v1057_v26  ;;  %323 = vmatmul.mubr.bf16.gmra.mrb[8].mxu1 %v1066_v27 }
  0x33   :  { %298 = vmatprep.mubr.bf16.mxu0 %v1061_v28  ;;  %330 = vmatprep.mubr.bf16.mxu1 %v1067_v29 }
  0x3a   :  { %299 = vmatmul.mubr.bf16.gmra.mrb[12].mxu0 %v1063_v30  ;;  %331 = vmatmul.mubr.bf16.gmra.mrb[12].mxu1 %v1069_v31 }
  0xf5   :  { %v965_v33 = vpop.f32.mrb[0].mxu0  ;;  %v989_v34 = vpop.f32.mrb[0].mxu1 }
  0xf6   :  { %v966_v35 = vpop.f32.mrb[1].mxu0  ;;  %v990_v36 = vpop.f32.mrb[1].mxu1 }
  0xf7   :  { %v967_v37 = vadd.f32 %v966_v35, %v965_v33  ;;  %v968_v38 = vpop.f32.mrb[2].mxu0  ;;  %v1194_v39 = vadd.f32 %v990_v36, %v989_v34  ;;  %v992_v40 = vpop.f32.mrb[2].mxu1 }
  0xf8   :  { %v969_v41 = vpop.f32.mrb[3].mxu0  ;;  %v993_v42 = vpop.f32.mrb[3].mxu1 }
  0xf9   :  { %v970_v43 = vadd.f32 %v969_v41, %v968_v38  ;;  %v1196_v44 = vadd.f32 %v993_v42, %v992_v40  ;;  %v370_v45 = vmul.f32 %v967_v37, %v967_v37 }
  0xfb   :  { %v346_v46 = vadd.f32 %v970_v43, %v967_v37  ;;  %v371_v47 = vmul.f32 %v970_v43, %v970_v43  ;;  %v1198_v48 = vpack.c.bf16 %v970_v43, %v967_v37  ;;  %v1202_v49 = vpack.c.bf16 %v1196_v44, %v1194_v39 }
  0xfd   :  { %v386_v50 = vadd.f32 %v371_v47, %v370_v45  ;;  %v971_v51 = vpop.f32.mrb[4].mxu0  ;;  %v995_v52 = vpop.f32.mrb[4].mxu1 }
  0xfe   :  { %v972_v53 = vpop.f32.mrb[5].mxu0  ;;  %v996_v54 = vpop.f32.mrb[5].mxu1 }
  0xff   :  { %v973_v55 = vadd.f32 %v972_v53, %v971_v51  ;;  %v974_v56 = vpop.f32.mrb[6].mxu0  ;;  %v997_v57 = vadd.f32 %v996_v54, %v995_v52  ;;  %v998_v58 = vpop.f32.mrb[6].mxu1  ;;  %v379_v53 = vmul.f32 %v1196_v44, %v1196_v44 }
 0x100   :  { %v975_v59 = vpop.f32.mrb[7].mxu0  ;;  %v999_v60 = vpop.f32.mrb[7].mxu1 }
 0x101   :  { %v347_v61 = vadd.f32 %v973_v55, %v346_v46  ;;  %v372_v62 = vmul.f32 %v973_v55, %v973_v55  ;;  %v976_v63 = vadd.f32 %v975_v59, %v974_v56  ;;  %v1000_v0 = vadd.f32 %v999_v60, %v998_v58 }
 0x102   :  { %v380_v56 = vmul.f32 %v997_v57, %v997_v57 }
 0x103   :  { %v387_v1 = vadd.f32 %v386_v50, %v372_v62  ;;  %v348_v2 = vadd.f32 %v976_v63, %v347_v61  ;;  %v373_v3 = vmul.f32 %v976_v63, %v976_v63  ;;  %v1204_v4 = vpack.c.bf16 %v976_v63, %v973_v55 }
 0x104   :  { %v1206_v5 = vpack.c.bf16 %v1000_v0, %v997_v57  ;;  %v378_v50 = vmul.f32 %v1194_v39, %v1194_v39  ;;  %v381_v60 = vmul.f32 %v1000_v0, %v1000_v0 }
 0x105   :  { %v388_v6 = vadd.f32 %v387_v1, %v373_v3  ;;  %v977_v7 = vpop.f32.mrb[8].mxu0  ;;  %v1001_v8 = vpop.f32.mrb[8].mxu1 }
 0x106   :  { %v978_v9 = vpop.f32.mrb[9].mxu0  ;;  %v1002_v10 = vpop.f32.mrb[9].mxu1 }
 0x107   :  { %v979_v11 = vadd.f32 %v978_v9, %v977_v7  ;;  %v980_v12 = vpop.f32.mrb[10].mxu0  ;;  %v1003_v13 = vadd.f32 %v1002_v10, %v1001_v8  ;;  %v1004_v14 = vpop.f32.mrb[10].mxu1 }
 0x108   :  { %v981_v15 = vpop.f32.mrb[11].mxu0  ;;  %v1005_v16 = vpop.f32.mrb[11].mxu1 }
 0x109   :  { %v349_v17 = vadd.f32 %v979_v11, %v348_v2  ;;  %v374_v18 = vmul.f32 %v979_v11, %v979_v11  ;;  %v982_v19 = vadd.f32 %v981_v15, %v980_v12  ;;  %v1006_v20 = vadd.f32 %v1005_v16, %v1004_v14 }
 0x10a   :  { %v382_v1 = vmul.f32 %v1003_v13, %v1003_v13 }
 0x10b   :  { %v389_v21 = vadd.f32 %v388_v6, %v374_v18  ;;  %v350_v22 = vadd.f32 %v982_v19, %v349_v17  ;;  %v375_v23 = vmul.f32 %v982_v19, %v982_v19  ;;  %v1208_v24 = vpack.c.bf16 %v982_v19, %v979_v11 }
 0x10c   :  { %v1210_v25 = vpack.c.bf16 %v1006_v20, %v1003_v13  ;;  %v383_v7 = vmul.f32 %v1006_v20, %v1006_v20 }
 0x10d   :  { %v390_v26 = vadd.f32 %v389_v21, %v375_v23  ;;  %v983_v27 = vpop.f32.mrb[12].mxu0  ;;  %v1007_v28 = vpop.f32.mrb[12].mxu1  ;;  %v345_v21 = vld [vmem:[#allocation2] sm:$0x1] }
 0x10e   :  { %v984_v29 = vpop.f32.mrb[13].mxu0  ;;  %v1008_v30 = vpop.f32.mrb[13].mxu1 }
 0x10f   :  { %v985_v31 = vadd.f32 %v984_v29, %v983_v27  ;;  %v986_v32 = vpop.f32.mrb[14].mxu0  ;;  %v1009_v33 = vadd.f32 %v1008_v30, %v1007_v28  ;;  %v1010_v34 = vpop.f32.mrb[14].mxu1 }
 0x110   :  { %v987_v35 = vpop.f32.mrb[15].mxu0  ;;  %v1011_v36 = vpop.f32.mrb[15].mxu1 }
 0x111   :  { %v351_v37 = vadd.f32 %v985_v31, %v350_v22  ;;  %v376_v38 = vmul.f32 %v985_v31, %v985_v31  ;;  %v988_v40 = vadd.f32 %v987_v35, %v986_v32  ;;  %v1012_v41 = vadd.f32 %v1011_v36, %v1010_v34 }
 0x112   :  { %v543_v36 = vlaneseq }
 0x113   :  { %v391_v42 = vadd.f32 %v390_v26, %v376_v38  ;;  %v352_v43 = vadd.f32 %v988_v40, %v351_v37  ;;  %v377_v45 = vmul.f32 %v988_v40, %v988_v40  ;;  %v1212_v46 = vpack.c.bf16 %v988_v40, %v985_v31  ;;  %v505_v38 = vld [vmem:[%s1286_s2] sm:$0x1] }
 0x114   :  { %v1214_v47 = vpack.c.bf16 %v1012_v41, %v1009_v33  ;;  %v385_v12 = vmul.f32 %v1012_v41, %v1012_v41  ;;  %v544_v37 = vshrl.u32 %v543_v36, 7 }
 0x115   :  { %v353_v51 = vadd.f32 %v1194_v39, %v352_v43  ;;  %v392_v52 = vadd.f32 %v391_v42, %v377_v45  ;;  %v384_v39 = vmul.f32 %v1009_v33, %v1009_v33  ;;  %v858_v43 = vunpack.c.l.bf16 %v1198_v48 }
 0x116   :  { %v545_v40 = vsub.s32 0, %v544_v37  ;;  %v859_v45 = vunpack.c.h.bf16 %v1198_v48  ;;  %v878_v48 = vunpack.c.l.bf16 %v1206_v5 }
 0x117   :  { %v354_v54 = vadd.f32 %v1196_v44, %v353_v51  ;;  %v393_v55 = vadd.f32 %v392_v52, %v378_v50  ;;  %v874_v50 = vunpack.c.l.bf16 %v1202_v49  ;;  %v875_v51 = vunpack.c.h.bf16 %v1202_v49  ;;  %v507_v52 = vld [vmem:[%s1287_s3] sm:$0x1] }
 0x118   :  { %v870_v49 = vunpack.c.l.bf16 %v1212_v46 }
 0x119   :  { %v394_v58 = vadd.f32 %v393_v55, %v379_v53  ;;  %v355_v59 = vadd.f32 %v997_v57, %v354_v54  ;;  %v862_v53 = vunpack.c.l.bf16 %v1204_v4  ;;  %v863_v54 = vunpack.c.h.bf16 %v1204_v4 }
 0x11a   :  { %v886_v4 = vunpack.c.l.bf16 %v1214_v47 }
 0x11b   :  { %v356_v61 = vadd.f32 %v1000_v0, %v355_v59  ;;  %v395_v62 = vadd.f32 %v394_v58, %v380_v56  ;;  %v866_v58 = vunpack.c.l.bf16 %v1208_v24  ;;  %v867_v59 = vunpack.c.h.bf16 %v1208_v24 }
 0x11d   :  { %v357_v63 = vadd.f32 %v1003_v13, %v356_v61  ;;  %v396_v2 = vadd.f32 %v395_v62, %v381_v60  ;;  %v879_v60 = vunpack.c.h.bf16 %v1206_v5  ;;  %v882_v61 = vunpack.c.l.bf16 %v1210_v25 }
 0x11e   :  { %v883_v62 = vunpack.c.h.bf16 %v1210_v25 }
 0x11f   :  { %v397_v3 = vadd.f32 %v396_v2, %v382_v1  ;;  %v358_v6 = vadd.f32 %v1006_v20, %v357_v63  ;;  %v369_v20 = vld [vmem:[#allocation3] sm:$0x1]  ;;  %v871_v1 = vunpack.c.h.bf16 %v1212_v46  ;;  %v887_v2 = vunpack.c.h.bf16 %v1214_v47 }
 0x121   :  { %v398_v8 = vadd.f32 %v397_v3, %v383_v7  ;;  %v359_v9 = vadd.f32 %v1009_v33, %v358_v6 }
 0x123   :  { %v399_v10 = vadd.f32 %v398_v8, %v384_v39  ;;  %v360_v11 = vadd.f32 %v1012_v41, %v359_v9 }
 0x125   :  { %v361_v44 = vrot.slane %v360_v11, 4  ;;  %v400_v14 = vadd.f32 %v399_v10, %v385_v12 }
 0x127   :  { %v362_v15 = vadd.f32 %v361_v44, %v360_v11  ;;  %v401_v16 = vrot.slane %v400_v14, 4 }
 0x129   :  { %v363_v57 = vrot.slane %v362_v15, 2  ;;  %v402_v17 = vadd.f32 %v401_v16, %v400_v14 }
 0x12b   :  { %v364_v0 = vadd.f32 %v363_v57, %v362_v15  ;;  %v403_v18 = vrot.slane %v402_v17, 2 }
 0x12d   :  { %v365_v19 = vrot.slane %v364_v0, 1  ;;  %v404_v13 = vadd.f32 %v403_v18, %v402_v17 }
 0x12f   :  { %v366_v22 = vadd.f32 %v365_v19, %v364_v0  ;;  %v405_v23 = vrot.slane %v404_v13, 1 }
 0x131   :  { %v367_v26 = vadd.f32 %v366_v22, %v345_v21  ;;  %v406_v27 = vadd.f32 %v405_v23, %v404_v13 }
 0x133   :  { %368 = vst [vmem:[#allocation2] sm:$0x1] %v367_v26  ;;  %v407_v28 = vadd.f32 %v406_v27, %v369_v20 }
 0x135   :  { %408 = vst [vmem:[#allocation3] sm:$0x1] %v407_v28 }
 0x13a   :  { %v497_v29 = vld [vmem:[#allocation2] sm:$0x1] }
 0x13b   :  { %v498_v30 = vmul.f32 0.0078125, %v497_v29 }
 0x13c   :  { %v499_v31 = vld [vmem:[#allocation3] sm:$0x1] }
 0x13d   :  { %v500_v32 = vmul.f32 0.0078125, %v499_v31  ;;  %v501_v33 = vmul.f32 %v498_v30, %v498_v30 }
 0x13f   :  { %v502_v34 = vsub.f32 %v500_v32, %v501_v33 }
 0x141   :  { %v503_v35 = vadd.f32 1e-05, %v502_v34 }
 0x143   :  { %1070 = vrsqrt.f32 %v503_v35 }
 0x14d   :  { %v1071_v41 = vpop.eup %1070 }
 0x14e   :  { %v506_v42 = vmul.f32 %v1071_v41, %v505_v38 }
 0x150   :  { %v508_v55 = vmul.f32 %v506_v42, %v498_v30  ;;  %v546_v56 = vrot.slane %v506_v42, %v545_v40 }
 0x152   :  { %v509_v63 = vsub.f32 %v507_v52, %v508_v55  ;;  %v548_v3 = vmul.f32 %v858_v43, %v546_v56  ;;  %v549_v6 = vmul.f32 %v859_v45, %v546_v56  ;;  %v550_v24 = vmul.f32 %v862_v53, %v546_v56 }
 0x153   :  { %v551_v7 = vmul.f32 %v863_v54, %v546_v56  ;;  %v552_v39 = vmul.f32 %v866_v58, %v546_v56  ;;  %v553_v8 = vmul.f32 %v867_v59, %v546_v56  ;;  %v554_v5 = vmul.f32 %v870_v49, %v546_v56 }
 0x154   :  { %v555_v9 = vmul.f32 %v871_v1, %v546_v56  ;;  %v556_v10 = vmul.f32 %v874_v50, %v546_v56  ;;  %v557_v11 = vmul.f32 %v875_v51, %v546_v56  ;;  %v558_v12 = vmul.f32 %v878_v48, %v546_v56 }
 0x155   :  { %v559_v44 = vmul.f32 %v879_v60, %v546_v56  ;;  %v568_v25 = vrot.slane %v509_v63, %v545_v40  ;;  %v560_v14 = vmul.f32 %v882_v61, %v546_v56  ;;  %v561_v15 = vmul.f32 %v883_v62, %v546_v56 }
 0x156   :  { %v562_v46 = vmul.f32 %v886_v4, %v546_v56  ;;  %v563_v16 = vmul.f32 %v887_v2, %v546_v56 }
 0x157   :  { %v570_v57 = vadd.f32 %v568_v25, %v548_v3  ;;  %v571_v17 = vadd.f32 %v568_v25, %v549_v6  ;;  %v572_v47 = vadd.f32 %v568_v25, %v550_v24  ;;  %v573_v0 = vadd.f32 %v568_v25, %v551_v7 }
 0x158   :  { %v574_v18 = vadd.f32 %v568_v25, %v552_v39  ;;  %v575_v19 = vadd.f32 %v568_v25, %v553_v8  ;;  %v576_v13 = vadd.f32 %v568_v25, %v554_v5  ;;  %v577_v21 = vadd.f32 %v568_v25, %v555_v9 }
 0x159   :  { %v578_v22 = vadd.f32 %v568_v25, %v556_v10  ;;  %v579_v23 = vadd.f32 %v568_v25, %v557_v11  ;;  %v580_v20 = vadd.f32 %v568_v25, %v558_v12  ;;  %v581_v26 = vadd.f32 %v568_v25, %v559_v44 }
 0x15a   :  { %v582_v27 = vadd.f32 %v568_v25, %v560_v14  ;;  %v583_v28 = vadd.f32 %v568_v25, %v561_v15  ;;  %v584_v29 = vadd.f32 %v568_v25, %v562_v46  ;;  %v585_v30 = vadd.f32 %v568_v25, %v563_v16 }
 0x15b   :  { %vm586_vm0 = vcmp.ge.f32.partialorder %v570_v57, 0.0  ;;  %vm587_vm1 = vcmp.ge.f32.partialorder %v571_v17, 0.0  ;;  %vm588_vm2 = vcmp.ge.f32.partialorder %v572_v47, 0.0  ;;  %vm589_vm3 = vcmp.ge.f32.partialorder %v573_v0, 0.0 }
 0x15c   :  { %vm590_vm4 = vcmp.ge.f32.partialorder %v574_v18, 0.0  ;;  %vm591_vm5 = vcmp.ge.f32.partialorder %v575_v19, 0.0  ;;  %vm592_vm6 = vcmp.ge.f32.partialorder %v576_v13, 0.0  ;;  %vm593_vm7 = vcmp.ge.f32.partialorder %v577_v21, 0.0 }
 0x15d   :  { %vm594_vm8 = vcmp.ge.f32.partialorder %v578_v22, 0.0  ;;  %vm595_vm9 = vcmp.ge.f32.partialorder %v579_v23, 0.0  ;;  %vm596_vm10 = vcmp.ge.f32.partialorder %v580_v20, 0.0  ;;  %vm597_vm11 = vcmp.ge.f32.partialorder %v581_v26, 0.0 }
 0x15e   :  { %vm598_vm12 = vcmp.ge.f32.partialorder %v582_v27, 0.0  ;;  %vm599_vm13 = vcmp.ge.f32.partialorder %v583_v28, 0.0  ;;  %vm600_vm14 = vcmp.ge.f32.partialorder %v584_v29, 0.0  ;;  %vm601_vm15 = vcmp.ge.f32.partialorder %v585_v30, 0.0 }
 0x15f   :  { %v602_v31 = vmul.f32 0.2, %v570_v57  ;;  %v603_v32 = vmul.f32 0.2, %v571_v17  ;;  %v604_v33 = vmul.f32 0.2, %v572_v47 }
 0x160   :  { %v605_v34 = vmul.f32 0.2, %v573_v0  ;;  %v606_v35 = vmul.f32 0.2, %v574_v18  ;;  %v607_v36 = vmul.f32 0.2, %v575_v19 }
 0x161   :  { %v608_v37 = vmul.f32 0.2, %v576_v13  ;;  %v609_v38 = vmul.f32 0.2, %v577_v21  ;;  %v610_v40 = vmul.f32 0.2, %v578_v22  ;;  %v618_v41 = vsel %vm586_vm0, %v570_v57, %v602_v31 }
 0x162   :  { %v611_v42 = vmul.f32 0.2, %v579_v23  ;;  %v612_v43 = vmul.f32 0.2, %v580_v20  ;;  %v613_v45 = vmul.f32 0.2, %v581_v26  ;;  %v619_v50 = vsel %vm587_vm1, %v571_v17, %v603_v32 }
 0x163   :  { %v614_v51 = vmul.f32 0.2, %v582_v27  ;;  %v615_v52 = vmul.f32 0.2, %v583_v28  ;;  %v616_v53 = vmul.f32 0.2, %v584_v29  ;;  %v620_v54 = vsel %vm588_vm2, %v572_v47, %v604_v33 }
 0x164   :  { %v617_v55 = vmul.f32 0.2, %v585_v30  ;;  %v621_v56 = vsel %vm589_vm3, %v573_v0, %v605_v34  ;;  %v622_v58 = vsel %vm590_vm4, %v574_v18, %v606_v35  ;;  %v623_v59 = vsel %vm591_vm5, %v575_v19, %v607_v36 }
 0x165   :  { %v624_v48 = vsel %vm592_vm6, %v576_v13, %v608_v37  ;;  %v625_v60 = vsel %vm593_vm7, %v577_v21, %v609_v38  ;;  %v626_v49 = vsel %vm594_vm8, %v578_v22, %v610_v40  ;;  %v627_v61 = vsel %vm595_vm9, %v579_v23, %v611_v42 }
 0x166   :  { %v628_v62 = vsel %vm596_vm10, %v580_v20, %v612_v43  ;;  %v629_v63 = vsel %vm597_vm11, %v581_v26, %v613_v45  ;;  %v630_v1 = vsel %vm598_vm12, %v582_v27, %v614_v51  ;;  %v631_v4 = vsel %vm599_vm13, %v583_v28, %v615_v52 }
 0x167   :  { %v632_v2 = vsel %vm600_vm14, %v584_v29, %v616_v53  ;;  %v633_v3 = vsel %vm601_vm15, %v585_v30, %v617_v55  ;;  %v891_v6 = vpack.c.bf16 %v619_v50, %v618_v41  ;;  %v896_v24 = vpack.c.bf16 %v621_v56, %v620_v54 }
 0x168   :  { %v901_v7 = vpack.c.bf16 %v623_v59, %v622_v58  ;;  %v906_v39 = vpack.c.bf16 %v625_v60, %v624_v48  ;;  %v911_v8 = vpack.c.bf16 %v627_v61, %v626_v49  ;;  %v916_v5 = vpack.c.bf16 %v629_v63, %v628_v62 }
 0x169   :  { %892 = vst [vmem:[%s1288_s4] sm:$0xff] %v891_v6   ;;  %942 = vst [vmem:[%s1288_s4 + $0x8] sm:$0xff] %v896_v24   ;;  %v921_v9 = vpack.c.bf16 %v631_v4, %v630_v1  ;;  %v926_v10 = vpack.c.bf16 %v633_v3, %v632_v2 }
 0x16a   :  { %943 = vst [vmem:[%s1288_s4 + $0x10] sm:$0xff] %v901_v7   ;;  %944 = vst [vmem:[%s1288_s4 + $0x18] sm:$0xff] %v906_v39  }
 0x16b   :  { %945 = vst [vmem:[%s1288_s4 + $0x20] sm:$0xff] %v911_v8   ;;  %946 = vst [vmem:[%s1288_s4 + $0x28] sm:$0xff] %v916_v5  }
 0x16c   :  { %947 = vst [vmem:[%s1288_s4 + $0x30] sm:$0xff] %v921_v9   ;;  %948 = vst [vmem:[%s1288_s4 + $0x38] sm:$0xff] %v926_v10  }

// kernel: discriminator_forward.7
= control target key start
LH: loop header
LB: loop body
LE: loop exit
PB: predicated region body
PF: predicated region fallthrough
CT: control target
= control target key end

     0   :  { %v751_v40 = vmov 0.0   ;;  %s913_s1 = inlined_call_operand.vmem [shape: bf16[512,128], index: 1, kind: input, shape index: {}]   ;;  %s914_s0 = inlined_call_operand.vmem [shape: bf16[32,512], index: 0, kind: input, shape index: {}]   ;;  %s915_s2 = inlined_call_operand.vmem [shape: f32[1,128], index: 2, kind: input, shape index: {}]   ;;  %s916_s3 = inlined_call_operand.vmem [shape: f32[1,128], index: 3, kind: input, shape index: {}]   ;;  %s917_s4 = inlined_call_operand.vmem [shape: bf16[32,128], index: 4, kind: output, shape index: {}]  }
   0x1   :  { %v705_v0 = vld [vmem:[%s913_s1 + $0x40] sm:$0xff]   ;;  %v709_v4 = vld [vmem:[%s913_s1 + $0x48] sm:$0xff]   ;;  %v713_v8 = vld [vmem:[%s913_s1 + $0x50] sm:$0xff]   ;;  %424 = vst [vmem:[#allocation2] sm:$0x1] %v751_v40 }
   0x2   :  { %v706_v1 = vld [vmem:[%s913_s1 + $0xc0] sm:$0xff]   ;;  %648 = vmatprep.subr.bf16.mxu0 %v705_v0  ;;  %v710_v5 = vld [vmem:[%s913_s1 + $0xc8] sm:$0xff]   ;;  %v714_v9 = vld [vmem:[%s913_s1 + $0xd0] sm:$0xff]   ;;  %425 = vst [vmem:[#allocation3] sm:$0x1] %v751_v40  ;;  %v504_v40 = vlaneseq }
   0x3   :  { %v707_v2 = vld [vmem:[%s913_s1] sm:$0xff]   ;;  %676 = vmatprep.subr.bf16.mxu1 %v706_v1  ;;  %v711_v6 = vld [vmem:[%s913_s1 + $0x8] sm:$0xff]   ;;  %v715_v10 = vld [vmem:[%s913_s1 + $0x10] sm:$0xff]  }
   0x4   :  { %v708_v3 = vld [vmem:[%s913_s1 + $0x80] sm:$0xff]   ;;  %649 = vmatpush3.bf16.msra.mxu0 %v707_v2  ;;  %v712_v7 = vld [vmem:[%s913_s1 + $0x88] sm:$0xff]   ;;  %v716_v11 = vld [vmem:[%s913_s1 + $0x90] sm:$0xff]  }
   0x5   :  { %677 = vmatpush3.bf16.msra.mxu1 %v708_v3  ;;  %650 = vmatprep.subr.bf16.mxu0 %v709_v4  ;;  %v717_v12 = vld [vmem:[%s913_s1 + $0x58] sm:$0xff]   ;;  %v721_v16 = vld [vmem:[%s913_s1 + $0x60] sm:$0xff]   ;;  %v725_v20 = vld [vmem:[%s913_s1 + $0x68] sm:$0xff]  }
   0x6   :  { %678 = vmatprep.subr.bf16.mxu1 %v710_v5  ;;  %v718_v13 = vld [vmem:[%s913_s1 + $0xd8] sm:$0xff]   ;;  %v722_v17 = vld [vmem:[%s913_s1 + $0xe0] sm:$0xff]   ;;  %v726_v21 = vld [vmem:[%s913_s1 + $0xe8] sm:$0xff]  }
   0x7   :  { %v719_v14 = vld [vmem:[%s913_s1 + $0x18] sm:$0xff]   ;;  %v723_v18 = vld [vmem:[%s913_s1 + $0x20] sm:$0xff]   ;;  %v727_v22 = vld [vmem:[%s913_s1 + $0x28] sm:$0xff]  }
   0x8   :  { %651 = vmatpush3.bf16.msra.mxu0 %v711_v6  ;;  %v720_v15 = vld [vmem:[%s913_s1 + $0x98] sm:$0xff]   ;;  %v724_v19 = vld [vmem:[%s913_s1 + $0xa0] sm:$0xff]   ;;  %v728_v23 = vld [vmem:[%s913_s1 + $0xa8] sm:$0xff]  }
   0x9   :  { %679 = vmatpush3.bf16.msra.mxu1 %v712_v7  ;;  %652 = vmatprep.subr.bf16.mxu0 %v713_v8  ;;  %v729_v24 = vld [vmem:[%s913_s1 + $0x70] sm:$0xff]   ;;  %v733_v28 = vld [vmem:[%s913_s1 + $0x78] sm:$0xff]  }
   0xa   :  { %680 = vmatprep.subr.bf16.mxu1 %v714_v9  ;;  %v730_v25 = vld [vmem:[%s913_s1 + $0xf0] sm:$0xff]   ;;  %v734_v29 = vld [vmem:[%s913_s1 + $0xf8] sm:$0xff]  }
   0xb   :  { %v731_v26 = vld [vmem:[%s913_s1 + $0x30] sm:$0xff]   ;;  %v735_v30 = vld [vmem:[%s913_s1 + $0x38] sm:$0xff]  }
   0xc   :  { %653 = vmatpush3.bf16.msra.mxu0 %v715_v10  ;;  %v732_v27 = vld [vmem:[%s913_s1 + $0xb0] sm:$0xff]   ;;  %v736_v31 = vld [vmem:[%s913_s1 + $0xb8] sm:$0xff]  }
   0xd   :  { %681 = vmatpush3.bf16.msra.mxu1 %v716_v11  ;;  %654 = vmatprep.subr.bf16.mxu0 %v717_v12  ;;  %v737_v32 = vld [vmem:[%s914_s0] ss:$16 sps:$4 sm:$0xff]   ;;  %v739_v33 = vld [vmem:[%s914_s0 + $0x4] ss:$16 sps:$4 sm:$0xff]   ;;  %v740_v34 = vld [vmem:[%s914_s0 + $0x8] ss:$16 sps:$4 sm:$0xff]  }
   0xe   :  { %682 = vmatprep.subr.bf16.mxu1 %v718_v13  ;;  %v742_v35 = vld [vmem:[%s914_s0 + $0xc] ss:$16 sps:$4 sm:$0xff]   ;;  %354 = vmatprep.mubr.bf16.mxu0 %v739_v33  ;;  %v743_v36 = vld [vmem:[%s914_s0 + $0x24] ss:$16 sps:$4 sm:$0xff]   ;;  %v747_v38 = vld [vmem:[%s914_s0 + $0x20] ss:$16 sps:$4 sm:$0xff]  }
   0xf   :  { %403 = vmatprep.mubr.bf16.mxu1 %v742_v35  ;;  %v745_v37 = vld [vmem:[%s914_s0 + $0x2c] ss:$16 sps:$4 sm:$0xff]   ;;  %v748_v39 = vld [vmem:[%s914_s0 + $0x28] ss:$16 sps:$4 sm:$0xff]  }
  0x10   :  { %655 = vmatpush3.bf16.msra.mxu0 %v719_v14 }
  0x11   :  { %683 = vmatpush3.bf16.msra.mxu1 %v720_v15  ;;  %656 = vmatprep.subr.bf16.mxu0 %v721_v16 }
  0x12   :  { %684 = vmatprep.subr.bf16.mxu1 %v722_v17 }
  0x14   :  { %657 = vmatpush3.bf16.msra.mxu0 %v723_v18 }
  0x15   :  { %685 = vmatpush3.bf16.msra.mxu1 %v724_v19  ;;  %658 = vmatprep.subr.bf16.mxu0 %v725_v20 }
  0x16   :  { %686 = vmatprep.subr.bf16.mxu1 %v726_v21 }
  0x18   :  { %659 = vmatpush3.bf16.msra.mxu0 %v727_v22 }
  0x19   :  { %687 = vmatpush3.bf16.msra.mxu1 %v728_v23  ;;  %660 = vmatprep.subr.bf16.mxu0 %v729_v24 }
  0x1a   :  { %688 = vmatprep.subr.bf16.mxu1 %v730_v25 }
  0x1c   :  { %661 = vmatpush3.bf16.msra.mxu0 %v731_v26  ;;  %v426_v26 = vld [vmem:[#allocation2] sm:$0x1] }
  0x1d   :  { %689 = vmatpush3.bf16.msra.mxu1 %v732_v27  ;;  %662 = vmatprep.subr.bf16.mxu0 %v733_v28 }
  0x1e   :  { %690 = vmatprep.subr.bf16.mxu1 %v734_v29  ;;  %v438_v29 = vld [vmem:[#allocation3] sm:$0x1] }
  0x20   :  { %663 = vmatpush3.bf16.msra.mxu0 %v735_v30 }
  0x21   :  { %691 = vmatpush3.bf16.msra.mxu1 %v736_v31 }
  0x23   :  { %355 = vmatmul.mubr.bf16.vlgmr.msra.gmra.mrb[0].mxu0 %v737_v32 }
  0x24   :  { %404 = vmatmul.mubr.bf16.vlgmr.msra.gmra.mrb[0].mxu1 %v740_v34  ;;  %362 = vmatprep.mubr.bf16.mxu0 %v743_v36 }
  0x25   :  { %411 = vmatprep.mubr.bf16.mxu1 %v745_v37 }
  0x2b   :  { %363 = vmatmul.mubr.bf16.gmra.mrb[4].mxu0 %v747_v38 }
  0x2c   :  { %412 = vmatmul.mubr.bf16.gmra.mrb[4].mxu1 %v748_v39 }
  0xf6   :  { %v664_v41 = vpop.f32.mrb[0].mxu0 }
  0xf7   :  { %v692_v42 = vpop.f32.mrb[0].mxu1  ;;  %v665_v43 = vpop.f32.mrb[1].mxu0 }
  0xf8   :  { %v666_v44 = vadd.f32 %v665_v43, %v664_v41  ;;  %v693_v45 = vpop.f32.mrb[1].mxu1  ;;  %v667_v46 = vpop.f32.mrb[2].mxu0  ;;  %v505_v41 = vshrl.u32 %v504_v40, 7 }
  0xf9   :  { %v694_v47 = vadd.f32 %v693_v45, %v692_v42  ;;  %v695_v48 = vpop.f32.mrb[2].mxu1  ;;  %v668_v49 = vpop.f32.mrb[3].mxu0  ;;  %v490_v42 = vld [vmem:[%s915_s2] sm:$0x1] }
  0xfa   :  { %v669_v50 = vadd.f32 %v668_v49, %v667_v46  ;;  %v696_v51 = vpop.f32.mrb[3].mxu1  ;;  %v506_v43 = vsub.s32 0, %v505_v41  ;;  %v492_v46 = vld [vmem:[%s916_s3] sm:$0x1] }
  0xfb   :  { %v406_v52 = vadd.f32 %v694_v47, %v666_v44  ;;  %v697_v53 = vadd.f32 %v696_v51, %v695_v48 }
  0xfd   :  { %v409_v54 = vadd.f32 %v697_v53, %v669_v50  ;;  %v439_v56 = vmul.f32 %v406_v52, %v406_v52 }
  0xfe   :  { %v670_v55 = vpop.f32.mrb[4].mxu0 }
  0xff   :  { %v427_v57 = vadd.f32 %v409_v54, %v406_v52  ;;  %v440_v58 = vmul.f32 %v409_v54, %v409_v54  ;;  %v897_v59 = vpack.c.bf16 %v409_v54, %v406_v52  ;;  %v698_v60 = vpop.f32.mrb[4].mxu1  ;;  %v671_v61 = vpop.f32.mrb[5].mxu0 }
 0x100   :  { %v672_v62 = vadd.f32 %v671_v61, %v670_v55  ;;  %v699_v63 = vpop.f32.mrb[5].mxu1  ;;  %v673_v0 = vpop.f32.mrb[6].mxu0 }
 0x101   :  { %v443_v1 = vadd.f32 %v440_v58, %v439_v56  ;;  %v700_v2 = vadd.f32 %v699_v63, %v698_v60  ;;  %v701_v3 = vpop.f32.mrb[6].mxu1  ;;  %v674_v4 = vpop.f32.mrb[7].mxu0  ;;  %v629_v49 = vunpack.c.l.bf16 %v897_v59  ;;  %v630_v50 = vunpack.c.h.bf16 %v897_v59 }
 0x102   :  { %v675_v5 = vadd.f32 %v674_v4, %v673_v0  ;;  %v702_v6 = vpop.f32.mrb[7].mxu1 }
 0x103   :  { %v414_v7 = vadd.f32 %v700_v2, %v672_v62  ;;  %v703_v8 = vadd.f32 %v702_v6, %v701_v3 }
 0x105   :  { %v428_v9 = vadd.f32 %v427_v57, %v414_v7  ;;  %v441_v10 = vmul.f32 %v414_v7, %v414_v7  ;;  %v417_v11 = vadd.f32 %v703_v8, %v675_v5 }
 0x107   :  { %v444_v12 = vadd.f32 %v443_v1, %v441_v10  ;;  %v429_v13 = vadd.f32 %v428_v9, %v417_v11  ;;  %v442_v14 = vmul.f32 %v417_v11, %v417_v11  ;;  %v625_v15 = vpack.c.bf16 %v417_v11, %v414_v7 }
 0x109   :  { %v430_v16 = vrot.slane %v429_v13, 4  ;;  %v445_v17 = vadd.f32 %v444_v12, %v442_v14  ;;  %v633_v52 = vunpack.c.l.bf16 %v625_v15  ;;  %v634_v53 = vunpack.c.h.bf16 %v625_v15 }
 0x10b   :  { %v431_v18 = vadd.f32 %v430_v16, %v429_v13  ;;  %v446_v19 = vrot.slane %v445_v17, 4 }
 0x10d   :  { %v432_v20 = vrot.slane %v431_v18, 2  ;;  %v447_v21 = vadd.f32 %v446_v19, %v445_v17 }
 0x10f   :  { %v433_v22 = vadd.f32 %v432_v20, %v431_v18  ;;  %v448_v23 = vrot.slane %v447_v21, 2 }
 0x111   :  { %v434_v24 = vrot.slane %v433_v22, 1  ;;  %v449_v25 = vadd.f32 %v448_v23, %v447_v21 }
 0x113   :  { %v435_v27 = vadd.f32 %v434_v24, %v433_v22  ;;  %v450_v28 = vrot.slane %v449_v25, 1 }
 0x115   :  { %v436_v30 = vadd.f32 %v435_v27, %v426_v26  ;;  %v451_v31 = vadd.f32 %v450_v28, %v449_v25 }
 0x117   :  { %437 = vst [vmem:[#allocation2] sm:$0x1] %v436_v30  ;;  %v452_v32 = vadd.f32 %v451_v31, %v438_v29 }
 0x119   :  { %453 = vst [vmem:[#allocation3] sm:$0x1] %v452_v32 }
 0x11e   :  { %v482_v33 = vld [vmem:[#allocation2] sm:$0x1] }
 0x11f   :  { %v483_v34 = vmul.f32 0.03125, %v482_v33 }
 0x120   :  { %v484_v35 = vld [vmem:[#allocation3] sm:$0x1] }
 0x121   :  { %v485_v36 = vmul.f32 0.03125, %v484_v35  ;;  %v486_v37 = vmul.f32 %v483_v34, %v483_v34 }
 0x123   :  { %v487_v38 = vsub.f32 %v485_v36, %v486_v37 }
 0x125   :  { %v488_v39 = vadd.f32 1e-05, %v487_v38 }
 0x127   :  { %749 = vrsqrt.f32 %v488_v39 }
 0x131   :  { %v750_v44 = vpop.eup %749 }
 0x132   :  { %v491_v45 = vmul.f32 %v750_v44, %v490_v42 }
 0x134   :  { %v493_v47 = vmul.f32 %v491_v45, %v483_v34  ;;  %v507_v48 = vrot.slane %v491_v45, %v506_v43 }
 0x136   :  { %v494_v51 = vsub.f32 %v492_v46, %v493_v47  ;;  %v509_v54 = vmul.f32 %v629_v49, %v507_v48  ;;  %v510_v55 = vmul.f32 %v630_v50, %v507_v48  ;;  %v511_v56 = vmul.f32 %v633_v52, %v507_v48 }
 0x137   :  { %v512_v57 = vmul.f32 %v634_v53, %v507_v48 }
 0x138   :  { %v517_v58 = vrot.slane %v494_v51, %v506_v43 }
 0x13a   :  { %v519_v60 = vadd.f32 %v517_v58, %v509_v54  ;;  %v520_v61 = vadd.f32 %v517_v58, %v510_v55  ;;  %v521_v62 = vadd.f32 %v517_v58, %v511_v56  ;;  %v522_v63 = vadd.f32 %v517_v58, %v512_v57 }
 0x13c   :  { %vm523_vm0 = vcmp.ge.f32.partialorder %v519_v60, 0.0  ;;  %vm524_vm1 = vcmp.ge.f32.partialorder %v520_v61, 0.0  ;;  %vm525_vm2 = vcmp.ge.f32.partialorder %v521_v62, 0.0  ;;  %vm526_vm3 = vcmp.ge.f32.partialorder %v522_v63, 0.0 }
 0x13d   :  { %v527_v0 = vmul.f32 0.2, %v519_v60  ;;  %v528_v1 = vmul.f32 0.2, %v520_v61  ;;  %v529_v2 = vmul.f32 0.2, %v521_v62 }
 0x13e   :  { %v530_v59 = vmul.f32 0.2, %v522_v63 }
 0x13f   :  { %v531_v3 = vsel %vm523_vm0, %v519_v60, %v527_v0  ;;  %v532_v4 = vsel %vm524_vm1, %v520_v61, %v528_v1  ;;  %v533_v5 = vsel %vm525_vm2, %v521_v62, %v529_v2 }
 0x140   :  { %v534_v6 = vsel %vm526_vm3, %v522_v63, %v530_v59  ;;  %v638_v7 = vpack.c.bf16 %v532_v4, %v531_v3 }
 0x141   :  { %v643_v8 = vpack.c.bf16 %v534_v6, %v533_v5 }
 0x142   :  { %639 = vst [vmem:[%s917_s4] sm:$0xff] %v638_v7  }
 0x143   :  { %647 = vst [vmem:[%s917_s4 + $0x8] sm:$0xff] %v643_v8  }

</bundles_post_ra>
